<compile_context>
chip_gen: v7x
topology: tpu7x:2x2x1
jax: 0.10.0
libtpu: 0.0.40
codegen_flags: <defaults>
</compile_context>

<pallas_src>
import functools

import jax
import jax.numpy as jnp
from jax.experimental import pallas as pl
from jax.experimental.pallas import tpu as pltpu


def _round_up(x, m):
    return ((x + m - 1) // m) * m


def _const_index_map(ndim):
    zeros = (0,) * ndim
    return lambda i: zeros


# --------------------------------------------------------------------------- kernel

def _paso_kernel(toks_ref, gep_ref, cnv_ref, mut_ref,
                 wr_ref, br_ref, wc_ref, cb_ref, wa_ref,
                 wco_ref, bo_ref, w1_ref, b1_ref, w2_ref, b2_ref,
                 out_ref, slab_ref, *, L, Da, Do, H, Hpad, Dopad):
    """Fused 3x ContextAttentionLayer + 3x omics dense + final MLP for one batch tile."""
    TB = toks_ref.shape[0]

    toks_bf = toks_ref[...]                                    # [TB, L, H] bf16 (MXU operand)
    toks_f32 = toks_bf.astype(jnp.float32)                     # f32 VPU path (weighted sum)

    # Fused reference projection for all 3 heads: ONE 2-D MXU matmul with M = TB*L.
    ref_all = (jnp.dot(toks_bf.reshape(TB * L, H), wr_ref[...],
                       preferred_element_type=jnp.float32)
               .reshape(TB, L, 3 * Da) + br_ref[...])          # [TB, L, 3Da] f32

    # Zero the slab once so the lane-padding columns never hold stale VMEM garbage
    # (the matching rows of w1 are zero, so padding contributes exactly 0).
    slab_ref[...] = jnp.zeros_like(slab_ref)

    om_refs = (gep_ref, cnv_ref, mut_ref)
    stride = Hpad + Dopad
    for i in range(3):                                         # static unroll over heads
        om_i = om_refs[i][...]                                 # [TB, P] bf16
        # One [TB,P]@[P,L+Do] matmul per head: ctx-hidden scores | omics dense pre-act.
        so = jnp.dot(om_i, wco_ref[i], preferred_element_type=jnp.float32)    # [TB, L+Do]
        s_i = so[:, :L]                                        # om_i @ wht_i^T   [TB, L]
        p_i = jnp.maximum(so[:, L:] + bo_ref[:, i * Do:(i + 1) * Do], 0.0)     # [TB, Do]

        # ctx_attn = Linear(P,L)(Linear(1,Da)(om))  ==  S_i[:,:,None]*wc_i + cbias_i
        ctx_attn = s_i[:, :, None] * wc_ref[i] + cb_ref[i]                     # [TB, L, Da]
        e = jnp.tanh(ref_all[:, :, i * Da:(i + 1) * Da] + ctx_attn)            # [TB, L, Da]
        # alpha projection Linear(Da,1,bias=False); 1/temperature folded into wa.
        logits = jnp.sum(e * wa_ref[i], axis=-1)                               # [TB, L]
        # NOTE: matches the PyTorch module -- ContextAttentionLayer does not see
        # attention_mask, so padded SMILES positions participate in the softmax.
        z = jnp.exp(logits - jnp.max(logits, axis=-1, keepdims=True))          # [TB, L]
        h_un = jnp.sum(toks_f32 * z[:, :, None], axis=1)                       # [TB, H]
        h = h_un * pl.reciprocal(jnp.sum(z, axis=-1, keepdims=True), approx=True)

        # Lane-aligned feature slab in concat order [h_0, p_0, h_1, p_1, h_2, p_2].
        off = i * stride
        slab_ref[:, off:off + H] = h.astype(slab_ref.dtype)
        slab_ref[:, off + Hpad:off + Hpad + Do] = p_i.astype(slab_ref.dtype)

    # MLP: [TB,Fpad]@[Fpad,512] -> ReLU -> Linear(512,1), emitted lane-dense as [1, TB].
    hidden = jnp.maximum(
        jnp.dot(slab_ref[...], w1_ref[...], preferred_element_type=jnp.float32)
        + b1_ref[...], 0.0)                                                    # [TB, 512] f32
    out_ref[...] = (jnp.einsum('oh,bh->ob', w2_ref[...], hidden.astype(jnp.bfloat16),
                               preferred_element_type=jnp.float32)
                    + b2_ref[...])                                             # [1, TB]


# --------------------------------------------------------------------------- wrapper

def _vmem_limit_bytes():
    """Per-core scoped-VMEM limit with headroom (~56 MiB v7x, ~112 MiB v5e/v6e)."""
    cap = 64 * 1024 * 1024                       # conservative default: v7x per-TC VMEM
    try:
        cap = int(pltpu.get_tpu_info().vmem_capacity_bytes)
    except Exception:
        pass
    return min(cap * 7 // 8, 112 * 1024 * 1024)


def _pick_batch_tile(B, *, L, H, P, Da, Fpad, weight_bytes, vmem_limit):
    """Largest batch tile in {256, 128} that fits the VMEM budget, else whole batch."""
    bf, f32 = 2, 4
    per_row = (2 * L * H * bf            # toks block, bf16, double-buffered
               + 2 * 3 * P * bf          # gep/cnv/mut blocks, bf16, double-buffered
               + Fpad * bf               # slab scratch
               + L * H * f32             # toks promoted to f32 (weighted-sum path)
               + 3 * L * Da * f32        # ref_all
               + 2 * L * Da * f32        # per-head ctx_attn / tanh temporaries
               + 512 * f32 + 64)         # MLP hidden + misc
    budget = vmem_limit - 2 * weight_bytes - (2 << 20)   # 2x weights: safe even if double-buffered
    for tb in (256, 128):                # 256 fills the 256x256 MXU on v6e/v7x
        if B >= 2 * tb and tb * per_row <= budget:
            return tb                    # >= 2 grid steps -> both v7x TCs get work
    return B                             # small / awkward batch: single grid step


_WEIGHT_KEYS = ('wr_f', 'br_f', 'wc', 'cbias', 'wa_s', 'wco', 'bo_f',
                'w1p', 'b1', 'w2', 'b2')


def paso_chem_v1_forward(params, input_ids, attention_mask, gep, cnv, mut):
    """Stand-in encoder + omics heads + MLP; one fused Pallas call over batch tiles."""
    # TODO(synk): ChemEncoder (pretrained ChemBERTa) stand-in: mask-gated embedding lookup.
    emb = params['emb']
    toks = emb[input_ids] * attention_mask[..., None].astype(emb.dtype)       # [B, L, H] f32
    B, L, H = toks.shape
    P = gep.shape[-1]
    Da = params['wc'].shape[-1]
    Do = params['bo_f'].shape[-1] // 3
    Hpad, Dopad = _round_up(H, 128), _round_up(Do, 128)
    Fpad = 3 * (Hpad + Dopad)
    assert params['w1p'].shape[0] == Fpad

    # bf16 MXU operands; f32 accumulation stays inside the kernel.
    toks_bf = toks.astype(jnp.bfloat16)
    oms_bf = [o.astype(jnp.bfloat16) for o in (gep, cnv, mut)]

    weights = [params[k] for k in _WEIGHT_KEYS]
    weight_bytes = sum(int(w.size) * w.dtype.itemsize for w in weights)
    vmem_limit = int(_vmem_limit_bytes())
    TB = _pick_batch_tile(B, L=L, H=H, P=P, Da=Da, Fpad=Fpad,
                          weight_bytes=weight_bytes, vmem_limit=vmem_limit)

    Bp = _round_up(B, TB)
    if Bp != B:                           # pad batch; padded rows are discarded below
        toks_bf = jnp.pad(toks_bf, ((0, Bp - B), (0, 0), (0, 0)))
        oms_bf = [jnp.pad(o, ((0, Bp - B), (0, 0))) for o in oms_bf]
    grid = (Bp // TB,)

    kernel = functools.partial(_paso_kernel, L=L, Da=Da, Do=Do, H=H,
                               Hpad=Hpad, Dopad=Dopad)
    data_specs = ([pl.BlockSpec((TB, L, H), lambda i: (i, 0, 0))]
                  + [pl.BlockSpec((TB, P), lambda i: (i, 0)) for _ in range(3)])

    def call(single_buffer_weights):
        def resident(arr):                # full array, same block every grid step
            if single_buffer_weights:     # constant block index -> double buffering is waste
                return pl.BlockSpec(arr.shape, _const_index_map(arr.ndim),
                                    pipeline_mode=pl.Buffered(1))
            return pl.BlockSpec(arr.shape, _const_index_map(arr.ndim))

        out = pl.pallas_call(
            kernel,
            out_shape=jax.ShapeDtypeStruct((1, Bp), jnp.float32),
            grid=grid,
            in_specs=data_specs + [resident(w) for w in weights],
            out_specs=pl.BlockSpec((1, TB), lambda i: (0, i)),
            scratch_shapes=[pltpu.VMEM((TB, Fpad), jnp.bfloat16)],
            compiler_params=pltpu.CompilerParams(
                dimension_semantics=("parallel",),
                vmem_limit_bytes=vmem_limit),
        )(toks_bf, *oms_bf, *weights)
        return jax.block_until_ready(out)

    try:
        out = call(single_buffer_weights=True)
    except Exception:
        # pl.Buffered(1) unsupported by this JAX/Mosaic version: fall back to the
        # default (double-buffered) resident-weight specs.
        out = call(single_buffer_weights=False)

    return out[0, :B]                                                          # [B]


# --------------------------------------------------------------------------- params

def init_params(key, *, vocab, H, L, P, Da, Do, mlp_hidden, temperature):
    """Synthetic per-head params (torch layouts) + the fused/bf16 kernel weights."""
    ks = jax.random.split(key, 14)
    s = 0.1
    n = lambda k, shape: jax.random.normal(k, shape, jnp.float32) * s

    # Per-head ContextAttentionLayer params.
    wr = n(ks[1], (3, H, Da));  br = n(ks[2], (3, 1, Da))    # reference proj Linear(H, Da)
    wc = n(ks[3], (3, 1, Da));  bc = n(ks[4], (3, 1, Da))    # context proj   Linear(1, Da)
    wht = n(ks[5], (3, L, P));  bh = n(ks[6], (3, L, 1))     # ctx-hidden proj Linear(P, L) (torch [L,P])
    wa = n(ks[7], (3, 1, Da))                                # alpha proj Linear(Da, 1, bias=False)
    wo = n(ks[8], (3, P, Do));  bo = n(ks[9], (3, 1, Do))    # omics dense Linear(P, Do)
    w1 = n(ks[10], (3 * (H + Do), mlp_hidden)); b1 = n(ks[11], (1, mlp_hidden))
    w2 = n(ks[12], (1, mlp_hidden));            b2 = n(ks[13], (1, 1))
    emb = n(ks[0], (vocab, H))

    raw = dict(emb=emb, wr=wr, br=br, wc=wc, bc=bc, wht=wht, bh=bh, wa=wa,
               wo=wo, bo=bo, w1=w1, b1=b1, w2=w2, b2=b2)

    # ---- one-time fusion / bf16 packing for the kernel ----
    wr_f = jnp.transpose(wr, (1, 0, 2)).reshape(H, 3 * Da).astype(jnp.bfloat16)
    br_f = br.reshape(1, 3 * Da)
    # ctx_attn[b,l,a] = (om @ wht^T)[b,l]*wc[a] + (sum_p wht[l,p])*bc[a] + bh[l]
    cbias = wht.sum(axis=2, keepdims=True) * bc + bh                       # [3, L, Da]
    # Per-head stacked [P, L+Do] weight: ctx-hidden scores (wht^T) | omics dense (wo).
    wco = jnp.concatenate([jnp.transpose(wht, (0, 2, 1)), wo], axis=2).astype(jnp.bfloat16)
    bo_f = bo.reshape(1, 3 * Do)
    wa_s = wa / float(temperature)                                         # fold 1/T (eval mode)
    # Lane-align w1 rows to the padded slab layout [h_i | 0 | p_i | 0] x 3.
    Hpad, Dopad = _round_up(H, 128), _round_up(Do, 128)
    w1p = jnp.zeros((3 * (Hpad + Dopad), mlp_hidden), jnp.float32)
    for i in range(3):
        src, dst = i * (H + Do), i * (Hpad + Dopad)
        w1p = w1p.at[dst:dst + H].set(w1[src:src + H])
        w1p = w1p.at[dst + Hpad:dst + Hpad + Do].set(w1[src + H:src + H + Do])
    w1p = w1p.astype(jnp.bfloat16)

    params = dict(emb=emb, wr_f=wr_f, br_f=br_f, wc=wc, cbias=cbias, wa_s=wa_s,
                  wco=wco, bo_f=bo_f, w1p=w1p, b1=b1,
                  w2=w2.astype(jnp.bfloat16), b2=b2)
    return params, raw


def reference_forward(raw, input_ids, attention_mask, gep, cnv, mut, temperature):
    """Pure-JAX f32 reference of the module forward (stand-in encoder, eval mode)."""
    emb = raw['emb']
    toks = emb[input_ids] * attention_mask[..., None].astype(emb.dtype)        # [B, L, H]
    feats = []
    for i, om in enumerate((gep, cnv, mut)):
        ref_p = toks @ raw['wr'][i] + raw['br'][i]                             # [B, L, Da]
        ctx_p = om[:, :, None] * raw['wc'][i] + raw['bc'][i]                   # [B, P, Da]
        ctx_h = jnp.einsum('lp,bpa->bla', raw['wht'][i], ctx_p) + raw['bh'][i]  # [B, L, Da]
        e = jnp.tanh(ref_p + ctx_h)
        logits = jnp.squeeze(e @ raw['wa'][i].T, -1) / temperature             # [B, L]
        alphas = jax.nn.softmax(logits, axis=-1)
        feats.append(jnp.einsum('bl,blh->bh', alphas, toks))                   # attention pool
        feats.append(jax.nn.relu(om @ raw['wo'][i] + raw['bo'][i]))            # omics dense
    x = jnp.concatenate(feats, axis=1)
    hidden = jax.nn.relu(x @ raw['w1'] + raw['b1'])
    return (hidden @ raw['w2'].T + raw['b2'])[:, 0]


if __name__ == "__main__":
    # Small shapes consistent with the module's forward:
    # B=2, L(smiles_padding_length)=8, H(encoder hidden)=32, P(number_of_pathways)=16,
    # Da(smiles_attention_size)=16, Do(omics_dense_size)=32, MLP hidden=512, T=1.0.
    B, L, H, P, Da, Do, V, MLP = 2, 8, 32, 16, 16, 32, 50, 512
    TEMPERATURE = 1.0

    key = jax.random.PRNGKey(0)
    kp, ki, kg, kc, km = jax.random.split(key, 5)

    params, raw = init_params(kp, vocab=V, H=H, L=L, P=P, Da=Da, Do=Do,
                              mlp_hidden=MLP, temperature=TEMPERATURE)

    input_ids = jax.random.randint(ki, (B, L), 0, V)
    attention_mask = jnp.ones((B, L), jnp.int32)
    gep = jax.random.normal(kg, (B, P), jnp.float32)
    cnv = jax.random.normal(kc, (B, P), jnp.float32)
    mut = jax.random.normal(km, (B, P), jnp.float32)

    y_hat = paso_chem_v1_forward(params, input_ids, attention_mask, gep, cnv, mut)
    y_hat = jax.block_until_ready(y_hat)
    assert y_hat.shape == (B,) and y_hat.dtype == jnp.float32

    # Validate the fused bf16-matmul kernel against the pure-JAX f32 reference.
    y_ref = reference_forward(raw, input_ids, attention_mask, gep, cnv, mut, TEMPERATURE)
    assert jnp.allclose(y_hat, y_ref, rtol=5e-2, atol=5e-2)
    print("KERNEL_OK")
</pallas_src>

<mosaic_0001>
module attributes {stable_mosaic.version = 11 : i64} {
  func.func @_paso_kernel(%arg0: i32, %arg1: memref<2x8x32xbf16, #tpu.memory_space<vmem>>, %arg2: memref<2x16xbf16, #tpu.memory_space<vmem>>, %arg3: memref<2x16xbf16, #tpu.memory_space<vmem>>, %arg4: memref<2x16xbf16, #tpu.memory_space<vmem>>, %arg5: memref<32x48xbf16, #tpu.memory_space<vmem>>, %arg6: memref<1x48xf32, #tpu.memory_space<vmem>>, %arg7: memref<3x1x16xf32, #tpu.memory_space<vmem>>, %arg8: memref<3x8x16xf32, #tpu.memory_space<vmem>>, %arg9: memref<3x1x16xf32, #tpu.memory_space<vmem>>, %arg10: memref<3x16x40xbf16, #tpu.memory_space<vmem>>, %arg11: memref<1x96xf32, #tpu.memory_space<vmem>>, %arg12: memref<768x512xbf16, #tpu.memory_space<vmem>>, %arg13: memref<1x512xf32, #tpu.memory_space<vmem>>, %arg14: memref<1x512xbf16, #tpu.memory_space<vmem>>, %arg15: memref<1x1xf32, #tpu.memory_space<vmem>>, %arg16: memref<1x2xf32, #tpu.memory_space<vmem>>, %arg17: memref<2x768xbf16, #tpu.memory_space<vmem>>) attributes {dimension_semantics = [#tpu.dimension_semantics<parallel>], iteration_bounds = array<i64: 1>, scalar_prefetch = 0 : i64, scratch_operands = 1 : i64, tpu.core_type = #tpu.core_type<tc>, window_params = [{transform_indices = @transform_0, window_bounds = array<i64: 2, 8, 32>}, {transform_indices = @transform_1, window_bounds = array<i64: 2, 16>}, {transform_indices = @transform_2, window_bounds = array<i64: 2, 16>}, {transform_indices = @transform_3, window_bounds = array<i64: 2, 16>}, {pipeline_mode = #tpu.pipeline_mode<synchronous>, transform_indices = @transform_4, window_bounds = array<i64: 32, 48>}, {pipeline_mode = #tpu.pipeline_mode<synchronous>, transform_indices = @transform_5, window_bounds = array<i64: 1, 48>}, {pipeline_mode = #tpu.pipeline_mode<synchronous>, transform_indices = @transform_6, window_bounds = array<i64: 3, 1, 16>}, {pipeline_mode = #tpu.pipeline_mode<synchronous>, transform_indices = @transform_7, window_bounds = array<i64: 3, 8, 16>}, {pipeline_mode = #tpu.pipeline_mode<synchronous>, transform_indices = @transform_8, window_bounds = array<i64: 3, 1, 16>}, {pipeline_mode = #tpu.pipeline_mode<synchronous>, transform_indices = @transform_9, window_bounds = array<i64: 3, 16, 40>}, {pipeline_mode = #tpu.pipeline_mode<synchronous>, transform_indices = @transform_10, window_bounds = array<i64: 1, 96>}, {pipeline_mode = #tpu.pipeline_mode<synchronous>, transform_indices = @transform_11, window_bounds = array<i64: 768, 512>}, {pipeline_mode = #tpu.pipeline_mode<synchronous>, transform_indices = @transform_12, window_bounds = array<i64: 1, 512>}, {pipeline_mode = #tpu.pipeline_mode<synchronous>, transform_indices = @transform_13, window_bounds = array<i64: 1, 512>}, {pipeline_mode = #tpu.pipeline_mode<synchronous>, transform_indices = @transform_14, window_bounds = array<i64: 1, 1>}, {transform_indices = @transform_15, window_bounds = array<i64: 1, 2>}]} {
    %c0 = arith.constant 0 : index
    %c0_0 = arith.constant 0 : index
    %c0_1 = arith.constant 0 : index
    %0 = vector.load %arg1[%c0, %c0_0, %c0_1] : memref<2x8x32xbf16, #tpu.memory_space<vmem>>, vector<2x8x32xbf16>
    %1 = arith.extf %0 : vector<2x8x32xbf16> to vector<2x8x32xf32>
    %2 = vector.shape_cast %0 : vector<2x8x32xbf16> to vector<16x32xbf16>
    %c0_2 = arith.constant 0 : index
    %c0_3 = arith.constant 0 : index
    %3 = vector.load %arg5[%c0_2, %c0_3] : memref<32x48xbf16, #tpu.memory_space<vmem>>, vector<32x48xbf16>
    %cst = arith.constant dense<0.000000e+00> : vector<16x48xf32>
    %4 = tpu.matmul %2, %3, %cst {dimension_numbers = #tpu.dot_dimension_numbers<[1], [0], [0], [1], [0, 0, 1, 1], [], []>} : vector<16x32xbf16>, vector<32x48xbf16>, vector<16x48xf32> -> vector<16x48xf32>
    %5 = vector.shape_cast %4 : vector<16x48xf32> to vector<2x8x48xf32>
    %c0_4 = arith.constant 0 : index
    %c0_5 = arith.constant 0 : index
    %6 = vector.load %arg6[%c0_4, %c0_5] : memref<1x48xf32, #tpu.memory_space<vmem>>, vector<1x48xf32>
    %7 = vector.shape_cast %6 : vector<1x48xf32> to vector<1x1x48xf32>
    %8 = vector.broadcast %7 : vector<1x1x48xf32> to vector<2x8x48xf32>
    %9 = arith.addf %5, %8 : vector<2x8x48xf32>
    %cst_6 = arith.constant 0.000000e+00 : bf16
    %10 = vector.broadcast %cst_6 : bf16 to vector<2x768xbf16>
    %c0_7 = arith.constant 0 : index
    %c0_8 = arith.constant 0 : index
    %11 = vector.load %arg17[%c0_7, %c0_8] : memref<2x768xbf16, #tpu.memory_space<vmem>>, vector<2x768xbf16>
    tpu.vector_store %arg17[%c0_7, %c0_8], %10 {strides = array<i32>} : memref<2x768xbf16, #tpu.memory_space<vmem>>, vector<2x768xbf16>,
    %c0_9 = arith.constant 0 : index
    %c0_10 = arith.constant 0 : index
    %12 = vector.load %arg2[%c0_9, %c0_10] : memref<2x16xbf16, #tpu.memory_space<vmem>>, vector<2x16xbf16>
    %c0_11 = arith.constant 0 : index
    %c0_12 = arith.constant 0 : index
    %c0_13 = arith.constant 0 : index
    %13 = vector.load %arg10[%c0_11, %c0_12, %c0_13] : memref<3x16x40xbf16, #tpu.memory_space<vmem>>, vector<1x16x40xbf16>
    %14 = vector.shape_cast %13 : vector<1x16x40xbf16> to vector<16x40xbf16>
    %cst_14 = arith.constant dense<0.000000e+00> : vector<2x40xf32>
    %15 = tpu.matmul %12, %14, %cst_14 {dimension_numbers = #tpu.dot_dimension_numbers<[1], [0], [0], [1], [0, 0, 1, 1], [], []>} : vector<2x16xbf16>, vector<16x40xbf16>, vector<2x40xf32> -> vector<2x40xf32>
    %16 = vector.extract_strided_slice %15 {offsets = [0, 0], sizes = [2, 8], strides = [1, 1]} : vector<2x40xf32> to vector<2x8xf32>
    %17 = vector.extract_strided_slice %15 {offsets = [0, 8], sizes = [2, 32], strides = [1, 1]} : vector<2x40xf32> to vector<2x32xf32>
    %c0_15 = arith.constant 0 : index
    %c0_16 = arith.constant 0 : index
    %18 = vector.load %arg11[%c0_15, %c0_16] : memref<1x96xf32, #tpu.memory_space<vmem>>, vector<1x32xf32>
    %19 = vector.broadcast %18 : vector<1x32xf32> to vector<2x32xf32>
    %20 = arith.addf %17, %19 : vector<2x32xf32>
    %cst_17 = arith.constant 0.000000e+00 : f32
    %21 = vector.broadcast %cst_17 : f32 to vector<2x32xf32>
    %22 = arith.maximumf %20, %21 : vector<2x32xf32>
    %23 = vector.shape_cast %16 : vector<2x8xf32> to vector<2x8x1xf32>
    %c0_18 = arith.constant 0 : index
    %c0_19 = arith.constant 0 : index
    %c0_20 = arith.constant 0 : index
    %24 = vector.load %arg7[%c0_18, %c0_19, %c0_20] : memref<3x1x16xf32, #tpu.memory_space<vmem>>, vector<1x1x16xf32>
    %25 = vector.shape_cast %24 : vector<1x1x16xf32> to vector<1x16xf32>
    %26 = vector.shape_cast %25 : vector<1x16xf32> to vector<1x1x16xf32>
    %27 = vector.broadcast %23 : vector<2x8x1xf32> to vector<2x8x16xf32>
    %28 = vector.broadcast %26 : vector<1x1x16xf32> to vector<2x8x16xf32>
    %29 = arith.mulf %27, %28 : vector<2x8x16xf32>
    %c0_21 = arith.constant 0 : index
    %c0_22 = arith.constant 0 : index
    %c0_23 = arith.constant 0 : index
    %30 = vector.load %arg8[%c0_21, %c0_22, %c0_23] : memref<3x8x16xf32, #tpu.memory_space<vmem>>, vector<1x8x16xf32>
    %31 = vector.shape_cast %30 : vector<1x8x16xf32> to vector<8x16xf32>
    %32 = vector.shape_cast %31 : vector<8x16xf32> to vector<1x8x16xf32>
    %33 = vector.broadcast %32 : vector<1x8x16xf32> to vector<2x8x16xf32>
    %34 = arith.addf %29, %33 : vector<2x8x16xf32>
    %35 = vector.extract_strided_slice %9 {offsets = [0, 0, 0], sizes = [2, 8, 16], strides = [1, 1, 1]} : vector<2x8x48xf32> to vector<2x8x16xf32>
    %36 = arith.addf %35, %34 : vector<2x8x16xf32>
    %37 = math.tanh %36 : vector<2x8x16xf32>
    %c0_24 = arith.constant 0 : index
    %c0_25 = arith.constant 0 : index
    %c0_26 = arith.constant 0 : index
    %38 = vector.load %arg9[%c0_24, %c0_25, %c0_26] : memref<3x1x16xf32, #tpu.memory_space<vmem>>, vector<1x1x16xf32>
    %39 = vector.shape_cast %38 : vector<1x1x16xf32> to vector<1x16xf32>
    %40 = vector.shape_cast %39 : vector<1x16xf32> to vector<1x1x16xf32>
    %41 = vector.broadcast %40 : vector<1x1x16xf32> to vector<2x8x16xf32>
    %42 = arith.mulf %37, %41 : vector<2x8x16xf32>
    %cst_27 = arith.constant dense<0.000000e+00> : vector<2x8xf32>
    %43 = vector.multi_reduction <add>, %42, %cst_27 [2] : vector<2x8x16xf32> to vector<2x8xf32>
    %cst_28 = arith.constant dense<0xFF800000> : vector<2xf32>
    %44 = vector.multi_reduction <maximumf>, %43, %cst_28 [1] : vector<2x8xf32> to vector<2xf32>
    %45 = vector.shape_cast %44 : vector<2xf32> to vector<2x1xf32>
    %46 = vector.broadcast %45 : vector<2x1xf32> to vector<2x8xf32>
    %47 = arith.subf %43, %46 : vector<2x8xf32>
    %48 = math.exp %47 : vector<2x8xf32>
    %49 = vector.shape_cast %48 : vector<2x8xf32> to vector<2x8x1xf32>
    %50 = vector.broadcast %49 : vector<2x8x1xf32> to vector<2x8x32xf32>
    %51 = arith.mulf %1, %50 : vector<2x8x32xf32>
    %cst_29 = arith.constant dense<0.000000e+00> : vector<2x32xf32>
    %52 = vector.multi_reduction <add>, %51, %cst_29 [1] : vector<2x8x32xf32> to vector<2x32xf32>
    %cst_30 = arith.constant dense<0.000000e+00> : vector<2xf32>
    %53 = vector.multi_reduction <add>, %48, %cst_30 [1] : vector<2x8xf32> to vector<2xf32>
    %54 = vector.shape_cast %53 : vector<2xf32> to vector<2x1xf32>
    %55 = tpu.reciprocal %54 {approx = true} : vector<2x1xf32> -> vector<2x1xf32>
    %56 = vector.broadcast %55 : vector<2x1xf32> to vector<2x32xf32>
    %57 = arith.mulf %52, %56 : vector<2x32xf32>
    %58 = arith.truncf %57 : vector<2x32xf32> to vector<2x32xbf16>
    %c0_31 = arith.constant 0 : index
    %c0_32 = arith.constant 0 : index
    %59 = vector.load %arg17[%c0_31, %c0_32] : memref<2x768xbf16, #tpu.memory_space<vmem>>, vector<2x32xbf16>
    tpu.vector_store %arg17[%c0_31, %c0_32], %58 {strides = array<i32>} : memref<2x768xbf16, #tpu.memory_space<vmem>>, vector<2x32xbf16>,
    %60 = arith.truncf %22 : vector<2x32xf32> to vector<2x32xbf16>
    %c0_33 = arith.constant 0 : index
    %c128 = arith.constant 128 : index
    %61 = vector.load %arg17[%c0_33, %c128] : memref<2x768xbf16, #tpu.memory_space<vmem>>, vector<2x32xbf16>
    tpu.vector_store %arg17[%c0_33, %c128], %60 {strides = array<i32>} : memref<2x768xbf16, #tpu.memory_space<vmem>>, vector<2x32xbf16>,
    %c0_34 = arith.constant 0 : index
    %c0_35 = arith.constant 0 : index
    %62 = vector.load %arg3[%c0_34, %c0_35] : memref<2x16xbf16, #tpu.memory_space<vmem>>, vector<2x16xbf16>
    %c1 = arith.constant 1 : index
    %c0_36 = arith.constant 0 : index
    %c0_37 = arith.constant 0 : index
    %63 = vector.load %arg10[%c1, %c0_36, %c0_37] : memref<3x16x40xbf16, #tpu.memory_space<vmem>>, vector<1x16x40xbf16>
    %64 = vector.shape_cast %63 : vector<1x16x40xbf16> to vector<16x40xbf16>
    %cst_38 = arith.constant dense<0.000000e+00> : vector<2x40xf32>
    %65 = tpu.matmul %62, %64, %cst_38 {dimension_numbers = #tpu.dot_dimension_numbers<[1], [0], [0], [1], [0, 0, 1, 1], [], []>} : vector<2x16xbf16>, vector<16x40xbf16>, vector<2x40xf32> -> vector<2x40xf32>
    %66 = vector.extract_strided_slice %65 {offsets = [0, 0], sizes = [2, 8], strides = [1, 1]} : vector<2x40xf32> to vector<2x8xf32>
    %67 = vector.extract_strided_slice %65 {offsets = [0, 8], sizes = [2, 32], strides = [1, 1]} : vector<2x40xf32> to vector<2x32xf32>
    %c0_39 = arith.constant 0 : index
    %c32 = arith.constant 32 : index
    %68 = vector.load %arg11[%c0_39, %c32] : memref<1x96xf32, #tpu.memory_space<vmem>>, vector<1x32xf32>
    %69 = vector.broadcast %68 : vector<1x32xf32> to vector<2x32xf32>
    %70 = arith.addf %67, %69 : vector<2x32xf32>
    %cst_40 = arith.constant 0.000000e+00 : f32
    %71 = vector.broadcast %cst_40 : f32 to vector<2x32xf32>
    %72 = arith.maximumf %70, %71 : vector<2x32xf32>
    %73 = vector.shape_cast %66 : vector<2x8xf32> to vector<2x8x1xf32>
    %c1_41 = arith.constant 1 : index
    %c0_42 = arith.constant 0 : index
    %c0_43 = arith.constant 0 : index
    %74 = vector.load %arg7[%c1_41, %c0_42, %c0_43] : memref<3x1x16xf32, #tpu.memory_space<vmem>>, vector<1x1x16xf32>
    %75 = vector.shape_cast %74 : vector<1x1x16xf32> to vector<1x16xf32>
    %76 = vector.shape_cast %75 : vector<1x16xf32> to vector<1x1x16xf32>
    %77 = vector.broadcast %73 : vector<2x8x1xf32> to vector<2x8x16xf32>
    %78 = vector.broadcast %76 : vector<1x1x16xf32> to vector<2x8x16xf32>
    %79 = arith.mulf %77, %78 : vector<2x8x16xf32>
    %c1_44 = arith.constant 1 : index
    %c0_45 = arith.constant 0 : index
    %c0_46 = arith.constant 0 : index
    %80 = vector.load %arg8[%c1_44, %c0_45, %c0_46] : memref<3x8x16xf32, #tpu.memory_space<vmem>>, vector<1x8x16xf32>
    %81 = vector.shape_cast %80 : vector<1x8x16xf32> to vector<8x16xf32>
    %82 = vector.shape_cast %81 : vector<8x16xf32> to vector<1x8x16xf32>
    %83 = vector.broadcast %82 : vector<1x8x16xf32> to vector<2x8x16xf32>
    %84 = arith.addf %79, %83 : vector<2x8x16xf32>
    %85 = vector.extract_strided_slice %9 {offsets = [0, 0, 16], sizes = [2, 8, 16], strides = [1, 1, 1]} : vector<2x8x48xf32> to vector<2x8x16xf32>
    %86 = arith.addf %85, %84 : vector<2x8x16xf32>
    %87 = math.tanh %86 : vector<2x8x16xf32>
    %c1_47 = arith.constant 1 : index
    %c0_48 = arith.constant 0 : index
    %c0_49 = arith.constant 0 : index
    %88 = vector.load %arg9[%c1_47, %c0_48, %c0_49] : memref<3x1x16xf32, #tpu.memory_space<vmem>>, vector<1x1x16xf32>
    %89 = vector.shape_cast %88 : vector<1x1x16xf32> to vector<1x16xf32>
    %90 = vector.shape_cast %89 : vector<1x16xf32> to vector<1x1x16xf32>
    %91 = vector.broadcast %90 : vector<1x1x16xf32> to vector<2x8x16xf32>
    %92 = arith.mulf %87, %91 : vector<2x8x16xf32>
    %cst_50 = arith.constant dense<0.000000e+00> : vector<2x8xf32>
    %93 = vector.multi_reduction <add>, %92, %cst_50 [2] : vector<2x8x16xf32> to vector<2x8xf32>
    %cst_51 = arith.constant dense<0xFF800000> : vector<2xf32>
    %94 = vector.multi_reduction <maximumf>, %93, %cst_51 [1] : vector<2x8xf32> to vector<2xf32>
    %95 = vector.shape_cast %94 : vector<2xf32> to vector<2x1xf32>
    %96 = vector.broadcast %95 : vector<2x1xf32> to vector<2x8xf32>
    %97 = arith.subf %93, %96 : vector<2x8xf32>
    %98 = math.exp %97 : vector<2x8xf32>
    %99 = vector.shape_cast %98 : vector<2x8xf32> to vector<2x8x1xf32>
    %100 = vector.broadcast %99 : vector<2x8x1xf32> to vector<2x8x32xf32>
    %101 = arith.mulf %1, %100 : vector<2x8x32xf32>
    %cst_52 = arith.constant dense<0.000000e+00> : vector<2x32xf32>
    %102 = vector.multi_reduction <add>, %101, %cst_52 [1] : vector<2x8x32xf32> to vector<2x32xf32>
    %cst_53 = arith.constant dense<0.000000e+00> : vector<2xf32>
    %103 = vector.multi_reduction <add>, %98, %cst_53 [1] : vector<2x8xf32> to vector<2xf32>
    %104 = vector.shape_cast %103 : vector<2xf32> to vector<2x1xf32>
    %105 = tpu.reciprocal %104 {approx = true} : vector<2x1xf32> -> vector<2x1xf32>
    %106 = vector.broadcast %105 : vector<2x1xf32> to vector<2x32xf32>
    %107 = arith.mulf %102, %106 : vector<2x32xf32>
    %108 = arith.truncf %107 : vector<2x32xf32> to vector<2x32xbf16>
    %c0_54 = arith.constant 0 : index
    %c256 = arith.constant 256 : index
    %109 = vector.load %arg17[%c0_54, %c256] : memref<2x768xbf16, #tpu.memory_space<vmem>>, vector<2x32xbf16>
    tpu.vector_store %arg17[%c0_54, %c256], %108 {strides = array<i32>} : memref<2x768xbf16, #tpu.memory_space<vmem>>, vector<2x32xbf16>,
    %110 = arith.truncf %72 : vector<2x32xf32> to vector<2x32xbf16>
    %c0_55 = arith.constant 0 : index
    %c384 = arith.constant 384 : index
    %111 = vector.load %arg17[%c0_55, %c384] : memref<2x768xbf16, #tpu.memory_space<vmem>>, vector<2x32xbf16>
    tpu.vector_store %arg17[%c0_55, %c384], %110 {strides = array<i32>} : memref<2x768xbf16, #tpu.memory_space<vmem>>, vector<2x32xbf16>,
    %c0_56 = arith.constant 0 : index
    %c0_57 = arith.constant 0 : index
    %112 = vector.load %arg4[%c0_56, %c0_57] : memref<2x16xbf16, #tpu.memory_space<vmem>>, vector<2x16xbf16>
    %c2 = arith.constant 2 : index
    %c0_58 = arith.constant 0 : index
    %c0_59 = arith.constant 0 : index
    %113 = vector.load %arg10[%c2, %c0_58, %c0_59] : memref<3x16x40xbf16, #tpu.memory_space<vmem>>, vector<1x16x40xbf16>
    %114 = vector.shape_cast %113 : vector<1x16x40xbf16> to vector<16x40xbf16>
    %cst_60 = arith.constant dense<0.000000e+00> : vector<2x40xf32>
    %115 = tpu.matmul %112, %114, %cst_60 {dimension_numbers = #tpu.dot_dimension_numbers<[1], [0], [0], [1], [0, 0, 1, 1], [], []>} : vector<2x16xbf16>, vector<16x40xbf16>, vector<2x40xf32> -> vector<2x40xf32>
    %116 = vector.extract_strided_slice %115 {offsets = [0, 0], sizes = [2, 8], strides = [1, 1]} : vector<2x40xf32> to vector<2x8xf32>
    %117 = vector.extract_strided_slice %115 {offsets = [0, 8], sizes = [2, 32], strides = [1, 1]} : vector<2x40xf32> to vector<2x32xf32>
    %c0_61 = arith.constant 0 : index
    %c64 = arith.constant 64 : index
    %118 = vector.load %arg11[%c0_61, %c64] : memref<1x96xf32, #tpu.memory_space<vmem>>, vector<1x32xf32>
    %119 = vector.broadcast %118 : vector<1x32xf32> to vector<2x32xf32>
    %120 = arith.addf %117, %119 : vector<2x32xf32>
    %cst_62 = arith.constant 0.000000e+00 : f32
    %121 = vector.broadcast %cst_62 : f32 to vector<2x32xf32>
    %122 = arith.maximumf %120, %121 : vector<2x32xf32>
    %123 = vector.shape_cast %116 : vector<2x8xf32> to vector<2x8x1xf32>
    %c2_63 = arith.constant 2 : index
    %c0_64 = arith.constant 0 : index
    %c0_65 = arith.constant 0 : index
    %124 = vector.load %arg7[%c2_63, %c0_64, %c0_65] : memref<3x1x16xf32, #tpu.memory_space<vmem>>, vector<1x1x16xf32>
    %125 = vector.shape_cast %124 : vector<1x1x16xf32> to vector<1x16xf32>
    %126 = vector.shape_cast %125 : vector<1x16xf32> to vector<1x1x16xf32>
    %127 = vector.broadcast %123 : vector<2x8x1xf32> to vector<2x8x16xf32>
    %128 = vector.broadcast %126 : vector<1x1x16xf32> to vector<2x8x16xf32>
    %129 = arith.mulf %127, %128 : vector<2x8x16xf32>
    %c2_66 = arith.constant 2 : index
    %c0_67 = arith.constant 0 : index
    %c0_68 = arith.constant 0 : index
    %130 = vector.load %arg8[%c2_66, %c0_67, %c0_68] : memref<3x8x16xf32, #tpu.memory_space<vmem>>, vector<1x8x16xf32>
    %131 = vector.shape_cast %130 : vector<1x8x16xf32> to vector<8x16xf32>
    %132 = vector.shape_cast %131 : vector<8x16xf32> to vector<1x8x16xf32>
    %133 = vector.broadcast %132 : vector<1x8x16xf32> to vector<2x8x16xf32>
    %134 = arith.addf %129, %133 : vector<2x8x16xf32>
    %135 = vector.extract_strided_slice %9 {offsets = [0, 0, 32], sizes = [2, 8, 16], strides = [1, 1, 1]} : vector<2x8x48xf32> to vector<2x8x16xf32>
    %136 = arith.addf %135, %134 : vector<2x8x16xf32>
    %137 = math.tanh %136 : vector<2x8x16xf32>
    %c2_69 = arith.constant 2 : index
    %c0_70 = arith.constant 0 : index
    %c0_71 = arith.constant 0 : index
    %138 = vector.load %arg9[%c2_69, %c0_70, %c0_71] : memref<3x1x16xf32, #tpu.memory_space<vmem>>, vector<1x1x16xf32>
    %139 = vector.shape_cast %138 : vector<1x1x16xf32> to vector<1x16xf32>
    %140 = vector.shape_cast %139 : vector<1x16xf32> to vector<1x1x16xf32>
    %141 = vector.broadcast %140 : vector<1x1x16xf32> to vector<2x8x16xf32>
    %142 = arith.mulf %137, %141 : vector<2x8x16xf32>
    %cst_72 = arith.constant dense<0.000000e+00> : vector<2x8xf32>
    %143 = vector.multi_reduction <add>, %142, %cst_72 [2] : vector<2x8x16xf32> to vector<2x8xf32>
    %cst_73 = arith.constant dense<0xFF800000> : vector<2xf32>
    %144 = vector.multi_reduction <maximumf>, %143, %cst_73 [1] : vector<2x8xf32> to vector<2xf32>
    %145 = vector.shape_cast %144 : vector<2xf32> to vector<2x1xf32>
    %146 = vector.broadcast %145 : vector<2x1xf32> to vector<2x8xf32>
    %147 = arith.subf %143, %146 : vector<2x8xf32>
    %148 = math.exp %147 : vector<2x8xf32>
    %149 = vector.shape_cast %148 : vector<2x8xf32> to vector<2x8x1xf32>
    %150 = vector.broadcast %149 : vector<2x8x1xf32> to vector<2x8x32xf32>
    %151 = arith.mulf %1, %150 : vector<2x8x32xf32>
    %cst_74 = arith.constant dense<0.000000e+00> : vector<2x32xf32>
    %152 = vector.multi_reduction <add>, %151, %cst_74 [1] : vector<2x8x32xf32> to vector<2x32xf32>
    %cst_75 = arith.constant dense<0.000000e+00> : vector<2xf32>
    %153 = vector.multi_reduction <add>, %148, %cst_75 [1] : vector<2x8xf32> to vector<2xf32>
    %154 = vector.shape_cast %153 : vector<2xf32> to vector<2x1xf32>
    %155 = tpu.reciprocal %154 {approx = true} : vector<2x1xf32> -> vector<2x1xf32>
    %156 = vector.broadcast %155 : vector<2x1xf32> to vector<2x32xf32>
    %157 = arith.mulf %152, %156 : vector<2x32xf32>
    %158 = arith.truncf %157 : vector<2x32xf32> to vector<2x32xbf16>
    %c0_76 = arith.constant 0 : index
    %c512 = arith.constant 512 : index
    %159 = vector.load %arg17[%c0_76, %c512] : memref<2x768xbf16, #tpu.memory_space<vmem>>, vector<2x32xbf16>
    tpu.vector_store %arg17[%c0_76, %c512], %158 {strides = array<i32>} : memref<2x768xbf16, #tpu.memory_space<vmem>>, vector<2x32xbf16>,
    %160 = arith.truncf %122 : vector<2x32xf32> to vector<2x32xbf16>
    %c0_77 = arith.constant 0 : index
    %c640 = arith.constant 640 : index
    %161 = vector.load %arg17[%c0_77, %c640] : memref<2x768xbf16, #tpu.memory_space<vmem>>, vector<2x32xbf16>
    tpu.vector_store %arg17[%c0_77, %c640], %160 {strides = array<i32>} : memref<2x768xbf16, #tpu.memory_space<vmem>>, vector<2x32xbf16>,
    %c0_78 = arith.constant 0 : index
    %c0_79 = arith.constant 0 : index
    %162 = vector.load %arg17[%c0_78, %c0_79] : memref<2x768xbf16, #tpu.memory_space<vmem>>, vector<2x768xbf16>
    %c0_80 = arith.constant 0 : index
    %c0_81 = arith.constant 0 : index
    %163 = vector.load %arg12[%c0_80, %c0_81] : memref<768x512xbf16, #tpu.memory_space<vmem>>, vector<768x512xbf16>
    %cst_82 = arith.constant dense<0.000000e+00> : vector<2x512xf32>
    %164 = tpu.matmul %162, %163, %cst_82 {dimension_numbers = #tpu.dot_dimension_numbers<[1], [0], [0], [1], [0, 0, 1, 1], [], []>} : vector<2x768xbf16>, vector<768x512xbf16>, vector<2x512xf32> -> vector<2x512xf32>
    %c0_83 = arith.constant 0 : index
    %c0_84 = arith.constant 0 : index
    %165 = vector.load %arg13[%c0_83, %c0_84] : memref<1x512xf32, #tpu.memory_space<vmem>>, vector<1x512xf32>
    %166 = vector.broadcast %165 : vector<1x512xf32> to vector<2x512xf32>
    %167 = arith.addf %164, %166 : vector<2x512xf32>
    %cst_85 = arith.constant 0.000000e+00 : f32
    %168 = vector.broadcast %cst_85 : f32 to vector<2x512xf32>
    %169 = arith.maximumf %167, %168 : vector<2x512xf32>
    %c0_86 = arith.constant 0 : index
    %c0_87 = arith.constant 0 : index
    %170 = vector.load %arg14[%c0_86, %c0_87] : memref<1x512xbf16, #tpu.memory_space<vmem>>, vector<1x512xbf16>
    %171 = arith.truncf %169 : vector<2x512xf32> to vector<2x512xbf16>
    "tpu.trace_start"() <{level = 10 : i32, message = "oh,bh->ob"}> : () -> ()
    %cst_88 = arith.constant dense<0.000000e+00> : vector<1x2xf32>
    %172 = tpu.matmul %170, %171, %cst_88 {dimension_numbers = #tpu.dot_dimension_numbers<[1], [1], [0], [0], [0, 0, 1, 0], [], []>} : vector<1x512xbf16>, vector<2x512xbf16>, vector<1x2xf32> -> vector<1x2xf32>
    "tpu.trace_stop"() : () -> ()
    %c0_89 = arith.constant 0 : index
    %c0_90 = arith.constant 0 : index
    %173 = vector.load %arg15[%c0_89, %c0_90] : memref<1x1xf32, #tpu.memory_space<vmem>>, vector<1x1xf32>
    %174 = vector.broadcast %173 : vector<1x1xf32> to vector<1x2xf32>
    %175 = arith.addf %172, %174 : vector<1x2xf32>
    %c0_91 = arith.constant 0 : index
    %c0_92 = arith.constant 0 : index
    %176 = vector.load %arg16[%c0_91, %c0_92] : memref<1x2xf32, #tpu.memory_space<vmem>>, vector<1x2xf32>
    tpu.vector_store %arg16[%c0_91, %c0_92], %175 {strides = array<i32>} : memref<1x2xf32, #tpu.memory_space<vmem>>, vector<1x2xf32>,
    return
  }
  func.func @transform_0(%arg0: i32) -> (i32, i32, i32) {
    %c0_i32 = arith.constant 0 : i32
    %c0_i32_0 = arith.constant 0 : i32
    %c0_i32_1 = arith.constant 0 : i32
    return %arg0, %c0_i32, %c0_i32_0 : i32, i32, i32
  }
  func.func @transform_1(%arg0: i32) -> (i32, i32) {
    %c0_i32 = arith.constant 0 : i32
    %c0_i32_0 = arith.constant 0 : i32
    return %arg0, %c0_i32 : i32, i32
  }
  func.func @transform_2(%arg0: i32) -> (i32, i32) {
    %c0_i32 = arith.constant 0 : i32
    %c0_i32_0 = arith.constant 0 : i32
    return %arg0, %c0_i32 : i32, i32
  }
  func.func @transform_3(%arg0: i32) -> (i32, i32) {
    %c0_i32 = arith.constant 0 : i32
    %c0_i32_0 = arith.constant 0 : i32
    return %arg0, %c0_i32 : i32, i32
  }
  func.func @transform_4(%arg0: i32) -> (i32, i32) {
    %c0_i32 = arith.constant 0 : i32
    %c0_i32_0 = arith.constant 0 : i32
    %c0_i32_1 = arith.constant 0 : i32
    return %c0_i32, %c0_i32_0 : i32, i32
  }
  func.func @transform_5(%arg0: i32) -> (i32, i32) {
    %c0_i32 = arith.constant 0 : i32
    %c0_i32_0 = arith.constant 0 : i32
    %c0_i32_1 = arith.constant 0 : i32
    return %c0_i32, %c0_i32_0 : i32, i32
  }
  func.func @transform_6(%arg0: i32) -> (i32, i32, i32) {
    %c0_i32 = arith.constant 0 : i32
    %c0_i32_0 = arith.constant 0 : i32
    %c0_i32_1 = arith.constant 0 : i32
    %c0_i32_2 = arith.constant 0 : i32
    return %c0_i32, %c0_i32_0, %c0_i32_1 : i32, i32, i32
  }
  func.func @transform_7(%arg0: i32) -> (i32, i32, i32) {
    %c0_i32 = arith.constant 0 : i32
    %c0_i32_0 = arith.constant 0 : i32
    %c0_i32_1 = arith.constant 0 : i32
    %c0_i32_2 = arith.constant 0 : i32
    return %c0_i32, %c0_i32_0, %c0_i32_1 : i32, i32, i32
  }
  func.func @transform_8(%arg0: i32) -> (i32, i32, i32) {
    %c0_i32 = arith.constant 0 : i32
    %c0_i32_0 = arith.constant 0 : i32
    %c0_i32_1 = arith.constant 0 : i32
    %c0_i32_2 = arith.constant 0 : i32
    return %c0_i32, %c0_i32_0, %c0_i32_1 : i32, i32, i32
  }
  func.func @transform_9(%arg0: i32) -> (i32, i32, i32) {
    %c0_i32 = arith.constant 0 : i32
    %c0_i32_0 = arith.constant 0 : i32
    %c0_i32_1 = arith.constant 0 : i32
    %c0_i32_2 = arith.constant 0 : i32
    return %c0_i32, %c0_i32_0, %c0_i32_1 : i32, i32, i32
  }
  func.func @transform_10(%arg0: i32) -> (i32, i32) {
    %c0_i32 = arith.constant 0 : i32
    %c0_i32_0 = arith.constant 0 : i32
    %c0_i32_1 = arith.constant 0 : i32
    return %c0_i32, %c0_i32_0 : i32, i32
  }
  func.func @transform_11(%arg0: i32) -> (i32, i32) {
    %c0_i32 = arith.constant 0 : i32
    %c0_i32_0 = arith.constant 0 : i32
    %c0_i32_1 = arith.constant 0 : i32
    return %c0_i32, %c0_i32_0 : i32, i32
  }
  func.func @transform_12(%arg0: i32) -> (i32, i32) {
    %c0_i32 = arith.constant 0 : i32
    %c0_i32_0 = arith.constant 0 : i32
    %c0_i32_1 = arith.constant 0 : i32
    return %c0_i32, %c0_i32_0 : i32, i32
  }
  func.func @transform_13(%arg0: i32) -> (i32, i32) {
    %c0_i32 = arith.constant 0 : i32
    %c0_i32_0 = arith.constant 0 : i32
    %c0_i32_1 = arith.constant 0 : i32
    return %c0_i32, %c0_i32_0 : i32, i32
  }
  func.func @transform_14(%arg0: i32) -> (i32, i32) {
    %c0_i32 = arith.constant 0 : i32
    %c0_i32_0 = arith.constant 0 : i32
    %c0_i32_1 = arith.constant 0 : i32
    return %c0_i32, %c0_i32_0 : i32, i32
  }
  func.func @transform_15(%arg0: i32) -> (i32, i32) {
    %c0_i32 = arith.constant 0 : i32
    %c0_i32_0 = arith.constant 0 : i32
    return %c0_i32, %arg0 : i32, i32
  }
}

module attributes {stable_mosaic.version = 11 : i64} {
  func.func @_paso_kernel(%arg0: i32, %arg1: memref<2x8x32xbf16, #tpu.memory_space<vmem>>, %arg2: memref<2x16xbf16, #tpu.memory_space<vmem>>, %arg3: memref<2x16xbf16, #tpu.memory_space<vmem>>, %arg4: memref<2x16xbf16, #tpu.memory_space<vmem>>, %arg5: memref<32x48xbf16, #tpu.memory_space<vmem>>, %arg6: memref<1x48xf32, #tpu.memory_space<vmem>>, %arg7: memref<3x1x16xf32, #tpu.memory_space<vmem>>, %arg8: memref<3x8x16xf32, #tpu.memory_space<vmem>>, %arg9: memref<3x1x16xf32, #tpu.memory_space<vmem>>, %arg10: memref<3x16x40xbf16, #tpu.memory_space<vmem>>, %arg11: memref<1x96xf32, #tpu.memory_space<vmem>>, %arg12: memref<768x512xbf16, #tpu.memory_space<vmem>>, %arg13: memref<1x512xf32, #tpu.memory_space<vmem>>, %arg14: memref<1x512xbf16, #tpu.memory_space<vmem>>, %arg15: memref<1x1xf32, #tpu.memory_space<vmem>>, %arg16: memref<1x2xf32, #tpu.memory_space<vmem>>, %arg17: memref<2x768xbf16, #tpu.memory_space<vmem>>) attributes {dimension_semantics = [#tpu.dimension_semantics<parallel>], iteration_bounds = array<i64: 1>, scalar_prefetch = 0 : i64, scratch_operands = 1 : i64, tpu.core_type = #tpu.core_type<tc>, window_params = [{transform_indices = @transform_0, window_bounds = array<i64: 2, 8, 32>}, {transform_indices = @transform_1, window_bounds = array<i64: 2, 16>}, {transform_indices = @transform_2, window_bounds = array<i64: 2, 16>}, {transform_indices = @transform_3, window_bounds = array<i64: 2, 16>}, {pipeline_mode = #tpu.pipeline_mode<synchronous>, transform_indices = @transform_4, window_bounds = array<i64: 32, 48>}, {pipeline_mode = #tpu.pipeline_mode<synchronous>, transform_indices = @transform_5, window_bounds = array<i64: 1, 48>}, {pipeline_mode = #tpu.pipeline_mode<synchronous>, transform_indices = @transform_6, window_bounds = array<i64: 3, 1, 16>}, {pipeline_mode = #tpu.pipeline_mode<synchronous>, transform_indices = @transform_7, window_bounds = array<i64: 3, 8, 16>}, {pipeline_mode = #tpu.pipeline_mode<synchronous>, transform_indices = @transform_8, window_bounds = array<i64: 3, 1, 16>}, {pipeline_mode = #tpu.pipeline_mode<synchronous>, transform_indices = @transform_9, window_bounds = array<i64: 3, 16, 40>}, {pipeline_mode = #tpu.pipeline_mode<synchronous>, transform_indices = @transform_10, window_bounds = array<i64: 1, 96>}, {pipeline_mode = #tpu.pipeline_mode<synchronous>, transform_indices = @transform_11, window_bounds = array<i64: 768, 512>}, {pipeline_mode = #tpu.pipeline_mode<synchronous>, transform_indices = @transform_12, window_bounds = array<i64: 1, 512>}, {pipeline_mode = #tpu.pipeline_mode<synchronous>, transform_indices = @transform_13, window_bounds = array<i64: 1, 512>}, {pipeline_mode = #tpu.pipeline_mode<synchronous>, transform_indices = @transform_14, window_bounds = array<i64: 1, 1>}, {transform_indices = @transform_15, window_bounds = array<i64: 1, 2>}]} {
    %c0 = arith.constant 0 : index
    %c0_0 = arith.constant 0 : index
    %c0_1 = arith.constant 0 : index
    %0 = vector.load %arg1[%c0, %c0_0, %c0_1] : memref<2x8x32xbf16, #tpu.memory_space<vmem>>, vector<2x8x32xbf16>
    %1 = arith.extf %0 : vector<2x8x32xbf16> to vector<2x8x32xf32>
    %2 = vector.shape_cast %0 : vector<2x8x32xbf16> to vector<16x32xbf16>
    %c0_2 = arith.constant 0 : index
    %c0_3 = arith.constant 0 : index
    %3 = vector.load %arg5[%c0_2, %c0_3] : memref<32x48xbf16, #tpu.memory_space<vmem>>, vector<32x48xbf16>
    %cst = arith.constant dense<0.000000e+00> : vector<16x48xf32>
    %4 = tpu.matmul %2, %3, %cst {dimension_numbers = #tpu.dot_dimension_numbers<[1], [0], [0], [1], [0, 0, 1, 1], [], []>} : vector<16x32xbf16>, vector<32x48xbf16>, vector<16x48xf32> -> vector<16x48xf32>
    %5 = vector.shape_cast %4 : vector<16x48xf32> to vector<2x8x48xf32>
    %c0_4 = arith.constant 0 : index
    %c0_5 = arith.constant 0 : index
    %6 = vector.load %arg6[%c0_4, %c0_5] : memref<1x48xf32, #tpu.memory_space<vmem>>, vector<1x48xf32>
    %7 = vector.shape_cast %6 : vector<1x48xf32> to vector<1x1x48xf32>
    %8 = vector.broadcast %7 : vector<1x1x48xf32> to vector<2x8x48xf32>
    %9 = arith.addf %5, %8 : vector<2x8x48xf32>
    %cst_6 = arith.constant 0.000000e+00 : bf16
    %10 = vector.broadcast %cst_6 : bf16 to vector<2x768xbf16>
    %c0_7 = arith.constant 0 : index
    %c0_8 = arith.constant 0 : index
    %11 = vector.load %arg17[%c0_7, %c0_8] : memref<2x768xbf16, #tpu.memory_space<vmem>>, vector<2x768xbf16>
    tpu.vector_store %arg17[%c0_7, %c0_8], %10 {strides = array<i32>} : memref<2x768xbf16, #tpu.memory_space<vmem>>, vector<2x768xbf16>,
    %c0_9 = arith.constant 0 : index
    %c0_10 = arith.constant 0 : index
    %12 = vector.load %arg2[%c0_9, %c0_10] : memref<2x16xbf16, #tpu.memory_space<vmem>>, vector<2x16xbf16>
    %c0_11 = arith.constant 0 : index
    %c0_12 = arith.constant 0 : index
    %c0_13 = arith.constant 0 : index
    %13 = vector.load %arg10[%c0_11, %c0_12, %c0_13] : memref<3x16x40xbf16, #tpu.memory_space<vmem>>, vector<1x16x40xbf16>
    %14 = vector.shape_cast %13 : vector<1x16x40xbf16> to vector<16x40xbf16>
    %cst_14 = arith.constant dense<0.000000e+00> : vector<2x40xf32>
    %15 = tpu.matmul %12, %14, %cst_14 {dimension_numbers = #tpu.dot_dimension_numbers<[1], [0], [0], [1], [0, 0, 1, 1], [], []>} : vector<2x16xbf16>, vector<16x40xbf16>, vector<2x40xf32> -> vector<2x40xf32>
    %16 = vector.extract_strided_slice %15 {offsets = [0, 0], sizes = [2, 8], strides = [1, 1]} : vector<2x40xf32> to vector<2x8xf32>
    %17 = vector.extract_strided_slice %15 {offsets = [0, 8], sizes = [2, 32], strides = [1, 1]} : vector<2x40xf32> to vector<2x32xf32>
    %c0_15 = arith.constant 0 : index
    %c0_16 = arith.constant 0 : index
    %18 = vector.load %arg11[%c0_15, %c0_16] : memref<1x96xf32, #tpu.memory_space<vmem>>, vector<1x32xf32>
    %19 = vector.broadcast %18 : vector<1x32xf32> to vector<2x32xf32>
    %20 = arith.addf %17, %19 : vector<2x32xf32>
    %cst_17 = arith.constant 0.000000e+00 : f32
    %21 = vector.broadcast %cst_17 : f32 to vector<2x32xf32>
    %22 = arith.maximumf %20, %21 : vector<2x32xf32>
    %23 = vector.shape_cast %16 : vector<2x8xf32> to vector<2x8x1xf32>
    %c0_18 = arith.constant 0 : index
    %c0_19 = arith.constant 0 : index
    %c0_20 = arith.constant 0 : index
    %24 = vector.load %arg7[%c0_18, %c0_19, %c0_20] : memref<3x1x16xf32, #tpu.memory_space<vmem>>, vector<1x1x16xf32>
    %25 = vector.shape_cast %24 : vector<1x1x16xf32> to vector<1x16xf32>
    %26 = vector.shape_cast %25 : vector<1x16xf32> to vector<1x1x16xf32>
    %27 = vector.broadcast %23 : vector<2x8x1xf32> to vector<2x8x16xf32>
    %28 = vector.broadcast %26 : vector<1x1x16xf32> to vector<2x8x16xf32>
    %29 = arith.mulf %27, %28 : vector<2x8x16xf32>
    %c0_21 = arith.constant 0 : index
    %c0_22 = arith.constant 0 : index
    %c0_23 = arith.constant 0 : index
    %30 = vector.load %arg8[%c0_21, %c0_22, %c0_23] : memref<3x8x16xf32, #tpu.memory_space<vmem>>, vector<1x8x16xf32>
    %31 = vector.shape_cast %30 : vector<1x8x16xf32> to vector<8x16xf32>
    %32 = vector.shape_cast %31 : vector<8x16xf32> to vector<1x8x16xf32>
    %33 = vector.broadcast %32 : vector<1x8x16xf32> to vector<2x8x16xf32>
    %34 = arith.addf %29, %33 : vector<2x8x16xf32>
    %35 = vector.extract_strided_slice %9 {offsets = [0, 0, 0], sizes = [2, 8, 16], strides = [1, 1, 1]} : vector<2x8x48xf32> to vector<2x8x16xf32>
    %36 = arith.addf %35, %34 : vector<2x8x16xf32>
    %37 = math.tanh %36 : vector<2x8x16xf32>
    %c0_24 = arith.constant 0 : index
    %c0_25 = arith.constant 0 : index
    %c0_26 = arith.constant 0 : index
    %38 = vector.load %arg9[%c0_24, %c0_25, %c0_26] : memref<3x1x16xf32, #tpu.memory_space<vmem>>, vector<1x1x16xf32>
    %39 = vector.shape_cast %38 : vector<1x1x16xf32> to vector<1x16xf32>
    %40 = vector.shape_cast %39 : vector<1x16xf32> to vector<1x1x16xf32>
    %41 = vector.broadcast %40 : vector<1x1x16xf32> to vector<2x8x16xf32>
    %42 = arith.mulf %37, %41 : vector<2x8x16xf32>
    %cst_27 = arith.constant dense<0.000000e+00> : vector<2x8xf32>
    %43 = vector.multi_reduction <add>, %42, %cst_27 [2] : vector<2x8x16xf32> to vector<2x8xf32>
    %cst_28 = arith.constant dense<0xFF800000> : vector<2xf32>
    %44 = vector.multi_reduction <maximumf>, %43, %cst_28 [1] : vector<2x8xf32> to vector<2xf32>
    %45 = vector.shape_cast %44 : vector<2xf32> to vector<2x1xf32>
    %46 = vector.broadcast %45 : vector<2x1xf32> to vector<2x8xf32>
    %47 = arith.subf %43, %46 : vector<2x8xf32>
    %48 = math.exp %47 : vector<2x8xf32>
    %49 = vector.shape_cast %48 : vector<2x8xf32> to vector<2x8x1xf32>
    %50 = vector.broadcast %49 : vector<2x8x1xf32> to vector<2x8x32xf32>
    %51 = arith.mulf %1, %50 : vector<2x8x32xf32>
    %cst_29 = arith.constant dense<0.000000e+00> : vector<2x32xf32>
    %52 = vector.multi_reduction <add>, %51, %cst_29 [1] : vector<2x8x32xf32> to vector<2x32xf32>
    %cst_30 = arith.constant dense<0.000000e+00> : vector<2xf32>
    %53 = vector.multi_reduction <add>, %48, %cst_30 [1] : vector<2x8xf32> to vector<2xf32>
    %54 = vector.shape_cast %53 : vector<2xf32> to vector<2x1xf32>
    %55 = tpu.reciprocal %54 {approx = true} : vector<2x1xf32> -> vector<2x1xf32>
    %56 = vector.broadcast %55 : vector<2x1xf32> to vector<2x32xf32>
    %57 = arith.mulf %52, %56 : vector<2x32xf32>
    %58 = arith.truncf %57 : vector<2x32xf32> to vector<2x32xbf16>
    %c0_31 = arith.constant 0 : index
    %c0_32 = arith.constant 0 : index
    %59 = vector.load %arg17[%c0_31, %c0_32] : memref<2x768xbf16, #tpu.memory_space<vmem>>, vector<2x32xbf16>
    tpu.vector_store %arg17[%c0_31, %c0_32], %58 {strides = array<i32>} : memref<2x768xbf16, #tpu.memory_space<vmem>>, vector<2x32xbf16>,
    %60 = arith.truncf %22 : vector<2x32xf32> to vector<2x32xbf16>
    %c0_33 = arith.constant 0 : index
    %c128 = arith.constant 128 : index
    %61 = vector.load %arg17[%c0_33, %c128] : memref<2x768xbf16, #tpu.memory_space<vmem>>, vector<2x32xbf16>
    tpu.vector_store %arg17[%c0_33, %c128], %60 {strides = array<i32>} : memref<2x768xbf16, #tpu.memory_space<vmem>>, vector<2x32xbf16>,
    %c0_34 = arith.constant 0 : index
    %c0_35 = arith.constant 0 : index
    %62 = vector.load %arg3[%c0_34, %c0_35] : memref<2x16xbf16, #tpu.memory_space<vmem>>, vector<2x16xbf16>
    %c1 = arith.constant 1 : index
    %c0_36 = arith.constant 0 : index
    %c0_37 = arith.constant 0 : index
    %63 = vector.load %arg10[%c1, %c0_36, %c0_37] : memref<3x16x40xbf16, #tpu.memory_space<vmem>>, vector<1x16x40xbf16>
    %64 = vector.shape_cast %63 : vector<1x16x40xbf16> to vector<16x40xbf16>
    %cst_38 = arith.constant dense<0.000000e+00> : vector<2x40xf32>
    %65 = tpu.matmul %62, %64, %cst_38 {dimension_numbers = #tpu.dot_dimension_numbers<[1], [0], [0], [1], [0, 0, 1, 1], [], []>} : vector<2x16xbf16>, vector<16x40xbf16>, vector<2x40xf32> -> vector<2x40xf32>
    %66 = vector.extract_strided_slice %65 {offsets = [0, 0], sizes = [2, 8], strides = [1, 1]} : vector<2x40xf32> to vector<2x8xf32>
    %67 = vector.extract_strided_slice %65 {offsets = [0, 8], sizes = [2, 32], strides = [1, 1]} : vector<2x40xf32> to vector<2x32xf32>
    %c0_39 = arith.constant 0 : index
    %c32 = arith.constant 32 : index
    %68 = vector.load %arg11[%c0_39, %c32] : memref<1x96xf32, #tpu.memory_space<vmem>>, vector<1x32xf32>
    %69 = vector.broadcast %68 : vector<1x32xf32> to vector<2x32xf32>
    %70 = arith.addf %67, %69 : vector<2x32xf32>
    %cst_40 = arith.constant 0.000000e+00 : f32
    %71 = vector.broadcast %cst_40 : f32 to vector<2x32xf32>
    %72 = arith.maximumf %70, %71 : vector<2x32xf32>
    %73 = vector.shape_cast %66 : vector<2x8xf32> to vector<2x8x1xf32>
    %c1_41 = arith.constant 1 : index
    %c0_42 = arith.constant 0 : index
    %c0_43 = arith.constant 0 : index
    %74 = vector.load %arg7[%c1_41, %c0_42, %c0_43] : memref<3x1x16xf32, #tpu.memory_space<vmem>>, vector<1x1x16xf32>
    %75 = vector.shape_cast %74 : vector<1x1x16xf32> to vector<1x16xf32>
    %76 = vector.shape_cast %75 : vector<1x16xf32> to vector<1x1x16xf32>
    %77 = vector.broadcast %73 : vector<2x8x1xf32> to vector<2x8x16xf32>
    %78 = vector.broadcast %76 : vector<1x1x16xf32> to vector<2x8x16xf32>
    %79 = arith.mulf %77, %78 : vector<2x8x16xf32>
    %c1_44 = arith.constant 1 : index
    %c0_45 = arith.constant 0 : index
    %c0_46 = arith.constant 0 : index
    %80 = vector.load %arg8[%c1_44, %c0_45, %c0_46] : memref<3x8x16xf32, #tpu.memory_space<vmem>>, vector<1x8x16xf32>
    %81 = vector.shape_cast %80 : vector<1x8x16xf32> to vector<8x16xf32>
    %82 = vector.shape_cast %81 : vector<8x16xf32> to vector<1x8x16xf32>
    %83 = vector.broadcast %82 : vector<1x8x16xf32> to vector<2x8x16xf32>
    %84 = arith.addf %79, %83 : vector<2x8x16xf32>
    %85 = vector.extract_strided_slice %9 {offsets = [0, 0, 16], sizes = [2, 8, 16], strides = [1, 1, 1]} : vector<2x8x48xf32> to vector<2x8x16xf32>
    %86 = arith.addf %85, %84 : vector<2x8x16xf32>
    %87 = math.tanh %86 : vector<2x8x16xf32>
    %c1_47 = arith.constant 1 : index
    %c0_48 = arith.constant 0 : index
    %c0_49 = arith.constant 0 : index
    %88 = vector.load %arg9[%c1_47, %c0_48, %c0_49] : memref<3x1x16xf32, #tpu.memory_space<vmem>>, vector<1x1x16xf32>
    %89 = vector.shape_cast %88 : vector<1x1x16xf32> to vector<1x16xf32>
    %90 = vector.shape_cast %89 : vector<1x16xf32> to vector<1x1x16xf32>
    %91 = vector.broadcast %90 : vector<1x1x16xf32> to vector<2x8x16xf32>
    %92 = arith.mulf %87, %91 : vector<2x8x16xf32>
    %cst_50 = arith.constant dense<0.000000e+00> : vector<2x8xf32>
    %93 = vector.multi_reduction <add>, %92, %cst_50 [2] : vector<2x8x16xf32> to vector<2x8xf32>
    %cst_51 = arith.constant dense<0xFF800000> : vector<2xf32>
    %94 = vector.multi_reduction <maximumf>, %93, %cst_51 [1] : vector<2x8xf32> to vector<2xf32>
    %95 = vector.shape_cast %94 : vector<2xf32> to vector<2x1xf32>
    %96 = vector.broadcast %95 : vector<2x1xf32> to vector<2x8xf32>
    %97 = arith.subf %93, %96 : vector<2x8xf32>
    %98 = math.exp %97 : vector<2x8xf32>
    %99 = vector.shape_cast %98 : vector<2x8xf32> to vector<2x8x1xf32>
    %100 = vector.broadcast %99 : vector<2x8x1xf32> to vector<2x8x32xf32>
    %101 = arith.mulf %1, %100 : vector<2x8x32xf32>
    %cst_52 = arith.constant dense<0.000000e+00> : vector<2x32xf32>
    %102 = vector.multi_reduction <add>, %101, %cst_52 [1] : vector<2x8x32xf32> to vector<2x32xf32>
    %cst_53 = arith.constant dense<0.000000e+00> : vector<2xf32>
    %103 = vector.multi_reduction <add>, %98, %cst_53 [1] : vector<2x8xf32> to vector<2xf32>
    %104 = vector.shape_cast %103 : vector<2xf32> to vector<2x1xf32>
    %105 = tpu.reciprocal %104 {approx = true} : vector<2x1xf32> -> vector<2x1xf32>
    %106 = vector.broadcast %105 : vector<2x1xf32> to vector<2x32xf32>
    %107 = arith.mulf %102, %106 : vector<2x32xf32>
    %108 = arith.truncf %107 : vector<2x32xf32> to vector<2x32xbf16>
    %c0_54 = arith.constant 0 : index
    %c256 = arith.constant 256 : index
    %109 = vector.load %arg17[%c0_54, %c256] : memref<2x768xbf16, #tpu.memory_space<vmem>>, vector<2x32xbf16>
    tpu.vector_store %arg17[%c0_54, %c256], %108 {strides = array<i32>} : memref<2x768xbf16, #tpu.memory_space<vmem>>, vector<2x32xbf16>,
    %110 = arith.truncf %72 : vector<2x32xf32> to vector<2x32xbf16>
    %c0_55 = arith.constant 0 : index
    %c384 = arith.constant 384 : index
    %111 = vector.load %arg17[%c0_55, %c384] : memref<2x768xbf16, #tpu.memory_space<vmem>>, vector<2x32xbf16>
    tpu.vector_store %arg17[%c0_55, %c384], %110 {strides = array<i32>} : memref<2x768xbf16, #tpu.memory_space<vmem>>, vector<2x32xbf16>,
    %c0_56 = arith.constant 0 : index
    %c0_57 = arith.constant 0 : index
    %112 = vector.load %arg4[%c0_56, %c0_57] : memref<2x16xbf16, #tpu.memory_space<vmem>>, vector<2x16xbf16>
    %c2 = arith.constant 2 : index
    %c0_58 = arith.constant 0 : index
    %c0_59 = arith.constant 0 : index
    %113 = vector.load %arg10[%c2, %c0_58, %c0_59] : memref<3x16x40xbf16, #tpu.memory_space<vmem>>, vector<1x16x40xbf16>
    %114 = vector.shape_cast %113 : vector<1x16x40xbf16> to vector<16x40xbf16>
    %cst_60 = arith.constant dense<0.000000e+00> : vector<2x40xf32>
    %115 = tpu.matmul %112, %114, %cst_60 {dimension_numbers = #tpu.dot_dimension_numbers<[1], [0], [0], [1], [0, 0, 1, 1], [], []>} : vector<2x16xbf16>, vector<16x40xbf16>, vector<2x40xf32> -> vector<2x40xf32>
    %116 = vector.extract_strided_slice %115 {offsets = [0, 0], sizes = [2, 8], strides = [1, 1]} : vector<2x40xf32> to vector<2x8xf32>
    %117 = vector.extract_strided_slice %115 {offsets = [0, 8], sizes = [2, 32], strides = [1, 1]} : vector<2x40xf32> to vector<2x32xf32>
    %c0_61 = arith.constant 0 : index
    %c64 = arith.constant 64 : index
    %118 = vector.load %arg11[%c0_61, %c64] : memref<1x96xf32, #tpu.memory_space<vmem>>, vector<1x32xf32>
    %119 = vector.broadcast %118 : vector<1x32xf32> to vector<2x32xf32>
    %120 = arith.addf %117, %119 : vector<2x32xf32>
    %cst_62 = arith.constant 0.000000e+00 : f32
    %121 = vector.broadcast %cst_62 : f32 to vector<2x32xf32>
    %122 = arith.maximumf %120, %121 : vector<2x32xf32>
    %123 = vector.shape_cast %116 : vector<2x8xf32> to vector<2x8x1xf32>
    %c2_63 = arith.constant 2 : index
    %c0_64 = arith.constant 0 : index
    %c0_65 = arith.constant 0 : index
    %124 = vector.load %arg7[%c2_63, %c0_64, %c0_65] : memref<3x1x16xf32, #tpu.memory_space<vmem>>, vector<1x1x16xf32>
    %125 = vector.shape_cast %124 : vector<1x1x16xf32> to vector<1x16xf32>
    %126 = vector.shape_cast %125 : vector<1x16xf32> to vector<1x1x16xf32>
    %127 = vector.broadcast %123 : vector<2x8x1xf32> to vector<2x8x16xf32>
    %128 = vector.broadcast %126 : vector<1x1x16xf32> to vector<2x8x16xf32>
    %129 = arith.mulf %127, %128 : vector<2x8x16xf32>
    %c2_66 = arith.constant 2 : index
    %c0_67 = arith.constant 0 : index
    %c0_68 = arith.constant 0 : index
    %130 = vector.load %arg8[%c2_66, %c0_67, %c0_68] : memref<3x8x16xf32, #tpu.memory_space<vmem>>, vector<1x8x16xf32>
    %131 = vector.shape_cast %130 : vector<1x8x16xf32> to vector<8x16xf32>
    %132 = vector.shape_cast %131 : vector<8x16xf32> to vector<1x8x16xf32>
    %133 = vector.broadcast %132 : vector<1x8x16xf32> to vector<2x8x16xf32>
    %134 = arith.addf %129, %133 : vector<2x8x16xf32>
    %135 = vector.extract_strided_slice %9 {offsets = [0, 0, 32], sizes = [2, 8, 16], strides = [1, 1, 1]} : vector<2x8x48xf32> to vector<2x8x16xf32>
    %136 = arith.addf %135, %134 : vector<2x8x16xf32>
    %137 = math.tanh %136 : vector<2x8x16xf32>
    %c2_69 = arith.constant 2 : index
    %c0_70 = arith.constant 0 : index
    %c0_71 = arith.constant 0 : index
    %138 = vector.load %arg9[%c2_69, %c0_70, %c0_71] : memref<3x1x16xf32, #tpu.memory_space<vmem>>, vector<1x1x16xf32>
    %139 = vector.shape_cast %138 : vector<1x1x16xf32> to vector<1x16xf32>
    %140 = vector.shape_cast %139 : vector<1x16xf32> to vector<1x1x16xf32>
    %141 = vector.broadcast %140 : vector<1x1x16xf32> to vector<2x8x16xf32>
    %142 = arith.mulf %137, %141 : vector<2x8x16xf32>
    %cst_72 = arith.constant dense<0.000000e+00> : vector<2x8xf32>
    %143 = vector.multi_reduction <add>, %142, %cst_72 [2] : vector<2x8x16xf32> to vector<2x8xf32>
    %cst_73 = arith.constant dense<0xFF800000> : vector<2xf32>
    %144 = vector.multi_reduction <maximumf>, %143, %cst_73 [1] : vector<2x8xf32> to vector<2xf32>
    %145 = vector.shape_cast %144 : vector<2xf32> to vector<2x1xf32>
    %146 = vector.broadcast %145 : vector<2x1xf32> to vector<2x8xf32>
    %147 = arith.subf %143, %146 : vector<2x8xf32>
    %148 = math.exp %147 : vector<2x8xf32>
    %149 = vector.shape_cast %148 : vector<2x8xf32> to vector<2x8x1xf32>
    %150 = vector.broadcast %149 : vector<2x8x1xf32> to vector<2x8x32xf32>
    %151 = arith.mulf %1, %150 : vector<2x8x32xf32>
    %cst_74 = arith.constant dense<0.000000e+00> : vector<2x32xf32>
    %152 = vector.multi_reduction <add>, %151, %cst_74 [1] : vector<2x8x32xf32> to vector<2x32xf32>
    %cst_75 = arith.constant dense<0.000000e+00> : vector<2xf32>
    %153 = vector.multi_reduction <add>, %148, %cst_75 [1] : vector<2x8xf32> to vector<2xf32>
    %154 = vector.shape_cast %153 : vector<2xf32> to vector<2x1xf32>
    %155 = tpu.reciprocal %154 {approx = true} : vector<2x1xf32> -> vector<2x1xf32>
    %156 = vector.broadcast %155 : vector<2x1xf32> to vector<2x32xf32>
    %157 = arith.mulf %152, %156 : vector<2x32xf32>
    %158 = arith.truncf %157 : vector<2x32xf32> to vector<2x32xbf16>
    %c0_76 = arith.constant 0 : index
    %c512 = arith.constant 512 : index
    %159 = vector.load %arg17[%c0_76, %c512] : memref<2x768xbf16, #tpu.memory_space<vmem>>, vector<2x32xbf16>
    tpu.vector_store %arg17[%c0_76, %c512], %158 {strides = array<i32>} : memref<2x768xbf16, #tpu.memory_space<vmem>>, vector<2x32xbf16>,
    %160 = arith.truncf %122 : vector<2x32xf32> to vector<2x32xbf16>
    %c0_77 = arith.constant 0 : index
    %c640 = arith.constant 640 : index
    %161 = vector.load %arg17[%c0_77, %c640] : memref<2x768xbf16, #tpu.memory_space<vmem>>, vector<2x32xbf16>
    tpu.vector_store %arg17[%c0_77, %c640], %160 {strides = array<i32>} : memref<2x768xbf16, #tpu.memory_space<vmem>>, vector<2x32xbf16>,
    %c0_78 = arith.constant 0 : index
    %c0_79 = arith.constant 0 : index
    %162 = vector.load %arg17[%c0_78, %c0_79] : memref<2x768xbf16, #tpu.memory_space<vmem>>, vector<2x768xbf16>
    %c0_80 = arith.constant 0 : index
    %c0_81 = arith.constant 0 : index
    %163 = vector.load %arg12[%c0_80, %c0_81] : memref<768x512xbf16, #tpu.memory_space<vmem>>, vector<768x512xbf16>
    %cst_82 = arith.constant dense<0.000000e+00> : vector<2x512xf32>
    %164 = tpu.matmul %162, %163, %cst_82 {dimension_numbers = #tpu.dot_dimension_numbers<[1], [0], [0], [1], [0, 0, 1, 1], [], []>} : vector<2x768xbf16>, vector<768x512xbf16>, vector<2x512xf32> -> vector<2x512xf32>
    %c0_83 = arith.constant 0 : index
    %c0_84 = arith.constant 0 : index
    %165 = vector.load %arg13[%c0_83, %c0_84] : memref<1x512xf32, #tpu.memory_space<vmem>>, vector<1x512xf32>
    %166 = vector.broadcast %165 : vector<1x512xf32> to vector<2x512xf32>
    %167 = arith.addf %164, %166 : vector<2x512xf32>
    %cst_85 = arith.constant 0.000000e+00 : f32
    %168 = vector.broadcast %cst_85 : f32 to vector<2x512xf32>
    %169 = arith.maximumf %167, %168 : vector<2x512xf32>
    %c0_86 = arith.constant 0 : index
    %c0_87 = arith.constant 0 : index
    %170 = vector.load %arg14[%c0_86, %c0_87] : memref<1x512xbf16, #tpu.memory_space<vmem>>, vector<1x512xbf16>
    %171 = arith.truncf %169 : vector<2x512xf32> to vector<2x512xbf16>
    "tpu.trace_start"() <{level = 10 : i32, message = "oh,bh->ob"}> : () -> ()
    %cst_88 = arith.constant dense<0.000000e+00> : vector<1x2xf32>
    %172 = tpu.matmul %170, %171, %cst_88 {dimension_numbers = #tpu.dot_dimension_numbers<[1], [1], [0], [0], [0, 0, 1, 0], [], []>} : vector<1x512xbf16>, vector<2x512xbf16>, vector<1x2xf32> -> vector<1x2xf32>
    "tpu.trace_stop"() : () -> ()
    %c0_89 = arith.constant 0 : index
    %c0_90 = arith.constant 0 : index
    %173 = vector.load %arg15[%c0_89, %c0_90] : memref<1x1xf32, #tpu.memory_space<vmem>>, vector<1x1xf32>
    %174 = vector.broadcast %173 : vector<1x1xf32> to vector<1x2xf32>
    %175 = arith.addf %172, %174 : vector<1x2xf32>
    %c0_91 = arith.constant 0 : index
    %c0_92 = arith.constant 0 : index
    %176 = vector.load %arg16[%c0_91, %c0_92] : memref<1x2xf32, #tpu.memory_space<vmem>>, vector<1x2xf32>
    tpu.vector_store %arg16[%c0_91, %c0_92], %175 {strides = array<i32>} : memref<1x2xf32, #tpu.memory_space<vmem>>, vector<1x2xf32>,
    return
  }
  func.func @transform_0(%arg0: i32) -> (i32, i32, i32) {
    %c0_i32 = arith.constant 0 : i32
    %c0_i32_0 = arith.constant 0 : i32
    %c0_i32_1 = arith.constant 0 : i32
    return %arg0, %c0_i32, %c0_i32_0 : i32, i32, i32
  }
  func.func @transform_1(%arg0: i32) -> (i32, i32) {
    %c0_i32 = arith.constant 0 : i32
    %c0_i32_0 = arith.constant 0 : i32
    return %arg0, %c0_i32 : i32, i32
  }
  func.func @transform_2(%arg0: i32) -> (i32, i32) {
    %c0_i32 = arith.constant 0 : i32
    %c0_i32_0 = arith.constant 0 : i32
    return %arg0, %c0_i32 : i32, i32
  }
  func.func @transform_3(%arg0: i32) -> (i32, i32) {
    %c0_i32 = arith.constant 0 : i32
    %c0_i32_0 = arith.constant 0 : i32
    return %arg0, %c0_i32 : i32, i32
  }
  func.func @transform_4(%arg0: i32) -> (i32, i32) {
    %c0_i32 = arith.constant 0 : i32
    %c0_i32_0 = arith.constant 0 : i32
    %c0_i32_1 = arith.constant 0 : i32
    return %c0_i32, %c0_i32_0 : i32, i32
  }
  func.func @transform_5(%arg0: i32) -> (i32, i32) {
    %c0_i32 = arith.constant 0 : i32
    %c0_i32_0 = arith.constant 0 : i32
    %c0_i32_1 = arith.constant 0 : i32
    return %c0_i32, %c0_i32_0 : i32, i32
  }
  func.func @transform_6(%arg0: i32) -> (i32, i32, i32) {
    %c0_i32 = arith.constant 0 : i32
    %c0_i32_0 = arith.constant 0 : i32
    %c0_i32_1 = arith.constant 0 : i32
    %c0_i32_2 = arith.constant 0 : i32
    return %c0_i32, %c0_i32_0, %c0_i32_1 : i32, i32, i32
  }
  func.func @transform_7(%arg0: i32) -> (i32, i32, i32) {
    %c0_i32 = arith.constant 0 : i32
    %c0_i32_0 = arith.constant 0 : i32
    %c0_i32_1 = arith.constant 0 : i32
    %c0_i32_2 = arith.constant 0 : i32
    return %c0_i32, %c0_i32_0, %c0_i32_1 : i32, i32, i32
  }
  func.func @transform_8(%arg0: i32) -> (i32, i32, i32) {
    %c0_i32 = arith.constant 0 : i32
    %c0_i32_0 = arith.constant 0 : i32
    %c0_i32_1 = arith.constant 0 : i32
    %c0_i32_2 = arith.constant 0 : i32
    return %c0_i32, %c0_i32_0, %c0_i32_1 : i32, i32, i32
  }
  func.func @transform_9(%arg0: i32) -> (i32, i32, i32) {
    %c0_i32 = arith.constant 0 : i32
    %c0_i32_0 = arith.constant 0 : i32
    %c0_i32_1 = arith.constant 0 : i32
    %c0_i32_2 = arith.constant 0 : i32
    return %c0_i32, %c0_i32_0, %c0_i32_1 : i32, i32, i32
  }
  func.func @transform_10(%arg0: i32) -> (i32, i32) {
    %c0_i32 = arith.constant 0 : i32
    %c0_i32_0 = arith.constant 0 : i32
    %c0_i32_1 = arith.constant 0 : i32
    return %c0_i32, %c0_i32_0 : i32, i32
  }
  func.func @transform_11(%arg0: i32) -> (i32, i32) {
    %c0_i32 = arith.constant 0 : i32
    %c0_i32_0 = arith.constant 0 : i32
    %c0_i32_1 = arith.constant 0 : i32
    return %c0_i32, %c0_i32_0 : i32, i32
  }
  func.func @transform_12(%arg0: i32) -> (i32, i32) {
    %c0_i32 = arith.constant 0 : i32
    %c0_i32_0 = arith.constant 0 : i32
    %c0_i32_1 = arith.constant 0 : i32
    return %c0_i32, %c0_i32_0 : i32, i32
  }
  func.func @transform_13(%arg0: i32) -> (i32, i32) {
    %c0_i32 = arith.constant 0 : i32
    %c0_i32_0 = arith.constant 0 : i32
    %c0_i32_1 = arith.constant 0 : i32
    return %c0_i32, %c0_i32_0 : i32, i32
  }
  func.func @transform_14(%arg0: i32) -> (i32, i32) {
    %c0_i32 = arith.constant 0 : i32
    %c0_i32_0 = arith.constant 0 : i32
    %c0_i32_1 = arith.constant 0 : i32
    return %c0_i32, %c0_i32_0 : i32, i32
  }
  func.func @transform_15(%arg0: i32) -> (i32, i32) {
    %c0_i32 = arith.constant 0 : i32
    %c0_i32_0 = arith.constant 0 : i32
    return %c0_i32, %arg0 : i32, i32
  }
}

</mosaic_0001>

<bundles_post_ra>
// kernel: tpu_custom_call.1
= control target key start
LH: loop header
LB: loop body
LE: loop exit
PB: predicated region body
PF: predicated region fallthrough
CT: control target
= control target key end

     0   :  { %s4094_s0 = inlined_call_operand.hbm [shape: bf16[2,8,32], index: 0, kind: input, shape index: {}]   ;;  %s4095_s1 = inlined_call_operand.vmem [shape: bf16[2,16], index: 1, kind: input, shape index: {}]   ;;  %s4096_s2 = inlined_call_operand.vmem [shape: bf16[2,16], index: 2, kind: input, shape index: {}]   ;;  %s4097_s3 = inlined_call_operand.hbm [shape: bf16[2,16], index: 3, kind: input, shape index: {}]   ;;  %s4098_s4 = inlined_call_operand.hbm [shape: bf16[32,48], index: 4, kind: input, shape index: {}]   ;;  %s4099_s5 = inlined_call_operand.hbm [shape: f32[1,48], index: 5, kind: input, shape index: {}]   ;;  %s4100_s6 = inlined_call_operand.hbm [shape: f32[3,1,16], index: 6, kind: input, shape index: {}]   ;;  %s4101_s7 = inlined_call_operand.vmem [shape: f32[3,8,16], index: 7, kind: input, shape index: {}]   ;;  %s4102_s8 = inlined_call_operand.hbm [shape: f32[3,1,16], index: 8, kind: input, shape index: {}]   ;;  %s4103_s9 = inlined_call_operand.hbm [shape: bf16[3,16,40], index: 9, kind: input, shape index: {}]   ;;  %s4104_s10 = inlined_call_operand.vmem [shape: f32[1,96], index: 10, kind: input, shape index: {}]   ;;  %s4105_s11 = inlined_call_operand.hbm [shape: bf16[768,512], index: 11, kind: input, shape index: {}]   ;;  %s4106_s12 = inlined_call_operand.vmem [shape: f32[1,512], index: 12, kind: input, shape index: {}]   ;;  %s4107_s13 = inlined_call_operand.vmem [shape: bf16[1,512], index: 13, kind: input, shape index: {}]   ;;  %s4108_s14 = inlined_call_operand.<no memory space> [shape: f32[1,1], index: 14, kind: input, shape index: {}]   ;;  %s4109_s15 = inlined_call_operand.hbm [shape: f32[1,2], index: 15, kind: output, shape index: {}]  }
   0x1   :  { %v20_v0 = vstv %s4108_s14 }
   0x2   :  { %21 = vst [vmem:[#allocation3] sm:$0x1] %v20_v0 }
   0x3   :  { %22 = vsyncpa [#allocation5], 0 }
   0x4   :  { %23 = vsyncpa [#allocation8], 0 }
   0x5   :  { %24 = vsyncpa [#allocation11], 0 }
   0x6   :  { %25 = vsyncpa [#allocation14], 0 }
   0x7   :  { %26 = vsyncpa [#allocation17], 0 }
   0x8   :  { %27 = vsyncpa [#allocation6], 0  ;;  %s3614_s20 = smov [#allocation7]   ;;  %s3615_s22 = smov [#allocation10]  }
   0x9   :  { %s50_s21 = sshll.u32 %s3614_s20, 4  ;;  %s72_s23 = sshll.u32 %s3615_s22, 4  ;;  %s51_s21 = int_to_ptr.vmem [resolvable:$true] %s50_s21  ;;  %s73_s23 = int_to_ptr.vmem [resolvable:$true] %s72_s23 }
   0xa   :  { %s3404_s26 = scalar_lea.hbm %s4097_s3, 16 }
   0xb   :  { %p3405_p0 = scmp.ne.s32.totalorder %s4097_s3, %s3404_s26  ;;  %p3408_p1 = scmp.lt.u32.totalorder %s3404_s26, %s4097_s3 }
   0xd   :  { %p3410_p2 = pnand %p3408_p1, %p3405_p0 }
   0xf   :  { %3413 = shalt.err (!%p3410_p2)
}
  0x10   :  { %s3414_s30 = scalar_lea.vmem %s51_s21, 16  ;;  %s3418_s16 = scalar_lea.vmem %s51_s21, 32 }
  0x11   :  { %p3415_p3 = scmp.ne.s32.totalorder %s51_s21, %s3414_s30  ;;  %p3419_p4 = scmp.lt.s32.totalorder %s51_s21, %s51_s21 }
  0x12   :  { %p3420_p5 = scmp.lt.s32.totalorder %s3418_s16, %s3414_s30 }
  0x14   :  { %p3421_p6 = por %p3420_p5, %p3419_p4 }
  0x16   :  { %p3422_p7 = pnand %p3421_p6, %p3415_p3 }
  0x18   :  { %3425 = shalt.err (!%p3422_p7)
}
  0x19   :  { %53 = dma.hbm_to_vmem [thread:$0]  %s4097_s3, 16, %s51_s21, [#allocation8]  }
  0x1a   :  { %s3426_s22 = scalar_lea.hbm %s4099_s5, 16 }
  0x1b   :  { %p3427_p8 = scmp.ne.s32.totalorder %s4099_s5, %s3426_s22  ;;  %p3430_p9 = scmp.lt.u32.totalorder %s3426_s22, %s4099_s5 }
  0x1d   :  { %p3432_p10 = pnand %p3430_p9, %p3427_p8 }
  0x1f   :  { %3435 = shalt.err (!%p3432_p10)
}
  0x20   :  { %s3436_s28 = scalar_lea.vmem %s73_s23, 16  ;;  %s3440_s14 = scalar_lea.vmem %s73_s23, 32 }
  0x21   :  { %p3437_p11 = scmp.ne.s32.totalorder %s73_s23, %s3436_s28  ;;  %p3441_p12 = scmp.lt.s32.totalorder %s73_s23, %s73_s23 }
  0x22   :  { %p3442_p13 = scmp.lt.s32.totalorder %s3440_s14, %s3436_s28 }
  0x24   :  { %p3443_p0 = por %p3442_p13, %p3441_p12 }
  0x26   :  { %p3444_p1 = pnand %p3443_p0, %p3437_p11 }
  0x28   :  { %3447 = shalt.err (!%p3444_p1)
}
  0x29   :  { %75 = dma.hbm_to_vmem [thread:$0]  %s4099_s5, 16, %s73_s23, [#allocation11]  }
  0x2a   :  { %s3616_s29 = smov [#allocation13]   ;;  %s3617_s16 = smov [#allocation4]  }
  0x2b   :  { %s95_s30 = sshll.u32 %s3616_s29, 4  ;;  %s33_s17 = sshll.u32 %s3617_s16, 4  ;;  %s96_s30 = int_to_ptr.vmem [resolvable:$true] %s95_s30  ;;  %s3747_s17 = int_to_ptr.vmem [resolvable:$true] %s33_s17 }
  0x2c   :  { %s3448_s20 = scalar_lea.hbm %s4102_s8, 48 }
  0x2d   :  { %p3449_p2 = scmp.ne.s32.totalorder %s4102_s8, %s3448_s20  ;;  %p3452_p3 = scmp.lt.u32.totalorder %s3448_s20, %s4102_s8 }
  0x2f   :  { %p3454_p4 = pnand %p3452_p3, %p3449_p2 }
  0x31   :  { %3457 = shalt.err (!%p3454_p4)
}
  0x32   :  { %s3458_s5 = scalar_lea.vmem %s96_s30, 48  ;;  %s3462_s23 = scalar_lea.vmem %s96_s30, 64 }
  0x33   :  { %p3459_p5 = scmp.ne.s32.totalorder %s96_s30, %s3458_s5  ;;  %p3463_p6 = scmp.lt.s32.totalorder %s96_s30, %s96_s30 }
  0x34   :  { %p3464_p7 = scmp.lt.s32.totalorder %s3462_s23, %s3458_s5 }
  0x36   :  { %p3465_p8 = por %p3464_p7, %p3463_p6 }
  0x38   :  { %p3466_p9 = pnand %p3465_p8, %p3459_p5 }
  0x3a   :  { %3469 = shalt.err (!%p3466_p9)
}
  0x3b   :  { %s3618_s27 = smov 16   ;;  %s3619_s28 = smov 1  }
  0x3c   :  { %101 = dma.hbm_to_vmem [thread:$0]  %s4102_s8, 48, %s96_s30, [#allocation14], %s3618_s27, %s3618_s27, %s3619_s28  }
  0x3d   :  { %s3470_s16 = scalar_lea.hbm %s4094_s0, 128 }
  0x3e   :  { %p3471_p10 = scmp.ne.s32.totalorder %s4094_s0, %s3470_s16  ;;  %p3474_p11 = scmp.lt.u32.totalorder %s3470_s16, %s4094_s0 }
  0x40   :  { %p3476_p12 = pnand %p3474_p11, %p3471_p10 }
  0x42   :  { %3479 = shalt.err (!%p3476_p12)
}
  0x43   :  { %s3480_s24 = scalar_lea.vmem %s3747_s17, 128  ;;  %p3485_p0 = scmp.lt.s32.totalorder %s3747_s17, %s3747_s17 }
  0x44   :  { %p3481_p13 = scmp.ne.s32.totalorder %s3747_s17, %s3480_s24  ;;  %p3486_p1 = scmp.lt.s32.totalorder %s3480_s24, %s3480_s24 }
  0x46   :  { %p3487_p2 = por %p3486_p1, %p3485_p0 }
  0x48   :  { %p3488_p3 = pnand %p3487_p2, %p3481_p13 }
  0x4a   :  { %3491 = shalt.err (!%p3488_p3)
}
  0x4b   :  { %s3620_s8 = smov 64   ;;  %s3621_s30 = smov 4  }
  0x4c   :  { %39 = dma.hbm_to_vmem [thread:$0]  %s4094_s0, 128, %s3747_s17, [#allocation5], %s3620_s8, %s3620_s8, %s3621_s30  }
  0x4d   :  { %s3622_s5 = smov [#allocation9]   ;;  %s3623_s14 = smov [#allocation12]  }
  0x4e   :  { %s59_s23 = sshll.u32 %s3622_s5, 4  ;;  %s81_s3 = sshll.u32 %s3623_s14, 4  ;;  %s60_s23 = int_to_ptr.vmem [resolvable:$true] %s59_s23  ;;  %s3784_s3 = int_to_ptr.vmem [resolvable:$true] %s81_s3 }
  0x4f   :  { %s3492_s16 = scalar_lea.hbm %s4098_s4, 256 }
  0x50   :  { %p3493_p4 = scmp.ne.s32.totalorder %s4098_s4, %s3492_s16  ;;  %p3496_p5 = scmp.lt.u32.totalorder %s3492_s16, %s4098_s4 }
  0x52   :  { %p3498_p6 = pnand %p3496_p5, %p3493_p4 }
  0x54   :  { %3501 = shalt.err (!%p3498_p6)
}
  0x55   :  { %s3502_s0 = scalar_lea.vmem %s60_s23, 256  ;;  %p3507_p8 = scmp.lt.s32.totalorder %s60_s23, %s60_s23 }
  0x56   :  { %p3503_p7 = scmp.ne.s32.totalorder %s60_s23, %s3502_s0  ;;  %p3508_p9 = scmp.lt.s32.totalorder %s3502_s0, %s3502_s0 }
  0x58   :  { %p3509_p10 = por %p3508_p9, %p3507_p8 }
  0x5a   :  { %p3510_p11 = pnand %p3509_p10, %p3503_p7 }
  0x5c   :  { %3513 = shalt.err (!%p3510_p11)
}
  0x5d   :  { %65 = dma.hbm_to_vmem [thread:$0]  %s4098_s4, 256, %s60_s23, [#allocation8], %s3620_s8, %s3620_s8, %s3621_s30  }
  0x5e   :  { %s3514_s5 = scalar_lea.hbm %s4100_s6, 48 }
  0x5f   :  { %p3515_p12 = scmp.ne.s32.totalorder %s4100_s6, %s3514_s5  ;;  %p3518_p13 = scmp.lt.u32.totalorder %s3514_s5, %s4100_s6 }
  0x61   :  { %p3520_p0 = pnand %p3518_p13, %p3515_p12 }
  0x63   :  { %3523 = shalt.err (!%p3520_p0)
}
  0x64   :  { %s3524_s18 = scalar_lea.vmem %s3784_s3, 48  ;;  %s3528_s4 = scalar_lea.vmem %s3784_s3, 64 }
  0x65   :  { %p3525_p1 = scmp.ne.s32.totalorder %s3784_s3, %s3524_s18  ;;  %p3529_p2 = scmp.lt.s32.totalorder %s3784_s3, %s3784_s3 }
  0x66   :  { %p3530_p3 = scmp.lt.s32.totalorder %s3528_s4, %s3524_s18 }
  0x68   :  { %p3531_p4 = por %p3530_p3, %p3529_p2 }
  0x6a   :  { %p3532_p5 = pnand %p3531_p4, %p3525_p1 }
  0x6c   :  { %3535 = shalt.err (!%p3532_p5)
}
  0x6d   :  { %87 = dma.hbm_to_vmem [thread:$0]  %s4100_s6, 48, %s3784_s3, [#allocation11], %s3618_s27, %s3618_s27, %s3619_s28  }
  0x6e   :  { %s3624_s20 = smov [#allocation15]   ;;  %s3625_s0 = smov [#allocation16]  }
  0x6f   :  { %s107_s22 = sshll.u32 %s3624_s20, 4  ;;  %s121_s17 = sshll.u32 %s3625_s0, 4  ;;  %s108_s22 = int_to_ptr.vmem [resolvable:$true] %s107_s22  ;;  %s3822_s17 = int_to_ptr.vmem [resolvable:$true] %s121_s17 }
  0x70   :  { %s3536_s26 = scalar_lea.hbm %s4103_s9, 384 }
  0x71   :  { %p3537_p6 = scmp.ne.s32.totalorder %s4103_s9, %s3536_s26  ;;  %p3540_p7 = scmp.lt.u32.totalorder %s3536_s26, %s4103_s9 }
  0x73   :  { %p3542_p8 = pnand %p3540_p7, %p3537_p6 }
  0x75   :  { %3545 = shalt.err (!%p3542_p8)
}
  0x76   :  { %s3546_s6 = scalar_lea.vmem %s108_s22, 384  ;;  %p3551_p10 = scmp.lt.s32.totalorder %s108_s22, %s108_s22 }
  0x77   :  { %p3547_p9 = scmp.ne.s32.totalorder %s108_s22, %s3546_s6  ;;  %p3552_p11 = scmp.lt.s32.totalorder %s3546_s6, %s3546_s6 }
  0x79   :  { %p3553_p12 = por %p3552_p11, %p3551_p10 }
  0x7b   :  { %p3554_p13 = pnand %p3553_p12, %p3547_p9 }
  0x7d   :  { %3557 = shalt.err (!%p3554_p13)
}
  0x7e   :  { %113 = dma.hbm_to_vmem [thread:$0]  %s4103_s9, 384, %s108_s22, [#allocation14], %s3620_s8, %s3620_s8, %s3621_s30  }
  0x7f   :  { %s3558_s4 = scalar_lea.hbm %s4105_s11, 24576 }
  0x80   :  { %p3559_p0 = scmp.ne.s32.totalorder %s4105_s11, %s3558_s4  ;;  %p3562_p1 = scmp.lt.u32.totalorder %s3558_s4, %s4105_s11 }
  0x82   :  { %p3564_p2 = pnand %p3562_p1, %p3559_p0 }
  0x84   :  { %3567 = shalt.err (!%p3564_p2)
}
  0x85   :  { %s3568_s24 = scalar_lea.vmem %s3822_s17, 24576  ;;  %p3573_p4 = scmp.lt.s32.totalorder %s3822_s17, %s3822_s17 }
  0x86   :  { %p3569_p3 = scmp.ne.s32.totalorder %s3822_s17, %s3568_s24  ;;  %p3574_p5 = scmp.lt.s32.totalorder %s3568_s24, %s3568_s24 }
  0x88   :  { %p3575_p6 = por %p3574_p5, %p3573_p4 }
  0x8a   :  { %p3576_p7 = pnand %p3575_p6, %p3569_p3 }
  0x8c   :  { %3579 = shalt.err (!%p3576_p7)
}
  0x8d   :  { %s3626_s9 = smov 256  }
  0x8e   :  { %127 = dma.hbm_to_vmem [thread:$0]  %s4105_s11, 24576, %s3822_s17, [#allocation17], %s3626_s9, %s3626_s9, %s3618_s27  }
  0x8f   :  { %3602 = dma.done.wait [#allocation5], 128  }
  0x90   :  { %3603 = vsyncadd [#allocation5], 4294967168 }
  0x91   :  { %3604 = dma.done.wait [#allocation8], 272  }
  0x92   :  { %3605 = vsyncadd [#allocation8], 4294967024 }
  0x93   :  { %3606 = dma.done.wait [#allocation11], 64  }
  0x94   :  { %3607 = vsyncadd [#allocation11], 4294967232 }
  0x95   :  { %3608 = dma.done.wait [#allocation14], 432  }
  0x96   :  { %3609 = vsyncadd [#allocation14], 4294966864 }
  0x97   :  { %3610 = dma.done.wait [#allocation17], 24576  }
  0x98   :  { %3611 = vsyncadd [#allocation17], 4294942720  ;;  %v3627_v1 = vmov 0.0   ;;  %vm3628_vm0 = vmmov 0   ;;  %v3077_v2 = vld [vmem:[#allocation9] sm:$0xff]   ;;  %vm248_vm1 = vcmask 130048   ;;  %v303_v11 = vlaneseq }
  0x99   :  { %2998 = vmatprep.subr.bf16.mxu0 %v3627_v1  ;;  %3012 = vmatprep.subr.bf16.mxu1 %v3627_v1  ;;  %v3078_v3 = vld [vmem:[#allocation15 + $0x8] sm:$0xff]   ;;  %v532_v4 = vld [vmem:[%s4096_s2] sm:$0x1]  ;;  %v159_v6 = vld [vmem:[#allocation4] sm:$0xff]   ;;  %vm184_vm2 = vcmask 261120   ;;  %s3629_s14 = smov 32  }
  0x9a   :  { %3014 = vmatprep.mubr.msk.bf16.mxu1 %vm3628_vm0, %v3627_v1  ;;  %3002 = vmatprep.mubr.msk.bf16.mxu0 %vm3628_vm0, %v3627_v1  ;;  %v3079_v5 = vld [vmem:[#allocation9 + $0x8] sm:$0xff]   ;;  %v3081_v7 = vld [vmem:[#allocation15] sm:$0xff]   ;;  %v3872_v12 = vshrl.u32 %v303_v11, 7  ;;  %v2787_v35 = vld [vmem:[#allocation12 + $0x1] ss:$0 sm:$0xff]  ;;  %s3631_s21 = smov 96  }
  0x9b   :  { %2999 = vmatpush3.bf16.msra.mxu0 %v3077_v2  ;;  %3013 = vmatpush3.bf16.msra.mxu1 %v3078_v3  ;;  %v239_v8 = vld [vmem:[%s4095_s1] sm:$0x1]  ;;  %v841_v10 = vld [vmem:[#allocation7] sm:$0x1]  ;;  %v2793_v43 = vld [vmem:[#allocation12 + $0x2] ss:$0 sm:$0xff] }
  0x9c   :  { %3000 = vmatprep.subr.bf16.mxu0 %v3627_v1  ;;  %v3082_v9 = vld [vmem:[#allocation15 + $0x10] sm:$0xff]   ;;  %v3875_v13 = vsub.s32 0, %v3872_v12  ;;  %v3878_v14 = vsub.s32 1, %v3872_v12  ;;  %v2788_v37 = vld [vmem:[%s4101_s7 + $0x8] sm:$0xff]  ;;  %v2794_v44 = vld [vmem:[%s4101_s7 + $0x10] sm:$0xff]  ;;  %vm360_vm3 = vcmask 1041409  }
  0x9d   :  { %v2789_v50 = vld [vmem:[#allocation13 + $0x1] ss:$0 sm:$0xff]  ;;  %v2795_v52 = vld [vmem:[#allocation13 + $0x2] ss:$0 sm:$0xff]  ;;  %v2778_v55 = vld [vmem:[#allocation10] ss:$0 sm:$0xff] }
  0x9e   :  { %3015 = vmatmul.mubr.msk.bf16.vlgmr.msra.gmra.mrb[0].mxu1 %vm248_vm1, %v532_v4  ;;  %vm363_vm4 = vcmask 58368   ;;  %s3633_s3 = smov 8   ;;  %s3634_s16 = smov 104   ;;  %vm510_vm5 = vcmask 253952   ;;  %vm2753_vm6 = vcmask 8192  }
  0x9f   :  { %3001 = vmatpush3.bf16.msra.mxu0 %v3079_v5  ;;  %s3635_s18 = smov 72  }
  0xa0   :  { %3006 = vmatprep.subr.bf16.mxu0 %v3627_v1 }
  0xa2   :  { %3003 = vmatmul.mubr.msk.bf16.vlgmr.msra.gmra.mrb[0].mxu0 %vm184_vm2, %v159_v6 }
  0xa3   :  { %3007 = vmatpush3.bf16.msra.mxu0 %v3081_v7  ;;  %3008 = vmatprep.mubr.msk.bf16.mxu0 %vm3628_vm0, %v3627_v1 }
  0xa4   :  { %3018 = vmatprep.subr.bf16.mxu0 %v3627_v1 }
  0xaa   :  { %3009 = vmatmul.mubr.msk.bf16.vlgmr.msra.gmra.mrb[4].mxu0 %vm248_vm1, %v239_v8 }
  0xab   :  { %3019 = vmatpush3.bf16.msra.mxu0 %v3082_v9  ;;  %3020 = vmatprep.mubr.msk.bf16.mxu0 %vm3628_vm0, %v3627_v1  ;;  %v2782_v9 = vld [vmem:[#allocation12] ss:$0 sm:$0xff] }
  0xb2   :  { %3021 = vmatmul.mubr.msk.bf16.vlgmr.msra.gmra.mrb[8].mxu0 %vm248_vm1, %v841_v10 }
 0x171   :  { %v3880_v15 = vpop.f32.mrb[0].mxu1 }
 0x172   :  { %v599_v16 = vrot.slane %v3880_v15, %v3875_v13  ;;  %v3016_v17 = vpop.f32.mrb[1].mxu1  ;;  %v606_v20 = vrot.slane %v3880_v15, %v3878_v14 }
 0x173   :  { %v582_v18 = vpop.f32.mrb[2].mxu1 }
 0x174   :  { %601 = vbcast.lane.b32.xlu0 %v599_v16, 256  ;;  %v3017_v21 = vpop.f32.mrb[3].mxu1 }
 0x175   :  { %v222_v19 = vpop.f32.mrb[0].mxu0 }
 0x176   :  { %v3004_v22 = vpop.f32.mrb[1].mxu0  ;;  %v236_v57 = vadd.f32 %v2778_v55, %v222_v19  ;;  %v326_v19 = vld [vmem:[%s4101_s7] sm:$0xff] }
 0x177   :  { %v225_v23 = vpop.f32.mrb[2].mxu0 }
 0x178   :  { %v3005_v24 = vpop.f32.mrb[3].mxu0  ;;  %608 = vbcast.lane.b32.xlu0 %v606_v20, 256  ;;  %v237_v59 = vadd.f32 %v2778_v55, %v225_v23 }
 0x17d   :  { %v3886_v25 = vpop.f32.mrb[4].mxu0 }
 0x17e   :  { %v3010_v26 = vpop.f32.mrb[5].mxu0  ;;  %v306_v53 = vrot.slane %v3886_v25, %v3875_v13  ;;  %v313_v54 = vrot.slane %v3886_v25, %v3878_v14 }
 0x17f   :  { %v289_v27 = vpop.f32.mrb[6].mxu0 }
 0x180   :  { %v3011_v28 = vpop.f32.mrb[7].mxu0 }
 0x185   :  { %v3888_v29 = vpop.f32.mrb[8].mxu0 }
 0x186   :  { %v3022_v30 = vpop.f32.mrb[9].mxu0  ;;  %v908_v31 = vrot.slane %v3888_v29, %v3875_v13  ;;  %v915_v34 = vrot.slane %v3888_v29, %v3878_v14 }
 0x187   :  { %v891_v32 = vpop.f32.mrb[10].mxu0  ;;  %v2783_v30 = vld [vmem:[#allocation13] ss:$0 sm:$0xff] }
 0x188   :  { %910 = vbcast.lane.b32.xlu1 %v908_v31, 256  ;;  %v3023_v33 = vpop.f32.mrb[11].mxu0 }
 0x18c   :  { %917 = vbcast.lane.b32.xlu1 %v915_v34, 256 }
 0x1e6   :  { %v602_v36 = vpop.permute.xlu0 %601 }
 0x1e7   :  { %v618_v38 = vmul.f32 %v2787_v35, %v602_v36 }
 0x1e9   :  { %v622_v39 = vadd.f32 %v2788_v37, %v618_v38 }
 0x1ea   :  { %v609_v40 = vpop.permute.xlu0 %608 }
 0x1eb   :  { %v619_v41 = vmul.f32 %v2787_v35, %v609_v40  ;;  %626 = vrot.lane.b32.xlu0 %v622_v39, %s3618_s27 }
 0x1ed   :  { %v623_v42 = vadd.f32 %v2788_v37, %v619_v41 }
 0x1ef   :  { %628 = vrot.lane.b32.xlu1 %v623_v42, %s3618_s27 }
 0x1fa   :  { %v911_v45 = vpop.permute.xlu1 %910 }
 0x1fb   :  { %v927_v46 = vmul.f32 %v2793_v43, %v911_v45 }
 0x1fd   :  { %v931_v47 = vadd.f32 %v2794_v44, %v927_v46 }
 0x1fe   :  { %v918_v48 = vpop.permute.xlu1 %917 }
 0x1ff   :  { %v928_v49 = vmul.f32 %v2793_v43, %v918_v48  ;;  %935 = vrot.lane.b32.xlu0 %v931_v47, %s3629_s14 }
 0x201   :  { %v932_v51 = vadd.f32 %v2794_v44, %v928_v49  ;;  %v351_v44 = vand.u32 127, %v303_v11 }
 0x203   :  { %643 = vrot.lane.b32.xlu0 %v2789_v50, %s3618_s27  ;;  %937 = vrot.lane.b32.xlu1 %v932_v51, %s3629_s14  ;;  %s3630_s27 = smov 112   ;;  %v3918_v45 = vsub.s32 %v351_v44, %v3872_v12  ;;  %v3088_v44 = vld [vmem:[#allocation16 + $0xc] ss:$16 sps:$4 sm:$0xff]  }
 0x204   :  { %2502 = vmatprep.subr.bf16.mxu0 %v3088_v44  ;;  %v3122_v44 = vld [vmem:[#allocation16 + $0xc8] ss:$16 sps:$4 sm:$0xff]  }
 0x207   :  { %308 = vbcast.lane.b32.xlu0 %v306_v53, 256  ;;  %952 = vrot.lane.b32.xlu1 %v2795_v52, %s3629_s14  ;;  %v3632_v52 = vmov 0  }
 0x208   :  { %3076 = vset.pattern.permute.xlu1 %v3632_v52  ;;  %238 = vst [vmem:[#allocation2] sm:$0x3f] %v3632_v52  ;;  %3075 = vset.pattern.permute.xlu0 %v3632_v52 }
 0x20b   :  { %315 = vbcast.lane.b32.xlu1 %v313_v54, 256 }
 0x25d   :  { %v627_v56 = vpop.permute.xlu0 %626 }
 0x25e   :  { %v632_v60 = vadd.f32 %v627_v56, %v236_v57 }
 0x260   :  { %3373 = vtanh.f32 %v632_v60 }
 0x261   :  { %v629_v58 = vpop.permute.xlu1 %628 }
 0x262   :  { %v633_v61 = vadd.f32 %v629_v58, %v237_v59 }
 0x264   :  { %3375 = vtanh.f32 %v633_v61 }
 0x26a   :  { %v3374_v0 = vpop.eup %3373 }
 0x26e   :  { %v3376_v1 = vpop.eup %3375 }
 0x271   :  { %v936_v62 = vpop.permute.xlu0 %935 }
 0x272   :  { %v941_v63 = vadd.f32 %v936_v62, %v236_v57 }
 0x274   :  { %3377 = vtanh.f32 %v941_v63 }
 0x275   :  { %v644_v2 = vpop.permute.xlu0 %643  ;;  %v938_v3 = vpop.permute.xlu1 %937 }
 0x276   :  { %v646_v4 = vmul.f32 %v3374_v0, %v644_v2  ;;  %v647_v5 = vmul.f32 %v3376_v1, %v644_v2  ;;  %v942_v6 = vadd.f32 %v938_v3, %v237_v59 }
 0x278   :  { %3379 = vtanh.f32 %v942_v6  ;;  %650 = vrot.lane.b32.xlu0 %v646_v4, %s3630_s27  ;;  %652 = vrot.lane.b32.xlu1 %v647_v5, %s3630_s27 }
 0x279   :  { %v953_v8 = vpop.permute.xlu1 %952  ;;  %v309_v10 = vpop.permute.xlu0 %308 }
 0x27a   :  { %v324_v18 = vmul.f32 %v2782_v9, %v309_v10 }
 0x27c   :  { %v327_v21 = vadd.f32 %v326_v19, %v324_v18 }
 0x27d   :  { %v316_v22 = vpop.permute.xlu1 %315 }
 0x27e   :  { %v3378_v7 = vpop.eup %3377  ;;  %v329_v23 = vadd.f32 %v327_v21, %v236_v57  ;;  %v325_v24 = vmul.f32 %v2782_v9, %v316_v22 }
 0x27f   :  { %v955_v16 = vmul.f32 %v3378_v7, %v953_v8 }
 0x280   :  { %3381 = vtanh.f32 %v329_v23  ;;  %v328_v26 = vadd.f32 %v326_v19, %v325_v24 }
 0x281   :  { %959 = vrot.lane.b32.xlu0 %v955_v16, %s3631_s21 }
 0x282   :  { %v3380_v17 = vpop.eup %3379  ;;  %v330_v27 = vadd.f32 %v328_v26, %v237_v59 }
 0x283   :  { %v956_v20 = vmul.f32 %v3380_v17, %v953_v8 }
 0x284   :  { %3383 = vtanh.f32 %v330_v27 }
 0x285   :  { %961 = vrot.lane.b32.xlu1 %v956_v20, %s3631_s21 }
 0x28a   :  { %v3382_v28 = vpop.eup %3381 }
 0x28b   :  { %v340_v31 = vmul.f32 %v3382_v28, %v2783_v30 }
 0x28d   :  { %v342_v32 = vsel %vm248_vm1, %v340_v31, 0.0 }
 0x28e   :  { %v3384_v33 = vpop.eup %3383 }
 0x28f   :  { %v341_v34 = vmul.f32 %v3384_v33, %v2783_v30 }
 0x291   :  { %v345_v35 = vsel %vm248_vm1, %v341_v34, 0.0  ;;  %v2781_v34 = vld [vmem:[%s4104_s10] ss:$0 sm:$0xff]  ;;  %s3637_s10 = smov 120  }
 0x2a0   :  { %343 = vadd.xlane.f32.xlu0 %v342_v32 }
 0x2a9   :  { %346 = vadd.xlane.f32.xlu1 %v345_v35 }
 0x2ea   :  { %v651_v36 = vpop.permute.xlu0 %650  ;;  %v653_v38 = vpop.permute.xlu1 %652 }
 0x2eb   :  { %v656_v37 = vsel %vm248_vm1, %v651_v36, 0.0  ;;  %v659_v39 = vsel %vm248_vm1, %v653_v38, 0.0 }
 0x2ec   :  { %657 = vadd.xlane.f32.xlu0 %v656_v37 }
 0x2f0   :  { %660 = vadd.xlane.f32.xlu0 %v659_v39 }
 0x2f3   :  { %v960_v40 = vpop.permute.xlu0 %959 }
 0x2f4   :  { %v965_v41 = vsel %vm248_vm1, %v960_v40, 0.0 }
 0x2f5   :  { %966 = vadd.xlane.f32.xlu1 %v965_v41  ;;  %v3083_v41 = vld [vmem:[#allocation16] ss:$16 sps:$4 sm:$0xff]  }
 0x2f7   :  { %v962_v42 = vpop.permute.xlu1 %961 }
 0x2f8   :  { %v968_v43 = vsel %vm248_vm1, %v962_v42, 0.0  ;;  %v3085_v42 = vld [vmem:[#allocation16 + $0x4] ss:$16 sps:$4 sm:$0xff]  }
 0x2f9   :  { %969 = vadd.xlane.f32.xlu0 %v968_v43  ;;  %v3086_v43 = vld [vmem:[#allocation16 + $0x8] ss:$16 sps:$4 sm:$0xff]   ;;  %2379 = vmatprep.subr.bf16.mxu1 %v3085_v42  ;;  %v3124_v42 = vld [vmem:[#allocation16 + $0xcc] ss:$16 sps:$4 sm:$0xff]  }
 0x2fa   :  { %2380 = vmatpush1.bf16.msra.mxu1 %v3083_v41  ;;  %2503 = vmatpush1.bf16.msra.mxu0 %v3086_v43  ;;  %v3121_v41 = vld [vmem:[#allocation16 + $0xc4] ss:$16 sps:$4 sm:$0xff]   ;;  %v3119_v43 = vld [vmem:[#allocation16 + $0xc0] ss:$16 sps:$4 sm:$0xff]  }
 0x32d   :  { %v344_v46 = vpop.xlane.xlu0 %343 }
 0x32e   :  { %v355_v48 = vrot.slane %v344_v46, %v3918_v45 }
 0x336   :  { %v347_v47 = vpop.xlane.xlu1 %346 }
 0x337   :  { %v359_v49 = vrot.slane %v347_v47, %v3918_v45 }
 0x339   :  { %v361_v50 = vsel %vm360_vm3, %v359_v49, %v355_v48  ;;  %v3089_v48 = vld [vmem:[#allocation16 + $0x20] ss:$16 sps:$4 sm:$0xff]   ;;  %v3092_v49 = vld [vmem:[#allocation16 + $0x28] ss:$16 sps:$4 sm:$0xff]  }
 0x33a   :  { %v364_v51 = vsel %vm363_vm4, %v361_v50, -inf }
 0x33b   :  { %365 = vmax.xlane.f32.xlu1 %v364_v51 }
 0x379   :  { %v658_v11 = vpop.xlane.xlu0 %657 }
 0x37a   :  { %v667_v54 = vrot.slane %v658_v11, %v3918_v45 }
 0x37d   :  { %v661_v53 = vpop.xlane.xlu0 %660 }
 0x37e   :  { %v671_v55 = vrot.slane %v661_v53, %v3918_v45 }
 0x380   :  { %v672_v56 = vsel %vm360_vm3, %v671_v55, %v667_v54 }
 0x381   :  { %v674_v57 = vsel %vm363_vm4, %v672_v56, -inf }
 0x382   :  { %675 = vmax.xlane.f32.xlu0 %v674_v57  ;;  %v967_v58 = vpop.xlane.xlu1 %966 }
 0x383   :  { %v976_v60 = vrot.slane %v967_v58, %v3918_v45 }
 0x386   :  { %v970_v59 = vpop.xlane.xlu0 %969 }
 0x387   :  { %v980_v61 = vrot.slane %v970_v59, %v3918_v45 }
 0x389   :  { %v981_v62 = vsel %vm360_vm3, %v980_v61, %v976_v60 }
 0x38a   :  { %v983_v63 = vsel %vm363_vm4, %v981_v62, -inf  ;;  %v3636_v62 = vmov 1966171168  }
 0x38b   :  { %984 = vmax.xlane.f32.xlu1 %v983_v63  ;;  %v435_v63 = vunpack.c.l.s4 %v3636_v62 }
 0x3c8   :  { %v366_v0 = vpop.xlane.xlu1 %365 }
 0x3c9   :  { %v371_v1 = vrot.slane %v366_v0, %v3875_v13  ;;  %v375_v2 = vrot.slane %v366_v0, %v3878_v14 }
 0x3cb   :  { %v378_v3 = vsub.f32 %v344_v46, %v371_v1  ;;  %v379_v4 = vsub.f32 %v347_v47, %v375_v2  ;;  %v3091_v46 = vld [vmem:[#allocation16 + $0x24] ss:$16 sps:$4 sm:$0xff]   ;;  %v3094_v47 = vld [vmem:[#allocation16 + $0x2c] ss:$16 sps:$4 sm:$0xff]   ;;  %v436_v1 = vunpack.c.0.s8 %v435_v63 }
 0x3cc   :  { %2381 = vmatprep.subr.bf16.mxu1 %v3091_v46  ;;  %2504 = vmatprep.subr.bf16.mxu0 %v3094_v47  ;;  %v3127_v46 = vld [vmem:[#allocation16 + $0xe4] ss:$16 sps:$4 sm:$0xff]   ;;  %v3130_v47 = vld [vmem:[#allocation16 + $0xec] ss:$16 sps:$4 sm:$0xff]  }
 0x3cd   :  { %v380_v5 = vmul.f32 1.442695, %v378_v3  ;;  %v382_v6 = vmul.f32 1.442695, %v379_v4  ;;  %2382 = vmatpush1.bf16.msra.mxu1 %v3089_v48  ;;  %2505 = vmatpush1.bf16.msra.mxu0 %v3092_v49  ;;  %v3125_v48 = vld [vmem:[#allocation16 + $0xe0] ss:$16 sps:$4 sm:$0xff]  }
 0x3ce   :  { %v3128_v49 = vld [vmem:[#allocation16 + $0xe8] ss:$16 sps:$4 sm:$0xff]  }
 0x3cf   :  { %3385 = vpow2.f32 %v380_v5 }
 0x3d0   :  { %3387 = vpow2.f32 %v382_v6  ;;  %v3097_v6 = vld [vmem:[#allocation16 + $0x44] ss:$16 sps:$4 sm:$0xff]  }
 0x3d1   :  { %2383 = vmatprep.subr.bf16.mxu1 %v3097_v6  ;;  %v3151_v6 = vld [vmem:[#allocation16 + $0x164] ss:$16 sps:$4 sm:$0xff]  }
 0x3d9   :  { %v3386_v7 = vpop.eup %3385 }
 0x3da   :  { %v3388_v8 = vpop.eup %3387  ;;  %386 = vperm.xlu0 %3075, %v3386_v7   ;;  %v3100_v7 = vld [vmem:[#allocation16 + $0x4c] ss:$16 sps:$4 sm:$0xff]  }
 0x3db   :  { %391 = vperm.xlu1 %3076, %v3388_v8   ;;  %2506 = vmatprep.subr.bf16.mxu0 %v3100_v7  ;;  %v3154_v7 = vld [vmem:[#allocation16 + $0x16c] ss:$16 sps:$4 sm:$0xff]  }
 0x40f   :  { %v676_v9 = vpop.xlane.xlu0 %675 }
 0x410   :  { %v681_v10 = vrot.slane %v676_v9, %v3875_v13  ;;  %v685_v16 = vrot.slane %v676_v9, %v3878_v14 }
 0x412   :  { %v688_v17 = vsub.f32 %v658_v11, %v681_v10  ;;  %v689_v18 = vsub.f32 %v661_v53, %v685_v16  ;;  %v3095_v16 = vld [vmem:[#allocation16 + $0x40] ss:$16 sps:$4 sm:$0xff]  }
 0x413   :  { %2384 = vmatpush1.bf16.msra.mxu1 %v3095_v16 }
 0x414   :  { %v690_v19 = vmul.f32 1.442695, %v688_v17  ;;  %v692_v20 = vmul.f32 1.442695, %v689_v18  ;;  %v3098_v17 = vld [vmem:[#allocation16 + $0x48] ss:$16 sps:$4 sm:$0xff]  }
 0x415   :  { %2507 = vmatpush1.bf16.msra.mxu0 %v3098_v17  ;;  %v3160_v17 = vld [vmem:[#allocation16 + $0x18c] ss:$16 sps:$4 sm:$0xff]  }
 0x416   :  { %3389 = vpow2.f32 %v690_v19  ;;  %v3106_v19 = vld [vmem:[#allocation16 + $0x6c] ss:$16 sps:$4 sm:$0xff]  }
 0x417   :  { %3391 = vpow2.f32 %v692_v20  ;;  %2508 = vmatprep.subr.bf16.mxu0 %v3106_v19  ;;  %v3161_v19 = vld [vmem:[#allocation16 + $0x1a0] ss:$16 sps:$4 sm:$0xff]  }
 0x418   :  { %v985_v21 = vpop.xlane.xlu1 %984 }
 0x419   :  { %v990_v22 = vrot.slane %v985_v21, %v3875_v13  ;;  %v994_v23 = vrot.slane %v985_v21, %v3878_v14 }
 0x41b   :  { %v997_v24 = vsub.f32 %v967_v58, %v990_v22  ;;  %v998_v26 = vsub.f32 %v970_v59, %v994_v23  ;;  %v3101_v23 = vld [vmem:[#allocation16 + $0x60] ss:$16 sps:$4 sm:$0xff]  }
 0x41d   :  { %v999_v27 = vmul.f32 1.442695, %v997_v24  ;;  %v1001_v28 = vmul.f32 1.442695, %v998_v26  ;;  %v3104_v24 = vld [vmem:[#allocation16 + $0x68] ss:$16 sps:$4 sm:$0xff]  }
 0x41e   :  { %2509 = vmatpush1.bf16.msra.mxu0 %v3104_v24  ;;  %v3109_v26 = vld [vmem:[#allocation16 + $0x84] ss:$16 sps:$4 sm:$0xff]  }
 0x41f   :  { %3393 = vpow2.f32 %v999_v27  ;;  %v3112_v27 = vld [vmem:[#allocation16 + $0x8c] ss:$16 sps:$4 sm:$0xff]  }
 0x420   :  { %v3390_v30 = vpop.eup %3389  ;;  %3395 = vpow2.f32 %v1001_v28  ;;  %2510 = vmatprep.subr.bf16.mxu0 %v3112_v27  ;;  %v3167_v27 = vld [vmem:[#allocation16 + $0x1c0] ss:$16 sps:$4 sm:$0xff]  }
 0x421   :  { %696 = vperm.xlu1 %3076, %v3390_v30   ;;  %v3392_v31 = vpop.eup %3391 }
 0x425   :  { %701 = vperm.xlu1 %3076, %v3392_v31   ;;  %v3107_v31 = vld [vmem:[#allocation16 + $0x80] ss:$16 sps:$4 sm:$0xff]  }
 0x429   :  { %v3394_v32 = vpop.eup %3393 }
 0x42a   :  { %1005 = vperm.xlu1 %3076, %v3394_v32   ;;  %v3396_v33 = vpop.eup %3395  ;;  %v3110_v32 = vld [vmem:[#allocation16 + $0x88] ss:$16 sps:$4 sm:$0xff]  }
 0x42b   :  { %2511 = vmatpush1.bf16.msra.mxu0 %v3110_v32  ;;  %v3178_v32 = vld [vmem:[#allocation16 + $0x1ec] ss:$16 sps:$4 sm:$0xff]  }
 0x42e   :  { %1010 = vperm.xlu1 %3076, %v3396_v33   ;;  %v3115_v33 = vld [vmem:[#allocation16 + $0xa4] ss:$16 sps:$4 sm:$0xff]  }
 0x432   :  { %298 = vrot.lane.b32.xlu1 %v2781_v34, %s3633_s3 }
 0x436   :  { %591 = vrot.lane.b32.xlu1 %v2781_v34, %s3634_s16 }
 0x43a   :  { %900 = vrot.lane.b32.xlu1 %v2781_v34, %s3635_s18  ;;  %v3118_v34 = vld [vmem:[#allocation16 + $0xac] ss:$16 sps:$4 sm:$0xff]  }
 0x43b   :  { %2512 = vmatprep.subr.bf16.mxu0 %v3118_v34 }
 0x459   :  { %v3941_v35 = vpop.permute.xlu0 %386 }
 0x45a   :  { %v413_v36 = vrot.slane %v3941_v35, %v3918_v45  ;;  %v3945_v37 = vpop.permute.xlu1 %391 }
 0x45b   :  { %v417_v38 = vrot.slane %v3945_v37, %v3918_v45 }
 0x45d   :  { %v418_v39 = vsel %vm360_vm3, %v417_v38, %v413_v36  ;;  %v3113_v38 = vld [vmem:[#allocation16 + $0xa0] ss:$16 sps:$4 sm:$0xff]  }
 0x45e   :  { %v420_v40 = vsel %vm363_vm4, %v418_v39, 0.0  ;;  %v3116_v39 = vld [vmem:[#allocation16 + $0xa8] ss:$16 sps:$4 sm:$0xff]  }
 0x45f   :  { %421 = vadd.xlane.f32.xlu0 %v420_v40  ;;  %v2634_v40 = vld [vmem:[#allocation3] sm:$0x1]  ;;  %2513 = vmatpush1.bf16.msra.mxu0 %v3116_v39 }
 0x460   :  { %2514 = vmatprep.subr.bf16.mxu0 %v3124_v42  ;;  %v3184_v42 = vld [vmem:[#allocation16 + $0x20c] ss:$16 sps:$4 sm:$0xff]  }
 0x463   :  { %2515 = vmatpush1.bf16.msra.mxu0 %v3122_v44  ;;  %v3638_v44 = vmov 1935823168  }
 0x464   :  { %2516 = vmatprep.subr.bf16.mxu0 %v3130_v47 }
 0x467   :  { %2517 = vmatpush1.bf16.msra.mxu0 %v3128_v49 }
 0x4a0   :  { %v3951_v50 = vpop.permute.xlu1 %696 }
 0x4a1   :  { %v723_v52 = vrot.slane %v3951_v50, %v3918_v45 }
 0x4a4   :  { %v3953_v51 = vpop.permute.xlu1 %701 }
 0x4a5   :  { %v727_v11 = vrot.slane %v3953_v51, %v3918_v45 }
 0x4a7   :  { %v728_v53 = vsel %vm360_vm3, %v727_v11, %v723_v52  ;;  %v3133_v52 = vld [vmem:[#allocation16 + $0x104] ss:$16 sps:$4 sm:$0xff]   ;;  %v3136_v11 = vld [vmem:[#allocation16 + $0x10c] ss:$16 sps:$4 sm:$0xff]  }
 0x4a8   :  { %v730_v54 = vsel %vm363_vm4, %v728_v53, 0.0  ;;  %v3131_v53 = vld [vmem:[#allocation16 + $0x100] ss:$16 sps:$4 sm:$0xff]   ;;  %2518 = vmatprep.subr.bf16.mxu0 %v3136_v11 }
 0x4a9   :  { %731 = vadd.xlane.f32.xlu1 %v730_v54  ;;  %v3961_v55 = vpop.permute.xlu1 %1005  ;;  %v3134_v54 = vld [vmem:[#allocation16 + $0x108] ss:$16 sps:$4 sm:$0xff]  }
 0x4aa   :  { %v1032_v57 = vrot.slane %v3961_v55, %v3918_v45  ;;  %2519 = vmatpush1.bf16.msra.mxu0 %v3134_v54 }
 0x4ad   :  { %v3963_v56 = vpop.permute.xlu1 %1010 }
 0x4ae   :  { %v1036_v58 = vrot.slane %v3963_v56, %v3918_v45  ;;  %v3974_v45 = vsub.s32 %v436_v1, %v3872_v12  ;;  %v3148_v1 = vld [vmem:[#allocation16 + $0x14c] ss:$16 sps:$4 sm:$0xff]  }
 0x4b0   :  { %v1037_v59 = vsel %vm360_vm3, %v1036_v58, %v1032_v57  ;;  %v3139_v57 = vld [vmem:[#allocation16 + $0x124] ss:$16 sps:$4 sm:$0xff]   ;;  %v3142_v58 = vld [vmem:[#allocation16 + $0x12c] ss:$16 sps:$4 sm:$0xff]  }
 0x4b1   :  { %v299_v60 = vpop.permute.xlu1 %298  ;;  %v1039_v61 = vsel %vm363_vm4, %v1037_v59, 0.0  ;;  %v3137_v59 = vld [vmem:[#allocation16 + $0x120] ss:$16 sps:$4 sm:$0xff]   ;;  %2520 = vmatprep.subr.bf16.mxu0 %v3142_v58 }
 0x4b2   :  { %1040 = vadd.xlane.f32.xlu0 %v1039_v61  ;;  %v301_v2 = vadd.f32 %v299_v60, %v3886_v25  ;;  %v3140_v60 = vld [vmem:[#allocation16 + $0x128] ss:$16 sps:$4 sm:$0xff]  }
 0x4b3   :  { %v3403_v61 = vld [vmem:[#allocation4] sm:$0xff]   ;;  %2521 = vmatpush1.bf16.msra.mxu0 %v3140_v60 }
 0x4b4   :  { %v302_v8 = vmax.f32 %v301_v2, 0.0  ;;  %v3983_v62 = vunpack.c.l.bf16 %v3403_v61  ;;  %v3985_v63 = vunpack.c.h.bf16 %v3403_v61  ;;  %v3143_v2 = vld [vmem:[#allocation16 + $0x140] ss:$16 sps:$4 sm:$0xff]   ;;  %2522 = vmatprep.subr.bf16.mxu0 %v3148_v1 }
 0x4b5   :  { %v592_v0 = vpop.permute.xlu1 %591 }
 0x4b6   :  { %v594_v3 = vadd.f32 %v592_v0, %v3880_v15  ;;  %v3103_v15 = vld [vmem:[#allocation16 + $0x64] ss:$16 sps:$4 sm:$0xff]   ;;  %v512_v20 = vpack.c.bf16 %v302_v8, %v302_v8  ;;  %v3149_v8 = vld [vmem:[#allocation16 + $0x160] ss:$16 sps:$4 sm:$0xff]  }
 0x4b7   :  { %2385 = vmatprep.subr.bf16.mxu1 %v3103_v15  ;;  %v3145_v0 = vld [vmem:[#allocation16 + $0x144] ss:$16 sps:$4 sm:$0xff]   ;;  %v3158_v15 = vld [vmem:[#allocation16 + $0x188] ss:$16 sps:$4 sm:$0xff]  }
 0x4b8   :  { %v595_v4 = vmax.f32 %v594_v3, 0.0  ;;  %2386 = vmatpush1.bf16.msra.mxu1 %v3101_v23  ;;  %v520_v28 = vrot.slane %v512_v20, %v3974_v45  ;;  %v3146_v3 = vld [vmem:[#allocation16 + $0x148] ss:$16 sps:$4 sm:$0xff]   ;;  %v3163_v20 = vld [vmem:[#allocation16 + $0x1a4] ss:$16 sps:$4 sm:$0xff]  }
 0x4b9   :  { %v901_v5 = vpop.permute.xlu1 %900  ;;  %2387 = vmatprep.subr.bf16.mxu1 %v3109_v26  ;;  %2523 = vmatpush1.bf16.msra.mxu0 %v3146_v3  ;;  %v3169_v23 = vld [vmem:[#allocation16 + $0x1c4] ss:$16 sps:$4 sm:$0xff]  }
 0x4ba   :  { %v821_v9 = vpack.c.bf16 %v595_v4, %v595_v4  ;;  %v903_v10 = vadd.f32 %v901_v5, %v3888_v29  ;;  %v527_v36 = vrot.slane %v520_v28, %v3974_v45  ;;  %v394_v4 = vmul.f32 %v3941_v35, %v3983_v62  ;;  %2524 = vmatprep.subr.bf16.mxu0 %v3154_v7  ;;  %v3157_v35 = vld [vmem:[#allocation16 + $0x184] ss:$16 sps:$4 sm:$0xff]   ;;  %v3170_v28 = vld [vmem:[#allocation16 + $0x1c8] ss:$16 sps:$4 sm:$0xff]  }
 0x4bb   :  { %v395_v5 = vmul.f32 %v3945_v37, %v3985_v63 }
 0x4bc   :  { %v829_v18 = vrot.slane %v821_v9, %v3974_v45  ;;  %v904_v25 = vmax.f32 %v903_v10, 0.0  ;;  %2388 = vmatpush1.bf16.msra.mxu1 %v3107_v31  ;;  %v3152_v9 = vld [vmem:[#allocation16 + $0x168] ss:$16 sps:$4 sm:$0xff]   ;;  %v396_v10 = vsel %vm184_vm2, %v394_v4, 0.0 }
 0x4bd   :  { %2389 = vmatprep.subr.bf16.mxu1 %v3115_v33  ;;  %v403_v16 = vsel %vm184_vm2, %v395_v5, 0.0  ;;  %2525 = vmatpush1.bf16.msra.mxu0 %v3152_v9 }
 0x4be   :  { %v1130_v21 = vpack.c.bf16 %v904_v25, %v904_v25  ;;  %v836_v22 = vrot.slane %v829_v18, %v3974_v45  ;;  %v397_v18 = vrot.slane %v396_v10, 4  ;;  %v3155_v25 = vld [vmem:[#allocation16 + $0x180] ss:$16 sps:$4 sm:$0xff]   ;;  %2526 = vmatprep.subr.bf16.mxu0 %v3160_v17  ;;  %v404_v37 = vrot.slane %v403_v16, 4 }
 0x4c0   :  { %v1138_v29 = vrot.slane %v1130_v21, %v3974_v45  ;;  %837 = vrot.lane.b32.xlu1 %v836_v22, %s3637_s10  ;;  %2390 = vmatpush1.bf16.msra.mxu1 %v3113_v38  ;;  %v3164_v21 = vld [vmem:[#allocation16 + $0x1a8] ss:$16 sps:$4 sm:$0xff]   ;;  %v3166_v22 = vld [vmem:[#allocation16 + $0x1ac] ss:$16 sps:$4 sm:$0xff]   ;;  %v398_v24 = vadd.f32 %v397_v18, %v396_v10  ;;  %v405_v26 = vadd.f32 %v404_v37, %v403_v16 }
 0x4c1   :  { %2391 = vmatprep.subr.bf16.mxu1 %v3121_v41  ;;  %2527 = vmatpush1.bf16.msra.mxu0 %v3158_v15  ;;  %v3176_v38 = vld [vmem:[#allocation16 + $0x1e8] ss:$16 sps:$4 sm:$0xff]   ;;  %v3181_v41 = vld [vmem:[#allocation16 + $0x204] ss:$16 sps:$4 sm:$0xff]   ;;  %v704_v18 = vmul.f32 %v3951_v50, %v3983_v62 }
 0x4c2   :  { %v1145_v30 = vrot.slane %v1138_v29, %v3974_v45  ;;  %v3172_v29 = vld [vmem:[#allocation16 + $0x1cc] ss:$16 sps:$4 sm:$0xff]   ;;  %2528 = vmatprep.subr.bf16.mxu0 %v3166_v22  ;;  %v399_v31 = vrot.slane %v398_v24, 2  ;;  %v406_v33 = vrot.slane %v405_v26, 2 }
 0x4c3   :  { %v706_v15 = vsel %vm184_vm2, %v704_v18, 0.0 }
 0x4c4   :  { %1146 = vrot.lane.b32.xlu1 %v1145_v30, %s3637_s10  ;;  %2392 = vmatpush1.bf16.msra.mxu1 %v3119_v43  ;;  %v3175_v30 = vld [vmem:[#allocation16 + $0x1e4] ss:$16 sps:$4 sm:$0xff]   ;;  %v400_v39 = vadd.f32 %v399_v31, %v398_v24 }
 0x4c5   :  { %2393 = vmatprep.subr.bf16.mxu1 %v3127_v46  ;;  %2529 = vmatpush1.bf16.msra.mxu0 %v3164_v21  ;;  %v463_v46 = vunpack.c.l.s4 %v3638_v44  ;;  %v1013_v21 = vmul.f32 %v3961_v55, %v3983_v62 }
 0x4c6   :  { %2530 = vmatprep.subr.bf16.mxu0 %v3172_v29  ;;  %v401_v43 = vrot.slane %v400_v39, 1 }
 0x4c7   :  { %v1015_v29 = vsel %vm184_vm2, %v1013_v21, 0.0 }
 0x4c8   :  { %528 = vrot.lane.b32.xlu0 %v527_v36, %s3637_s10  ;;  %2394 = vmatpush1.bf16.msra.mxu1 %v3125_v48  ;;  %v3173_v36 = vld [vmem:[#allocation16 + $0x1e0] ss:$16 sps:$4 sm:$0xff]   ;;  %v402_v48 = vadd.f32 %v401_v43, %v400_v39 }
 0x4c9   :  { %2395 = vmatprep.subr.bf16.mxu1 %v3133_v52  ;;  %2531 = vmatpush1.bf16.msra.mxu0 %v3170_v28  ;;  %v464_v52 = vunpack.c.0.s8 %v463_v46 }
 0x4ca   :  { %2532 = vmatprep.subr.bf16.mxu0 %v3178_v32 }
 0x4cc   :  { %2637 = vperm.xlu0 %3075, %v2634_v40   ;;  %2396 = vmatpush1.bf16.msra.mxu1 %v3131_v53  ;;  %v407_v40 = vadd.f32 %v406_v33, %v405_v26 }
 0x4cd   :  { %2397 = vmatprep.subr.bf16.mxu1 %v3139_v57  ;;  %2533 = vmatpush1.bf16.msra.mxu0 %v3176_v38 }
 0x4ce   :  { %2543 = vmatprep.subr.bf16.mxu0 %v3184_v42  ;;  %v408_v47 = vrot.slane %v407_v40, 1 }
 0x4d0   :  { %2398 = vmatpush1.bf16.msra.mxu1 %v3137_v59  ;;  %v409_v11 = vadd.f32 %v408_v47, %v407_v40  ;;  %v3994_v59 = vsub.s32 %v464_v52, %v3872_v12 }
 0x4d1   :  { %2399 = vmatprep.subr.bf16.mxu1 %v3145_v0 }
 0x4d4   :  { %2400 = vmatpush1.bf16.msra.mxu1 %v3143_v2 }
 0x4d5   :  { %2401 = vmatprep.subr.bf16.mxu1 %v3151_v6 }
 0x4d8   :  { %2402 = vmatpush1.bf16.msra.mxu1 %v3149_v8 }
 0x4d9   :  { %2403 = vmatprep.subr.bf16.mxu1 %v3157_v35 }
 0x4dc   :  { %2404 = vmatpush1.bf16.msra.mxu1 %v3155_v25  ;;  %v705_v25 = vmul.f32 %v3953_v51, %v3985_v63  ;;  %v1016_v51 = vrot.slane %v1015_v29, 4 }
 0x4dd   :  { %2405 = vmatprep.subr.bf16.mxu1 %v3163_v20 }
 0x4de   :  { %v713_v37 = vsel %vm184_vm2, %v705_v25, 0.0  ;;  %v1017_v32 = vadd.f32 %v1016_v51, %v1015_v29 }
 0x4df   :  { %v714_v20 = vrot.slane %v713_v37, 4 }
 0x4e0   :  { %2406 = vmatpush1.bf16.msra.mxu1 %v3161_v19  ;;  %v707_v19 = vrot.slane %v706_v15, 4 }
 0x4e1   :  { %2407 = vmatprep.subr.bf16.mxu1 %v3169_v23  ;;  %v1014_v23 = vmul.f32 %v3963_v56, %v3985_v63  ;;  %v715_v24 = vadd.f32 %v714_v20, %v713_v37  ;;  %v1018_v56 = vrot.slane %v1017_v32, 2 }
 0x4e2   :  { %v708_v22 = vadd.f32 %v707_v19, %v706_v15 }
 0x4e3   :  { %v1022_v26 = vsel %vm184_vm2, %v1014_v23, 0.0  ;;  %v1019_v42 = vadd.f32 %v1018_v56, %v1017_v32  ;;  %v3179_v56 = vld [vmem:[#allocation16 + $0x200] ss:$16 sps:$4 sm:$0xff]  }
 0x4e4   :  { %2408 = vmatpush1.bf16.msra.mxu1 %v3167_v27  ;;  %v709_v50 = vrot.slane %v708_v22, 2  ;;  %v716_v27 = vrot.slane %v715_v24, 2 }
 0x4e5   :  { %2409 = vmatprep.subr.bf16.mxu1 %v3175_v30  ;;  %v1023_v30 = vrot.slane %v1022_v26, 4 }
 0x4e6   :  { %v710_v31 = vadd.f32 %v709_v50, %v708_v22  ;;  %v717_v33 = vadd.f32 %v716_v27, %v715_v24 }
 0x4e7   :  { %v1024_v55 = vadd.f32 %v1023_v30, %v1022_v26 }
 0x4e8   :  { %2410 = vmatpush1.bf16.msra.mxu1 %v3173_v36  ;;  %v711_v62 = vrot.slane %v710_v31, 1  ;;  %v718_v63 = vrot.slane %v717_v33, 1 }
 0x4e9   :  { %2420 = vmatprep.subr.bf16.mxu1 %v3181_v41  ;;  %v1025_v38 = vrot.slane %v1024_v55, 2 }
 0x4ea   :  { %v712_v40 = vadd.f32 %v711_v62, %v710_v31  ;;  %v719_v43 = vadd.f32 %v718_v63, %v717_v33  ;;  %v3182_v63 = vld [vmem:[#allocation16 + $0x208] ss:$16 sps:$4 sm:$0xff]  }
 0x4eb   :  { %v1026_v47 = vadd.f32 %v1025_v38, %v1024_v55 }
 0x4ec   :  { %v422_v34 = vpop.xlane.xlu0 %421 }
 0x4ed   :  { %3397 = vrcp.f32 %v422_v34 }
 0x4f7   :  { %v3398_v49 = vpop.eup %3397 }
 0x4f8   :  { %v425_v53 = vrot.slane %v3398_v49, 1  ;;  %v428_v54 = vmul.f32 %v3398_v49, %v402_v48 }
 0x4fa   :  { %v429_v57 = vmul.f32 %v425_v53, %v409_v11  ;;  %v430_v58 = vpack.c.bf16 %v428_v54, %v428_v54  ;;  %v1020_v11 = vrot.slane %v1019_v42, 1 }
 0x4fc   :  { %v431_v60 = vpack.c.bf16 %v429_v57, %v429_v57  ;;  %v440_v61 = vrot.slane %v430_v58, %v3974_v45  ;;  %v1027_v57 = vrot.slane %v1026_v47, 1 }
 0x4fe   :  { %v447_v0 = vrot.slane %v440_v61, %v3974_v45  ;;  %v454_v1 = vrot.slane %v431_v60, %v3974_v45  ;;  %v1021_v61 = vadd.f32 %v1020_v11, %v1019_v42  ;;  %v3188_v42 = vld [vmem:[#allocation16 + $0x228] ss:$16 sps:$4 sm:$0xff]  }
 0x4ff   :  { %v3200_v11 = vld [vmem:[#allocation16 + $0x268] ss:$16 sps:$4 sm:$0xff]  }
 0x500   :  { %v461_v2 = vrot.slane %v454_v1, %v3974_v45  ;;  %v468_v3 = vrot.slane %v447_v0, %v3994_v59 }
 0x502   :  { %v482_v4 = vrot.slane %v461_v2, %v3994_v59  ;;  %v475_v5 = vrot.slane %v468_v3, %v3994_v59  ;;  %v1028_v3 = vadd.f32 %v1027_v57, %v1026_v47  ;;  %v3194_v47 = vld [vmem:[#allocation16 + $0x248] ss:$16 sps:$4 sm:$0xff]   ;;  %v3203_v57 = vld [vmem:[#allocation16 + $0x280] ss:$16 sps:$4 sm:$0xff]  }
 0x504   :  { %v489_v6 = vrot.slane %v482_v4, %v3994_v59  ;;  %v490_v8 = vunpack.c.l.b16 %v475_v5 }
 0x506   :  { %v491_v7 = vunpack.c.l.b16 %v489_v6 }
 0x508   :  { %v492_v9 = vrot.slane %v491_v7, 7 }
 0x50a   :  { %v493_v10 = vsel %vm360_vm3, %v492_v9, %v490_v8 }
 0x50b   :  { %v494_v16 = vpack.c.b16 %v493_v10, %v493_v10 }
 0x50d   :  { %v501_v35 = vrot.slane %v494_v16, %v3974_v45 }
 0x50f   :  { %v508_v17 = vrot.slane %v501_v35, %v3974_v45 }
 0x511   :  { %511 = vst.msk [vmem:[#allocation2] sm:$0x1] %vm510_vm5, %v508_v17 }
 0x536   :  { %v732_v28 = vpop.xlane.xlu1 %731 }
 0x537   :  { %3399 = vrcp.f32 %v732_v28 }
 0x53a   :  { %v838_v34 = vpop.permute.xlu1 %837 }
 0x53b   :  { %840 = vst.msk [vmem:[#allocation2 + $0x3] sm:$0x1] %vm510_vm5, %v838_v34 }
 0x53e   :  { %v1147_v36 = vpop.permute.xlu1 %1146 }
 0x53f   :  { %1149 = vst.msk [vmem:[#allocation2 + $0x5] sm:$0x1] %vm510_vm5, %v1147_v36  ;;  %v1041_v39 = vpop.xlane.xlu0 %1040 }
 0x540   :  { %3401 = vrcp.f32 %v1041_v39  ;;  %v3187_v39 = vld [vmem:[#allocation16 + $0x224] ss:$16 sps:$4 sm:$0xff]  }
 0x541   :  { %v3400_v41 = vpop.eup %3399 }
 0x542   :  { %v735_v44 = vrot.slane %v3400_v41, 1  ;;  %v738_v46 = vmul.f32 %v3400_v41, %v712_v40  ;;  %v3190_v40 = vld [vmem:[#allocation16 + $0x22c] ss:$16 sps:$4 sm:$0xff]   ;;  %v3185_v41 = vld [vmem:[#allocation16 + $0x220] ss:$16 sps:$4 sm:$0xff]  }
 0x543   :  { %v529_v48 = vpop.permute.xlu0 %528 }
 0x544   :  { %v739_v49 = vmul.f32 %v735_v44, %v719_v43  ;;  %v740_v52 = vpack.c.bf16 %v738_v46, %v738_v46  ;;  %531 = vst.msk [vmem:[#allocation2 + $0x1] sm:$0x1] %vm510_vm5, %v529_v48  ;;  %v3193_v43 = vld [vmem:[#allocation16 + $0x244] ss:$16 sps:$4 sm:$0xff]   ;;  %v3196_v44 = vld [vmem:[#allocation16 + $0x24c] ss:$16 sps:$4 sm:$0xff]  }
 0x545   :  { %v3191_v46 = vld [vmem:[#allocation16 + $0x240] ss:$16 sps:$4 sm:$0xff]   ;;  %v3199_v48 = vld [vmem:[#allocation16 + $0x264] ss:$16 sps:$4 sm:$0xff]  }
 0x546   :  { %v741_v53 = vpack.c.bf16 %v739_v49, %v739_v49  ;;  %v750_v54 = vrot.slane %v740_v52, %v3974_v45  ;;  %v3202_v49 = vld [vmem:[#allocation16 + $0x26c] ss:$16 sps:$4 sm:$0xff]   ;;  %v3197_v52 = vld [vmem:[#allocation16 + $0x260] ss:$16 sps:$4 sm:$0xff]  }
 0x548   :  { %v757_v58 = vrot.slane %v750_v54, %v3974_v45  ;;  %v764_v60 = vrot.slane %v741_v53, %v3974_v45  ;;  %v3205_v53 = vld [vmem:[#allocation16 + $0x284] ss:$16 sps:$4 sm:$0xff]   ;;  %v3208_v54 = vld [vmem:[#allocation16 + $0x28c] ss:$16 sps:$4 sm:$0xff]  }
 0x54a   :  { %v3402_v0 = vpop.eup %3401  ;;  %v771_v1 = vrot.slane %v764_v60, %v3974_v45  ;;  %v778_v2 = vrot.slane %v757_v58, %v3994_v59  ;;  %v3206_v58 = vld [vmem:[#allocation16 + $0x288] ss:$16 sps:$4 sm:$0xff]   ;;  %v3211_v60 = vld [vmem:[#allocation16 + $0x2a4] ss:$16 sps:$4 sm:$0xff]  }
 0x54b   :  { %v1044_v4 = vrot.slane %v3402_v0, 1  ;;  %v1047_v5 = vmul.f32 %v3402_v0, %v1021_v61  ;;  %v3214_v61 = vld [vmem:[#allocation16 + $0x2ac] ss:$16 sps:$4 sm:$0xff]   ;;  %v3209_v0 = vld [vmem:[#allocation16 + $0x2a0] ss:$16 sps:$4 sm:$0xff]  }
 0x54c   :  { %v792_v6 = vrot.slane %v771_v1, %v3994_v59  ;;  %v785_v9 = vrot.slane %v778_v2, %v3994_v59  ;;  %v3212_v1 = vld [vmem:[#allocation16 + $0x2a8] ss:$16 sps:$4 sm:$0xff]   ;;  %v3217_v2 = vld [vmem:[#allocation16 + $0x2c4] ss:$16 sps:$4 sm:$0xff]  }
 0x54d   :  { %v1048_v7 = vmul.f32 %v1044_v4, %v1028_v3  ;;  %v1049_v8 = vpack.c.bf16 %v1047_v5, %v1047_v5  ;;  %v3220_v3 = vld [vmem:[#allocation16 + $0x2cc] ss:$16 sps:$4 sm:$0xff]   ;;  %v3215_v4 = vld [vmem:[#allocation16 + $0x2c0] ss:$16 sps:$4 sm:$0xff]   ;;  %v3218_v5 = vld [vmem:[#allocation16 + $0x2c8] ss:$16 sps:$4 sm:$0xff]  }
 0x54e   :  { %v799_v10 = vrot.slane %v792_v6, %v3994_v59  ;;  %v800_v15 = vunpack.c.l.b16 %v785_v9  ;;  %v3223_v6 = vld [vmem:[#allocation16 + $0x2e4] ss:$16 sps:$4 sm:$0xff]   ;;  %v3224_v9 = vld [vmem:[#allocation16 + $0x2e8] ss:$16 sps:$4 sm:$0xff]  }
 0x54f   :  { %v1050_v16 = vpack.c.bf16 %v1048_v7, %v1048_v7  ;;  %v1059_v35 = vrot.slane %v1049_v8, %v3974_v45  ;;  %v3226_v7 = vld [vmem:[#allocation16 + $0x2ec] ss:$16 sps:$4 sm:$0xff]   ;;  %v3221_v8 = vld [vmem:[#allocation16 + $0x2e0] ss:$16 sps:$4 sm:$0xff]  }
 0x550   :  { %v801_v17 = vunpack.c.l.b16 %v799_v10  ;;  %v3229_v10 = vld [vmem:[#allocation16 + $0x304] ss:$16 sps:$4 sm:$0xff]  }
 0x551   :  { %v1066_v18 = vrot.slane %v1059_v35, %v3974_v45  ;;  %v1073_v25 = vrot.slane %v1050_v16, %v3974_v45  ;;  %v3232_v16 = vld [vmem:[#allocation16 + $0x30c] ss:$16 sps:$4 sm:$0xff]   ;;  %v3227_v35 = vld [vmem:[#allocation16 + $0x300] ss:$16 sps:$4 sm:$0xff]  }
 0x552   :  { %v802_v37 = vrot.slane %v801_v17, 7  ;;  %v3230_v17 = vld [vmem:[#allocation16 + $0x308] ss:$16 sps:$4 sm:$0xff]  }
 0x553   :  { %v1080_v19 = vrot.slane %v1073_v25, %v3974_v45  ;;  %v1087_v20 = vrot.slane %v1066_v18, %v3994_v59  ;;  %v3235_v18 = vld [vmem:[#allocation16 + $0x324] ss:$16 sps:$4 sm:$0xff]   ;;  %v3238_v25 = vld [vmem:[#allocation16 + $0x32c] ss:$16 sps:$4 sm:$0xff]  }
 0x554   :  { %v803_v21 = vsel %vm360_vm3, %v802_v37, %v800_v15  ;;  %v3233_v15 = vld [vmem:[#allocation16 + $0x320] ss:$16 sps:$4 sm:$0xff]   ;;  %v3236_v37 = vld [vmem:[#allocation16 + $0x328] ss:$16 sps:$4 sm:$0xff]  }
 0x555   :  { %v804_v22 = vpack.c.b16 %v803_v21, %v803_v21  ;;  %v1101_v23 = vrot.slane %v1080_v19, %v3994_v59  ;;  %v1094_v29 = vrot.slane %v1087_v20, %v3994_v59  ;;  %v3241_v19 = vld [vmem:[#allocation16 + $0x344] ss:$16 sps:$4 sm:$0xff]   ;;  %v3244_v20 = vld [vmem:[#allocation16 + $0x34c] ss:$16 sps:$4 sm:$0xff]   ;;  %v3239_v21 = vld [vmem:[#allocation16 + $0x340] ss:$16 sps:$4 sm:$0xff]  }
 0x557   :  { %v811_v24 = vrot.slane %v804_v22, %v3974_v45  ;;  %v1108_v50 = vrot.slane %v1101_v23, %v3994_v59  ;;  %v1109_v27 = vunpack.c.l.b16 %v1094_v29  ;;  %v3242_v22 = vld [vmem:[#allocation16 + $0x348] ss:$16 sps:$4 sm:$0xff]   ;;  %v3247_v23 = vld [vmem:[#allocation16 + $0x364] ss:$16 sps:$4 sm:$0xff]   ;;  %v3245_v29 = vld [vmem:[#allocation16 + $0x360] ss:$16 sps:$4 sm:$0xff]  }
 0x559   :  { %v818_v26 = vrot.slane %v811_v24, %v3974_v45  ;;  %v1110_v51 = vunpack.c.l.b16 %v1108_v50  ;;  %v3250_v24 = vld [vmem:[#allocation16 + $0x36c] ss:$16 sps:$4 sm:$0xff]   ;;  %v3248_v50 = vld [vmem:[#allocation16 + $0x368] ss:$16 sps:$4 sm:$0xff]  }
 0x55b   :  { %820 = vst.msk [vmem:[#allocation2 + $0x2] sm:$0x1] %vm510_vm5, %v818_v26  ;;  %v1111_v28 = vrot.slane %v1110_v51, 7  ;;  %v3253_v26 = vld [vmem:[#allocation16 + $0x384] ss:$16 sps:$4 sm:$0xff]  }
 0x55c   :  { %v3256_v51 = vld [vmem:[#allocation16 + $0x38c] ss:$16 sps:$4 sm:$0xff]  }
 0x55d   :  { %v1112_v30 = vsel %vm360_vm3, %v1111_v28, %v1109_v27  ;;  %v3251_v27 = vld [vmem:[#allocation16 + $0x380] ss:$16 sps:$4 sm:$0xff]   ;;  %v3254_v28 = vld [vmem:[#allocation16 + $0x388] ss:$16 sps:$4 sm:$0xff]  }
 0x55e   :  { %v1113_v31 = vpack.c.b16 %v1112_v30, %v1112_v30  ;;  %v3259_v30 = vld [vmem:[#allocation16 + $0x3a4] ss:$16 sps:$4 sm:$0xff]  }
 0x560   :  { %v1120_v32 = vrot.slane %v1113_v31, %v3974_v45  ;;  %v3262_v31 = vld [vmem:[#allocation16 + $0x3ac] ss:$16 sps:$4 sm:$0xff]  }
 0x562   :  { %v1127_v33 = vrot.slane %v1120_v32, %v3974_v45  ;;  %v3257_v32 = vld [vmem:[#allocation16 + $0x3a0] ss:$16 sps:$4 sm:$0xff]  }
 0x564   :  { %1129 = vst.msk [vmem:[#allocation2 + $0x4] sm:$0x1] %vm510_vm5, %v1127_v33  ;;  %v3260_v33 = vld [vmem:[#allocation16 + $0x3a8] ss:$16 sps:$4 sm:$0xff]  }
 0x56b   :  { %v4047_v34 = vld [vmem:[#allocation2] sm:$0x3f] }
 0x56c   :  { %v1373_v59 = vrot.slane %v4047_v34, %v3974_v45 }
 0x56e   :  { %v1381_v55 = vcombine.high %v1373_v59, %v1373_v59  ;;  %v4053_v36 = vrot.slane %v1373_v59, %v3974_v45  ;;  %v3265_v59 = vld [vmem:[#allocation16 + $0x3c4] ss:$16 sps:$4 sm:$0xff]  }
 0x570   :  { %v1403_v62 = vrot.slane %v1381_v55, %v3974_v45  ;;  %v3268_v55 = vld [vmem:[#allocation16 + $0x3cc] ss:$16 sps:$4 sm:$0xff]  }
 0x572   :  { %2411 = vmatprep.mubr.bf16.mxu1 %v1403_v62  ;;  %2534 = vmatprep.mubr.bf16.mxu0 %v1403_v62  ;;  %v1412_v38 = vcombine.high %v1403_v62, %v1403_v62  ;;  %v1366_v62 = vcombine.high %v4047_v34, %v4047_v34 }
 0x573   :  { %2412 = vmatmul.mubr.bf16.vlgmr.msra.gmra.mrb[4].mxu1 %v4053_v36  ;;  %2535 = vmatmul.mubr.bf16.vlgmr.msra.gmra.mrb[12].mxu0 %v4053_v36 }
 0x574   :  { %2421 = vmatpush1.bf16.msra.mxu1 %v3179_v56  ;;  %2544 = vmatpush1.bf16.msra.mxu0 %v3182_v63  ;;  %v3263_v56 = vld [vmem:[#allocation16 + $0x3c0] ss:$16 sps:$4 sm:$0xff]   ;;  %v3266_v63 = vld [vmem:[#allocation16 + $0x3c8] ss:$16 sps:$4 sm:$0xff]  }
 0x575   :  { %2452 = vmatprep.mubr.bf16.mxu1 %v1412_v38  ;;  %2575 = vmatprep.mubr.bf16.mxu0 %v1412_v38  ;;  %v3271_v38 = vld [vmem:[#allocation16 + $0x3e4] ss:$16 sps:$4 sm:$0xff]  }
 0x576   :  { %2422 = vmatprep.subr.bf16.mxu1 %v3187_v39  ;;  %2545 = vmatprep.subr.bf16.mxu0 %v3190_v40  ;;  %v3274_v39 = vld [vmem:[#allocation16 + $0x3ec] ss:$16 sps:$4 sm:$0xff]   ;;  %v4060_v40 = vrot.slane %v1366_v62, %v3974_v45 }
 0x577   :  { %v3353_v62 = vld [vmem:[#allocation16 + $0x58c] ss:$16 sps:$4 sm:$0xff]  }
 0x578   :  { %2423 = vmatpush1.bf16.msra.mxu1 %v3185_v41  ;;  %2546 = vmatpush1.bf16.msra.mxu0 %v3188_v42  ;;  %v3269_v41 = vld [vmem:[#allocation16 + $0x3e0] ss:$16 sps:$4 sm:$0xff]   ;;  %v3272_v42 = vld [vmem:[#allocation16 + $0x3e8] ss:$16 sps:$4 sm:$0xff]   ;;  %v1382_v34 = vcombine.high %v4060_v40, %v4060_v40 }
 0x579   :  { %2424 = vmatprep.subr.bf16.mxu1 %v3193_v43  ;;  %2547 = vmatprep.subr.bf16.mxu0 %v3196_v44  ;;  %v3277_v43 = vld [vmem:[#allocation16 + $0x404] ss:$16 sps:$4 sm:$0xff]   ;;  %v3280_v44 = vld [vmem:[#allocation16 + $0x40c] ss:$16 sps:$4 sm:$0xff]  }
 0x57c   :  { %2425 = vmatpush1.bf16.msra.mxu1 %v3191_v46  ;;  %2548 = vmatpush1.bf16.msra.mxu0 %v3194_v47  ;;  %v3275_v46 = vld [vmem:[#allocation16 + $0x400] ss:$16 sps:$4 sm:$0xff]   ;;  %v1411_v47 = vcombine.high %v4053_v36, %v4053_v36 }
 0x57d   :  { %2426 = vmatprep.subr.bf16.mxu1 %v3199_v48  ;;  %2549 = vmatprep.subr.bf16.mxu0 %v3202_v49  ;;  %v3278_v48 = vld [vmem:[#allocation16 + $0x408] ss:$16 sps:$4 sm:$0xff]   ;;  %v1410_v49 = vrot.slane %v1382_v34, %v3974_v45  ;;  %v3288_v36 = vld [vmem:[#allocation16 + $0x440] ss:$16 sps:$4 sm:$0xff]  }
 0x57e   :  { %v3360_v34 = vld [vmem:[#allocation16 + $0x5c0] ss:$16 sps:$4 sm:$0xff]  }
 0x580   :  { %2427 = vmatpush1.bf16.msra.mxu1 %v3197_v52  ;;  %2550 = vmatpush1.bf16.msra.mxu0 %v3200_v11  ;;  %v3284_v52 = vld [vmem:[#allocation16 + $0x424] ss:$16 sps:$4 sm:$0xff]   ;;  %v3287_v11 = vld [vmem:[#allocation16 + $0x42c] ss:$16 sps:$4 sm:$0xff]  }
 0x581   :  { %2428 = vmatprep.subr.bf16.mxu1 %v3205_v53  ;;  %2551 = vmatprep.subr.bf16.mxu0 %v3208_v54  ;;  %v3282_v53 = vld [vmem:[#allocation16 + $0x420] ss:$16 sps:$4 sm:$0xff]   ;;  %v3285_v54 = vld [vmem:[#allocation16 + $0x428] ss:$16 sps:$4 sm:$0xff]  }
 0x584   :  { %2429 = vmatpush1.bf16.msra.mxu1 %v3203_v57  ;;  %2552 = vmatpush1.bf16.msra.mxu0 %v3206_v58  ;;  %v3290_v57 = vld [vmem:[#allocation16 + $0x444] ss:$16 sps:$4 sm:$0xff]   ;;  %v3293_v58 = vld [vmem:[#allocation16 + $0x44c] ss:$16 sps:$4 sm:$0xff]  }
 0x585   :  { %2430 = vmatprep.subr.bf16.mxu1 %v3211_v60  ;;  %2553 = vmatprep.subr.bf16.mxu0 %v3214_v61  ;;  %v3291_v60 = vld [vmem:[#allocation16 + $0x448] ss:$16 sps:$4 sm:$0xff]   ;;  %v3296_v61 = vld [vmem:[#allocation16 + $0x464] ss:$16 sps:$4 sm:$0xff]  }
 0x588   :  { %2431 = vmatpush1.bf16.msra.mxu1 %v3209_v0  ;;  %2554 = vmatpush1.bf16.msra.mxu0 %v3212_v1  ;;  %v3299_v0 = vld [vmem:[#allocation16 + $0x46c] ss:$16 sps:$4 sm:$0xff]   ;;  %v3294_v1 = vld [vmem:[#allocation16 + $0x460] ss:$16 sps:$4 sm:$0xff]  }
 0x589   :  { %2432 = vmatprep.subr.bf16.mxu1 %v3217_v2  ;;  %2555 = vmatprep.subr.bf16.mxu0 %v3220_v3  ;;  %v3297_v2 = vld [vmem:[#allocation16 + $0x468] ss:$16 sps:$4 sm:$0xff]   ;;  %v3302_v3 = vld [vmem:[#allocation16 + $0x484] ss:$16 sps:$4 sm:$0xff]  }
 0x58c   :  { %2433 = vmatpush1.bf16.msra.mxu1 %v3215_v4  ;;  %2556 = vmatpush1.bf16.msra.mxu0 %v3218_v5  ;;  %v3305_v4 = vld [vmem:[#allocation16 + $0x48c] ss:$16 sps:$4 sm:$0xff]   ;;  %v3300_v5 = vld [vmem:[#allocation16 + $0x480] ss:$16 sps:$4 sm:$0xff]  }
 0x58d   :  { %2434 = vmatprep.subr.bf16.mxu1 %v3223_v6  ;;  %2557 = vmatprep.subr.bf16.mxu0 %v3226_v7  ;;  %v3303_v6 = vld [vmem:[#allocation16 + $0x488] ss:$16 sps:$4 sm:$0xff]   ;;  %v3308_v7 = vld [vmem:[#allocation16 + $0x4a4] ss:$16 sps:$4 sm:$0xff]  }
 0x590   :  { %2435 = vmatpush1.bf16.msra.mxu1 %v3221_v8  ;;  %2558 = vmatpush1.bf16.msra.mxu0 %v3224_v9  ;;  %v3311_v8 = vld [vmem:[#allocation16 + $0x4ac] ss:$16 sps:$4 sm:$0xff]   ;;  %v3306_v9 = vld [vmem:[#allocation16 + $0x4a0] ss:$16 sps:$4 sm:$0xff]  }
 0x591   :  { %2436 = vmatprep.subr.bf16.mxu1 %v3229_v10  ;;  %2559 = vmatprep.subr.bf16.mxu0 %v3232_v16  ;;  %v3309_v10 = vld [vmem:[#allocation16 + $0x4a8] ss:$16 sps:$4 sm:$0xff]   ;;  %v3314_v16 = vld [vmem:[#allocation16 + $0x4c4] ss:$16 sps:$4 sm:$0xff]  }
 0x594   :  { %2437 = vmatpush1.bf16.msra.mxu1 %v3227_v35  ;;  %2560 = vmatpush1.bf16.msra.mxu0 %v3230_v17  ;;  %v3317_v35 = vld [vmem:[#allocation16 + $0x4cc] ss:$16 sps:$4 sm:$0xff]   ;;  %v3312_v17 = vld [vmem:[#allocation16 + $0x4c0] ss:$16 sps:$4 sm:$0xff]  }
 0x595   :  { %2438 = vmatprep.subr.bf16.mxu1 %v3235_v18  ;;  %2561 = vmatprep.subr.bf16.mxu0 %v3238_v25  ;;  %v3315_v18 = vld [vmem:[#allocation16 + $0x4c8] ss:$16 sps:$4 sm:$0xff]   ;;  %v3320_v25 = vld [vmem:[#allocation16 + $0x4e4] ss:$16 sps:$4 sm:$0xff]  }
 0x598   :  { %2439 = vmatpush1.bf16.msra.mxu1 %v3233_v15  ;;  %2562 = vmatpush1.bf16.msra.mxu0 %v3236_v37  ;;  %v3323_v15 = vld [vmem:[#allocation16 + $0x4ec] ss:$16 sps:$4 sm:$0xff]   ;;  %v3318_v37 = vld [vmem:[#allocation16 + $0x4e0] ss:$16 sps:$4 sm:$0xff]  }
 0x599   :  { %2440 = vmatprep.subr.bf16.mxu1 %v3241_v19  ;;  %2563 = vmatprep.subr.bf16.mxu0 %v3244_v20  ;;  %v3321_v19 = vld [vmem:[#allocation16 + $0x4e8] ss:$16 sps:$4 sm:$0xff]   ;;  %v3326_v20 = vld [vmem:[#allocation16 + $0x504] ss:$16 sps:$4 sm:$0xff]  }
 0x59c   :  { %2441 = vmatpush1.bf16.msra.mxu1 %v3239_v21  ;;  %2564 = vmatpush1.bf16.msra.mxu0 %v3242_v22  ;;  %v3329_v21 = vld [vmem:[#allocation16 + $0x50c] ss:$16 sps:$4 sm:$0xff]   ;;  %v3324_v22 = vld [vmem:[#allocation16 + $0x500] ss:$16 sps:$4 sm:$0xff]  }
 0x59d   :  { %2442 = vmatprep.subr.bf16.mxu1 %v3247_v23  ;;  %2565 = vmatprep.subr.bf16.mxu0 %v3250_v24  ;;  %v3327_v23 = vld [vmem:[#allocation16 + $0x508] ss:$16 sps:$4 sm:$0xff]   ;;  %v3332_v24 = vld [vmem:[#allocation16 + $0x524] ss:$16 sps:$4 sm:$0xff]  }
 0x5a0   :  { %2443 = vmatpush1.bf16.msra.mxu1 %v3245_v29  ;;  %2566 = vmatpush1.bf16.msra.mxu0 %v3248_v50  ;;  %v3335_v29 = vld [vmem:[#allocation16 + $0x52c] ss:$16 sps:$4 sm:$0xff]   ;;  %v3330_v50 = vld [vmem:[#allocation16 + $0x520] ss:$16 sps:$4 sm:$0xff]  }
 0x5a1   :  { %2444 = vmatprep.subr.bf16.mxu1 %v3253_v26  ;;  %2567 = vmatprep.subr.bf16.mxu0 %v3256_v51  ;;  %v3333_v26 = vld [vmem:[#allocation16 + $0x528] ss:$16 sps:$4 sm:$0xff]   ;;  %v3338_v51 = vld [vmem:[#allocation16 + $0x544] ss:$16 sps:$4 sm:$0xff]  }
 0x5a4   :  { %2445 = vmatpush1.bf16.msra.mxu1 %v3251_v27  ;;  %2568 = vmatpush1.bf16.msra.mxu0 %v3254_v28  ;;  %v3341_v27 = vld [vmem:[#allocation16 + $0x54c] ss:$16 sps:$4 sm:$0xff]   ;;  %v3336_v28 = vld [vmem:[#allocation16 + $0x540] ss:$16 sps:$4 sm:$0xff]  }
 0x5a5   :  { %2446 = vmatprep.subr.bf16.mxu1 %v3259_v30  ;;  %2569 = vmatprep.subr.bf16.mxu0 %v3262_v31  ;;  %v3339_v30 = vld [vmem:[#allocation16 + $0x548] ss:$16 sps:$4 sm:$0xff]   ;;  %v3344_v31 = vld [vmem:[#allocation16 + $0x564] ss:$16 sps:$4 sm:$0xff]  }
 0x5a8   :  { %2447 = vmatpush1.bf16.msra.mxu1 %v3257_v32  ;;  %2570 = vmatpush1.bf16.msra.mxu0 %v3260_v33  ;;  %v3347_v32 = vld [vmem:[#allocation16 + $0x56c] ss:$16 sps:$4 sm:$0xff]   ;;  %v3342_v33 = vld [vmem:[#allocation16 + $0x560] ss:$16 sps:$4 sm:$0xff]  }
 0x5a9   :  { %2448 = vmatprep.subr.bf16.mxu1 %v3265_v59  ;;  %2571 = vmatprep.subr.bf16.mxu0 %v3268_v55  ;;  %v3345_v59 = vld [vmem:[#allocation16 + $0x568] ss:$16 sps:$4 sm:$0xff]   ;;  %v3350_v55 = vld [vmem:[#allocation16 + $0x584] ss:$16 sps:$4 sm:$0xff]  }
 0x5ac   :  { %2449 = vmatpush1.bf16.msra.mxu1 %v3263_v56  ;;  %2572 = vmatpush1.bf16.msra.mxu0 %v3266_v63  ;;  %v3348_v56 = vld [vmem:[#allocation16 + $0x580] ss:$16 sps:$4 sm:$0xff]   ;;  %v3351_v63 = vld [vmem:[#allocation16 + $0x588] ss:$16 sps:$4 sm:$0xff]  }
 0x5ad   :  { %2450 = vmatprep.subr.bf16.mxu1 %v3271_v38  ;;  %2573 = vmatprep.subr.bf16.mxu0 %v3274_v39  ;;  %v3356_v38 = vld [vmem:[#allocation16 + $0x5a4] ss:$16 sps:$4 sm:$0xff]   ;;  %v3359_v39 = vld [vmem:[#allocation16 + $0x5ac] ss:$16 sps:$4 sm:$0xff]  }
 0x5b0   :  { %2451 = vmatpush1.bf16.msra.mxu1 %v3269_v41  ;;  %2574 = vmatpush1.bf16.msra.mxu0 %v3272_v42  ;;  %v3354_v41 = vld [vmem:[#allocation16 + $0x5a0] ss:$16 sps:$4 sm:$0xff]   ;;  %v3357_v42 = vld [vmem:[#allocation16 + $0x5a8] ss:$16 sps:$4 sm:$0xff]  }
 0x5b1   :  { %2461 = vmatprep.subr.bf16.mxu1 %v3277_v43  ;;  %2584 = vmatprep.subr.bf16.mxu0 %v3280_v44  ;;  %v3362_v43 = vld [vmem:[#allocation16 + $0x5c4] ss:$16 sps:$4 sm:$0xff]   ;;  %v3365_v44 = vld [vmem:[#allocation16 + $0x5cc] ss:$16 sps:$4 sm:$0xff]  }
 0x5b3   :  { %2453 = vmatmul.mubr.bf16.vlgmr.msra.gmra.mrb[4].mxu1 %v1411_v47  ;;  %2576 = vmatmul.mubr.bf16.vlgmr.msra.gmra.mrb[12].mxu0 %v1411_v47  ;;  %v3368_v47 = vld [vmem:[#allocation16 + $0x5e4] ss:$16 sps:$4 sm:$0xff]  }
 0x5b4   :  { %2462 = vmatpush1.bf16.msra.mxu1 %v3275_v46  ;;  %2493 = vmatprep.mubr.bf16.mxu1 %v1410_v49  ;;  %v3363_v46 = vld [vmem:[#allocation16 + $0x5c8] ss:$16 sps:$4 sm:$0xff]  }
 0x5b5   :  { %2585 = vmatpush1.bf16.msra.mxu0 %v3278_v48  ;;  %2616 = vmatprep.mubr.bf16.mxu0 %v1410_v49  ;;  %v3371_v48 = vld [vmem:[#allocation16 + $0x5ec] ss:$16 sps:$4 sm:$0xff]   ;;  %v3366_v49 = vld [vmem:[#allocation16 + $0x5e0] ss:$16 sps:$4 sm:$0xff]  }
 0x5b6   :  { %2463 = vmatprep.subr.bf16.mxu1 %v3284_v52  ;;  %2586 = vmatprep.subr.bf16.mxu0 %v3287_v11  ;;  %v3369_v52 = vld [vmem:[#allocation16 + $0x5e8] ss:$16 sps:$4 sm:$0xff]   ;;  %v1396_v11 = vrot.slane %v4060_v40, %v3974_v45 }
 0x5b8   :  { %2464 = vmatpush1.bf16.msra.mxu1 %v3282_v53  ;;  %v2988_v53 = vld.sshfl [vmem:[%s4107_s13] sm:$0x33 pattern:$0x75316420] }
 0x5b9   :  { %2587 = vmatpush1.bf16.msra.mxu0 %v3285_v54  ;;  %2465 = vmatprep.subr.bf16.mxu1 %v3290_v57  ;;  %v2652_v54 = vcombine.high %v2988_v53, %v2988_v53 }
 0x5ba   :  { %2588 = vmatprep.subr.bf16.mxu0 %v3293_v58  ;;  %v1343_v58 = vld [vmem:[%s4106_s12] sm:$0xf]  ;;  %s3639_s12 = smov [#allocation18]  }
 0x5bb   :  { %v2666_v57 = vrot.slane %v2652_v54, %v3974_v45  ;;  %v1352_v40 = vrot.slane %v1343_v58, %v3878_v14  ;;  %s2761_s13 = sshll.u32 %s3639_s12, 4  ;;  %s2762_s13 = int_to_ptr.vmem [resolvable:$true] %s2761_s13 }
 0x5bc   :  { %2466 = vmatpush1.bf16.msra.mxu1 %v3288_v36  ;;  %v1359_v36 = vsub.s32 3, %v3872_v12  ;;  %s3580_s0 = scalar_lea.vmem %s2762_s13, 16  ;;  %s3584_s24 = scalar_lea.vmem %s2762_s13, 32 }
 0x5bd   :  { %2589 = vmatpush1.bf16.msra.mxu0 %v3291_v60  ;;  %2467 = vmatprep.subr.bf16.mxu1 %v3296_v61  ;;  %v1348_v60 = vrot.slane %v1343_v58, %v3875_v13  ;;  %v1355_v61 = vsub.s32 2, %v3872_v12  ;;  %p3581_p8 = scmp.ne.s32.totalorder %s2762_s13, %s3580_s0  ;;  %p3585_p9 = scmp.lt.s32.totalorder %s2762_s13, %s2762_s13 }
 0x5be   :  { %2590 = vmatprep.subr.bf16.mxu0 %v3299_v0  ;;  %v1360_v0 = vrot.slane %v1343_v58, %v1359_v36  ;;  %p3586_p10 = scmp.lt.s32.totalorder %s3584_s24, %s3580_s0 }
 0x5c0   :  { %2468 = vmatpush1.bf16.msra.mxu1 %v3294_v1  ;;  %p3587_p11 = por %p3586_p10, %p3585_p9 }
 0x5c1   :  { %2591 = vmatpush1.bf16.msra.mxu0 %v3297_v2  ;;  %2469 = vmatprep.subr.bf16.mxu1 %v3302_v3 }
 0x5c2   :  { %2592 = vmatprep.subr.bf16.mxu0 %v3305_v4  ;;  %p3588_p12 = pnand %p3587_p11, %p3581_p8 }
 0x5c4   :  { %2470 = vmatpush1.bf16.msra.mxu1 %v3300_v5 }
 0x5c5   :  { %2593 = vmatpush1.bf16.msra.mxu0 %v3303_v6  ;;  %2471 = vmatprep.subr.bf16.mxu1 %v3308_v7 }
 0x5c6   :  { %2594 = vmatprep.subr.bf16.mxu0 %v3311_v8 }
 0x5c8   :  { %2472 = vmatpush1.bf16.msra.mxu1 %v3306_v9  ;;  %v1356_v9 = vrot.slane %v1343_v58, %v1355_v61 }
 0x5c9   :  { %2595 = vmatpush1.bf16.msra.mxu0 %v3309_v10  ;;  %2473 = vmatprep.subr.bf16.mxu1 %v3314_v16 }
 0x5ca   :  { %2596 = vmatprep.subr.bf16.mxu0 %v3317_v35 }
 0x5cc   :  { %2474 = vmatpush1.bf16.msra.mxu1 %v3312_v17 }
 0x5cd   :  { %2597 = vmatpush1.bf16.msra.mxu0 %v3315_v18  ;;  %2475 = vmatprep.subr.bf16.mxu1 %v3320_v25 }
 0x5ce   :  { %2598 = vmatprep.subr.bf16.mxu0 %v3323_v15 }
 0x5d0   :  { %2476 = vmatpush1.bf16.msra.mxu1 %v3318_v37 }
 0x5d1   :  { %2599 = vmatpush1.bf16.msra.mxu0 %v3321_v19  ;;  %2477 = vmatprep.subr.bf16.mxu1 %v3326_v20  ;;  %v2659_v20 = vrot.slane %v2988_v53, %v3974_v45 }
 0x5d2   :  { %2600 = vmatprep.subr.bf16.mxu0 %v3329_v21  ;;  %v2668_v21 = vcombine.high %v2666_v57, %v2666_v57 }
 0x5d4   :  { %2478 = vmatpush1.bf16.msra.mxu1 %v3324_v22 }
 0x5d5   :  { %2601 = vmatpush1.bf16.msra.mxu0 %v3327_v23  ;;  %2479 = vmatprep.subr.bf16.mxu1 %v3332_v24  ;;  %v2667_v23 = vcombine.high %v2659_v20, %v2659_v20  ;;  %v2638_v24 = vpop.permute.xlu0 %2637 }
 0x5d6   :  { %2602 = vmatprep.subr.bf16.mxu0 %v3335_v29  ;;  %v2643_v29 = vrot.slane %v2638_v24, %v3875_v13 }
 0x5d8   :  { %2480 = vmatpush1.bf16.msra.mxu1 %v3330_v50 }
 0x5d9   :  { %2603 = vmatpush1.bf16.msra.mxu0 %v3333_v26  ;;  %2481 = vmatprep.subr.bf16.mxu1 %v3338_v51 }
 0x5da   :  { %2604 = vmatprep.subr.bf16.mxu0 %v3341_v27 }
 0x5dc   :  { %2482 = vmatpush1.bf16.msra.mxu1 %v3336_v28 }
 0x5dd   :  { %2605 = vmatpush1.bf16.msra.mxu0 %v3339_v30  ;;  %2483 = vmatprep.subr.bf16.mxu1 %v3344_v31 }
 0x5de   :  { %2606 = vmatprep.subr.bf16.mxu0 %v3347_v32 }
 0x5e0   :  { %2484 = vmatpush1.bf16.msra.mxu1 %v3342_v33 }
 0x5e1   :  { %2607 = vmatpush1.bf16.msra.mxu0 %v3345_v59  ;;  %2485 = vmatprep.subr.bf16.mxu1 %v3350_v55 }
 0x5e2   :  { %2608 = vmatprep.subr.bf16.mxu0 %v3353_v62 }
 0x5e4   :  { %2486 = vmatpush1.bf16.msra.mxu1 %v3348_v56 }
 0x5e5   :  { %2609 = vmatpush1.bf16.msra.mxu0 %v3351_v63  ;;  %2487 = vmatprep.subr.bf16.mxu1 %v3356_v38 }
 0x5e6   :  { %2610 = vmatprep.subr.bf16.mxu0 %v3359_v39 }
 0x5e8   :  { %2488 = vmatpush1.bf16.msra.mxu1 %v3354_v41 }
 0x5e9   :  { %2611 = vmatpush1.bf16.msra.mxu0 %v3357_v42  ;;  %2489 = vmatprep.subr.bf16.mxu1 %v3362_v43 }
 0x5ea   :  { %2612 = vmatprep.subr.bf16.mxu0 %v3365_v44 }
 0x5ec   :  { %2490 = vmatpush1.bf16.msra.mxu1 %v3360_v34 }
 0x5ed   :  { %2613 = vmatpush1.bf16.msra.mxu0 %v3363_v46  ;;  %2491 = vmatprep.subr.bf16.mxu1 %v3368_v47 }
 0x5ee   :  { %2614 = vmatprep.subr.bf16.mxu0 %v3371_v48 }
 0x5f0   :  { %2492 = vmatpush1.bf16.msra.mxu1 %v3366_v49 }
 0x5f1   :  { %2615 = vmatpush1.bf16.msra.mxu0 %v3369_v52 }
 0x5f3   :  { %2494 = vmatmul.mubr.bf16.vlgmr.msra.gmra.mrb[4].mxu1 %v1396_v11 }
 0x5f4   :  { %2617 = vmatmul.mubr.bf16.vlgmr.msra.gmra.mrb[12].mxu0 %v1396_v11  ;;  %2705 = vmatprep.mubr.bf16.mxu1 %v2666_v57 }
 0x6c6   :  { %v2495_v1 = vpop.f32.mrb[4].mxu1 }
 0x6c7   :  { %v3024_v2 = vadd.f32 %v2495_v1, %v1348_v60  ;;  %v2618_v3 = vpop.f32.mrb[12].mxu0  ;;  %v2497_v4 = vpop.f32.mrb[5].mxu1 }
 0x6c8   :  { %v3025_v5 = vadd.f32 %v2497_v4, %v1352_v40  ;;  %v2620_v6 = vpop.f32.mrb[13].mxu0  ;;  %v2499_v7 = vpop.f32.mrb[6].mxu1  ;;  %v3026_v37 = vadd.f32 %v2618_v3, %v1356_v9 }
 0x6c9   :  { %v2625_v8 = vmax.f32 %v3024_v2, 0.0  ;;  %v3027_v10 = vadd.f32 %v2620_v6, %v1360_v0  ;;  %v2622_v16 = vpop.f32.mrb[14].mxu0  ;;  %v2500_v35 = vpop.f32.mrb[7].mxu1 }
 0x6ca   :  { %v2626_v17 = vmax.f32 %v3025_v5, 0.0  ;;  %v2623_v18 = vpop.f32.mrb[15].mxu0  ;;  %v2627_v19 = vmax.f32 %v3026_v37, 0.0 }
 0x6cb   :  { %v2628_v25 = vmax.f32 %v3027_v10, 0.0  ;;  %v2630_v14 = vpack.c.bf16 %v2625_v8, %v2625_v8 }
 0x6cc   :  { %v2631_v15 = vpack.c.bf16 %v2626_v17, %v2626_v17  ;;  %v2632_v22 = vpack.c.bf16 %v2627_v19, %v2627_v19 }
 0x6cd   :  { %v2633_v12 = vpack.c.bf16 %v2628_v25, %v2628_v25 }
 0x6ce   :  { %2673 = vmatprep.subr.bf16.mxu1 %v2631_v15 }
 0x6cf   :  { %2674 = vmatpush1.bf16.xpose.msra.mxu1 %v2630_v14 }
 0x6d0   :  { %2713 = vmatprep.subr.bf16.mxu1 %v2633_v12 }
 0x6d6   :  { %2706 = vmatmul.mubr.bf16.vlgmr.msra.gmra.mrb[8].mxu1 %v2659_v20 }
 0x6d7   :  { %2714 = vmatpush1.bf16.xpose.msra.mxu1 %v2632_v22  ;;  %2745 = vmatprep.mubr.bf16.mxu1 %v2668_v21 }
 0x6e2   :  { %2746 = vmatmul.mubr.bf16.vlgmr.msra.gmra.mrb[8].mxu1 %v2667_v23 }
 0x7b5   :  { %v2747_v50 = vpop.f32.mrb[8].mxu1 }
 0x7b6   :  { %v3028_v26 = vadd.f32 %v2747_v50, %v2643_v29  ;;  %v2749_v51 = vpop.f32.mrb[9].mxu1 }
 0x7b7   :  { %v2750_v27 = vpop.f32.mrb[10].mxu1 }
 0x7b8   :  { %v2751_v28 = vpop.f32.mrb[11].mxu1  ;;  %2754 = vst.msk [vmem:[#allocation18] sm:$0x1] %vm2753_vm6, %v3028_v26 }
 0x7b9   :  { %3591 = shalt.err (!%p3588_p12)
}
 0x7ba   :  { %s3592_s30 = scalar_lea.hbm %s4109_s15, 16 }
 0x7bb   :  { %p3593_p13 = scmp.ne.s32.totalorder %s4109_s15, %s3592_s30  ;;  %p3596_p0 = scmp.lt.u32.totalorder %s3592_s30, %s4109_s15 }
 0x7bd   :  { %p3598_p1 = pnand %p3596_p0, %p3593_p13 }
 0x7bf   :  { %3601 = shalt.err (!%p3598_p1)
}
 0x7c0   :  { %2764 = dma.vmem_to_hbm [thread:$0]  %s2762_s13, 16, %s4109_s15, [#allocation6]  }
 0x7c1   :  { %3612 = dma.done.wait [#allocation6], 16  }
 0x7c2   :  { %3613 = vsyncadd [#allocation6], 4294967280 }
 0x7c3   :  { %2768 = vsyncpa [#allocation5], 1 }
 0x7c4   :  { %2769 = vsyncpa [#allocation8], 1 }
 0x7c5   :  { %2770 = vsyncpa [#allocation11], 1 }
 0x7c6   :  { %2771 = vsyncpa [#allocation14], 1 }
 0x7c7   :  { %2772 = vsyncpa [#allocation17], 1 }
 0x7c8   :  { %2773 = vsyncpa [#allocation6], 1 }

// kernel: tpu_custom_call.1
= control target key start
LH: loop header
LB: loop body
LE: loop exit
PB: predicated region body
PF: predicated region fallthrough
CT: control target
= control target key end

     0   :  { %s4094_s0 = inlined_call_operand.hbm [shape: bf16[2,8,32], index: 0, kind: input, shape index: {}]   ;;  %s4095_s1 = inlined_call_operand.vmem [shape: bf16[2,16], index: 1, kind: input, shape index: {}]   ;;  %s4096_s2 = inlined_call_operand.vmem [shape: bf16[2,16], index: 2, kind: input, shape index: {}]   ;;  %s4097_s3 = inlined_call_operand.hbm [shape: bf16[2,16], index: 3, kind: input, shape index: {}]   ;;  %s4098_s4 = inlined_call_operand.hbm [shape: bf16[32,48], index: 4, kind: input, shape index: {}]   ;;  %s4099_s5 = inlined_call_operand.hbm [shape: f32[1,48], index: 5, kind: input, shape index: {}]   ;;  %s4100_s6 = inlined_call_operand.hbm [shape: f32[3,1,16], index: 6, kind: input, shape index: {}]   ;;  %s4101_s7 = inlined_call_operand.vmem [shape: f32[3,8,16], index: 7, kind: input, shape index: {}]   ;;  %s4102_s8 = inlined_call_operand.hbm [shape: f32[3,1,16], index: 8, kind: input, shape index: {}]   ;;  %s4103_s9 = inlined_call_operand.hbm [shape: bf16[3,16,40], index: 9, kind: input, shape index: {}]   ;;  %s4104_s10 = inlined_call_operand.vmem [shape: f32[1,96], index: 10, kind: input, shape index: {}]   ;;  %s4105_s11 = inlined_call_operand.hbm [shape: bf16[768,512], index: 11, kind: input, shape index: {}]   ;;  %s4106_s12 = inlined_call_operand.vmem [shape: f32[1,512], index: 12, kind: input, shape index: {}]   ;;  %s4107_s13 = inlined_call_operand.vmem [shape: bf16[1,512], index: 13, kind: input, shape index: {}]   ;;  %s4108_s14 = inlined_call_operand.<no memory space> [shape: f32[1,1], index: 14, kind: input, shape index: {}]   ;;  %s4109_s15 = inlined_call_operand.hbm [shape: f32[1,2], index: 15, kind: output, shape index: {}]  }
   0x1   :  { %v20_v0 = vstv %s4108_s14 }
   0x2   :  { %21 = vst [vmem:[#allocation3] sm:$0x1] %v20_v0 }
   0x3   :  { %22 = vsyncpa [#allocation5], 0 }
   0x4   :  { %23 = vsyncpa [#allocation8], 0 }
   0x5   :  { %24 = vsyncpa [#allocation11], 0 }
   0x6   :  { %25 = vsyncpa [#allocation14], 0 }
   0x7   :  { %26 = vsyncpa [#allocation17], 0 }
   0x8   :  { %27 = vsyncpa [#allocation6], 0  ;;  %s3614_s20 = smov [#allocation7]   ;;  %s3615_s22 = smov [#allocation10]  }
   0x9   :  { %s50_s21 = sshll.u32 %s3614_s20, 4  ;;  %s72_s23 = sshll.u32 %s3615_s22, 4  ;;  %s51_s21 = int_to_ptr.vmem [resolvable:$true] %s50_s21  ;;  %s73_s23 = int_to_ptr.vmem [resolvable:$true] %s72_s23 }
   0xa   :  { %s3404_s26 = scalar_lea.hbm %s4097_s3, 16 }
   0xb   :  { %p3405_p0 = scmp.ne.s32.totalorder %s4097_s3, %s3404_s26  ;;  %p3408_p1 = scmp.lt.u32.totalorder %s3404_s26, %s4097_s3 }
   0xd   :  { %p3410_p2 = pnand %p3408_p1, %p3405_p0 }
   0xf   :  { %3413 = shalt.err (!%p3410_p2)
}
  0x10   :  { %s3414_s30 = scalar_lea.vmem %s51_s21, 16  ;;  %s3418_s16 = scalar_lea.vmem %s51_s21, 32 }
  0x11   :  { %p3415_p3 = scmp.ne.s32.totalorder %s51_s21, %s3414_s30  ;;  %p3419_p4 = scmp.lt.s32.totalorder %s51_s21, %s51_s21 }
  0x12   :  { %p3420_p5 = scmp.lt.s32.totalorder %s3418_s16, %s3414_s30 }
  0x14   :  { %p3421_p6 = por %p3420_p5, %p3419_p4 }
  0x16   :  { %p3422_p7 = pnand %p3421_p6, %p3415_p3 }
  0x18   :  { %3425 = shalt.err (!%p3422_p7)
}
  0x19   :  { %53 = dma.hbm_to_vmem [thread:$0]  %s4097_s3, 16, %s51_s21, [#allocation8]  }
  0x1a   :  { %s3426_s22 = scalar_lea.hbm %s4099_s5, 16 }
  0x1b   :  { %p3427_p8 = scmp.ne.s32.totalorder %s4099_s5, %s3426_s22  ;;  %p3430_p9 = scmp.lt.u32.totalorder %s3426_s22, %s4099_s5 }
  0x1d   :  { %p3432_p10 = pnand %p3430_p9, %p3427_p8 }
  0x1f   :  { %3435 = shalt.err (!%p3432_p10)
}
  0x20   :  { %s3436_s28 = scalar_lea.vmem %s73_s23, 16  ;;  %s3440_s14 = scalar_lea.vmem %s73_s23, 32 }
  0x21   :  { %p3437_p11 = scmp.ne.s32.totalorder %s73_s23, %s3436_s28  ;;  %p3441_p12 = scmp.lt.s32.totalorder %s73_s23, %s73_s23 }
  0x22   :  { %p3442_p13 = scmp.lt.s32.totalorder %s3440_s14, %s3436_s28 }
  0x24   :  { %p3443_p0 = por %p3442_p13, %p3441_p12 }
  0x26   :  { %p3444_p1 = pnand %p3443_p0, %p3437_p11 }
  0x28   :  { %3447 = shalt.err (!%p3444_p1)
}
  0x29   :  { %75 = dma.hbm_to_vmem [thread:$0]  %s4099_s5, 16, %s73_s23, [#allocation11]  }
  0x2a   :  { %s3616_s29 = smov [#allocation13]   ;;  %s3617_s16 = smov [#allocation4]  }
  0x2b   :  { %s95_s30 = sshll.u32 %s3616_s29, 4  ;;  %s33_s17 = sshll.u32 %s3617_s16, 4  ;;  %s96_s30 = int_to_ptr.vmem [resolvable:$true] %s95_s30  ;;  %s3747_s17 = int_to_ptr.vmem [resolvable:$true] %s33_s17 }
  0x2c   :  { %s3448_s20 = scalar_lea.hbm %s4102_s8, 48 }
  0x2d   :  { %p3449_p2 = scmp.ne.s32.totalorder %s4102_s8, %s3448_s20  ;;  %p3452_p3 = scmp.lt.u32.totalorder %s3448_s20, %s4102_s8 }
  0x2f   :  { %p3454_p4 = pnand %p3452_p3, %p3449_p2 }
  0x31   :  { %3457 = shalt.err (!%p3454_p4)
}
  0x32   :  { %s3458_s5 = scalar_lea.vmem %s96_s30, 48  ;;  %s3462_s23 = scalar_lea.vmem %s96_s30, 64 }
  0x33   :  { %p3459_p5 = scmp.ne.s32.totalorder %s96_s30, %s3458_s5  ;;  %p3463_p6 = scmp.lt.s32.totalorder %s96_s30, %s96_s30 }
  0x34   :  { %p3464_p7 = scmp.lt.s32.totalorder %s3462_s23, %s3458_s5 }
  0x36   :  { %p3465_p8 = por %p3464_p7, %p3463_p6 }
  0x38   :  { %p3466_p9 = pnand %p3465_p8, %p3459_p5 }
  0x3a   :  { %3469 = shalt.err (!%p3466_p9)
}
  0x3b   :  { %s3618_s27 = smov 16   ;;  %s3619_s28 = smov 1  }
  0x3c   :  { %101 = dma.hbm_to_vmem [thread:$0]  %s4102_s8, 48, %s96_s30, [#allocation14], %s3618_s27, %s3618_s27, %s3619_s28  }
  0x3d   :  { %s3470_s16 = scalar_lea.hbm %s4094_s0, 128 }
  0x3e   :  { %p3471_p10 = scmp.ne.s32.totalorder %s4094_s0, %s3470_s16  ;;  %p3474_p11 = scmp.lt.u32.totalorder %s3470_s16, %s4094_s0 }
  0x40   :  { %p3476_p12 = pnand %p3474_p11, %p3471_p10 }
  0x42   :  { %3479 = shalt.err (!%p3476_p12)
}
  0x43   :  { %s3480_s24 = scalar_lea.vmem %s3747_s17, 128  ;;  %p3485_p0 = scmp.lt.s32.totalorder %s3747_s17, %s3747_s17 }
  0x44   :  { %p3481_p13 = scmp.ne.s32.totalorder %s3747_s17, %s3480_s24  ;;  %p3486_p1 = scmp.lt.s32.totalorder %s3480_s24, %s3480_s24 }
  0x46   :  { %p3487_p2 = por %p3486_p1, %p3485_p0 }
  0x48   :  { %p3488_p3 = pnand %p3487_p2, %p3481_p13 }
  0x4a   :  { %3491 = shalt.err (!%p3488_p3)
}
  0x4b   :  { %s3620_s8 = smov 64   ;;  %s3621_s30 = smov 4  }
  0x4c   :  { %39 = dma.hbm_to_vmem [thread:$0]  %s4094_s0, 128, %s3747_s17, [#allocation5], %s3620_s8, %s3620_s8, %s3621_s30  }
  0x4d   :  { %s3622_s5 = smov [#allocation9]   ;;  %s3623_s14 = smov [#allocation12]  }
  0x4e   :  { %s59_s23 = sshll.u32 %s3622_s5, 4  ;;  %s81_s3 = sshll.u32 %s3623_s14, 4  ;;  %s60_s23 = int_to_ptr.vmem [resolvable:$true] %s59_s23  ;;  %s3784_s3 = int_to_ptr.vmem [resolvable:$true] %s81_s3 }
  0x4f   :  { %s3492_s16 = scalar_lea.hbm %s4098_s4, 256 }
  0x50   :  { %p3493_p4 = scmp.ne.s32.totalorder %s4098_s4, %s3492_s16  ;;  %p3496_p5 = scmp.lt.u32.totalorder %s3492_s16, %s4098_s4 }
  0x52   :  { %p3498_p6 = pnand %p3496_p5, %p3493_p4 }
  0x54   :  { %3501 = shalt.err (!%p3498_p6)
}
  0x55   :  { %s3502_s0 = scalar_lea.vmem %s60_s23, 256  ;;  %p3507_p8 = scmp.lt.s32.totalorder %s60_s23, %s60_s23 }
  0x56   :  { %p3503_p7 = scmp.ne.s32.totalorder %s60_s23, %s3502_s0  ;;  %p3508_p9 = scmp.lt.s32.totalorder %s3502_s0, %s3502_s0 }
  0x58   :  { %p3509_p10 = por %p3508_p9, %p3507_p8 }
  0x5a   :  { %p3510_p11 = pnand %p3509_p10, %p3503_p7 }
  0x5c   :  { %3513 = shalt.err (!%p3510_p11)
}
  0x5d   :  { %65 = dma.hbm_to_vmem [thread:$0]  %s4098_s4, 256, %s60_s23, [#allocation8], %s3620_s8, %s3620_s8, %s3621_s30  }
  0x5e   :  { %s3514_s5 = scalar_lea.hbm %s4100_s6, 48 }
  0x5f   :  { %p3515_p12 = scmp.ne.s32.totalorder %s4100_s6, %s3514_s5  ;;  %p3518_p13 = scmp.lt.u32.totalorder %s3514_s5, %s4100_s6 }
  0x61   :  { %p3520_p0 = pnand %p3518_p13, %p3515_p12 }
  0x63   :  { %3523 = shalt.err (!%p3520_p0)
}
  0x64   :  { %s3524_s18 = scalar_lea.vmem %s3784_s3, 48  ;;  %s3528_s4 = scalar_lea.vmem %s3784_s3, 64 }
  0x65   :  { %p3525_p1 = scmp.ne.s32.totalorder %s3784_s3, %s3524_s18  ;;  %p3529_p2 = scmp.lt.s32.totalorder %s3784_s3, %s3784_s3 }
  0x66   :  { %p3530_p3 = scmp.lt.s32.totalorder %s3528_s4, %s3524_s18 }
  0x68   :  { %p3531_p4 = por %p3530_p3, %p3529_p2 }
  0x6a   :  { %p3532_p5 = pnand %p3531_p4, %p3525_p1 }
  0x6c   :  { %3535 = shalt.err (!%p3532_p5)
}
  0x6d   :  { %87 = dma.hbm_to_vmem [thread:$0]  %s4100_s6, 48, %s3784_s3, [#allocation11], %s3618_s27, %s3618_s27, %s3619_s28  }
  0x6e   :  { %s3624_s20 = smov [#allocation15]   ;;  %s3625_s0 = smov [#allocation16]  }
  0x6f   :  { %s107_s22 = sshll.u32 %s3624_s20, 4  ;;  %s121_s17 = sshll.u32 %s3625_s0, 4  ;;  %s108_s22 = int_to_ptr.vmem [resolvable:$true] %s107_s22  ;;  %s3822_s17 = int_to_ptr.vmem [resolvable:$true] %s121_s17 }
  0x70   :  { %s3536_s26 = scalar_lea.hbm %s4103_s9, 384 }
  0x71   :  { %p3537_p6 = scmp.ne.s32.totalorder %s4103_s9, %s3536_s26  ;;  %p3540_p7 = scmp.lt.u32.totalorder %s3536_s26, %s4103_s9 }
  0x73   :  { %p3542_p8 = pnand %p3540_p7, %p3537_p6 }
  0x75   :  { %3545 = shalt.err (!%p3542_p8)
}
  0x76   :  { %s3546_s6 = scalar_lea.vmem %s108_s22, 384  ;;  %p3551_p10 = scmp.lt.s32.totalorder %s108_s22, %s108_s22 }
  0x77   :  { %p3547_p9 = scmp.ne.s32.totalorder %s108_s22, %s3546_s6  ;;  %p3552_p11 = scmp.lt.s32.totalorder %s3546_s6, %s3546_s6 }
  0x79   :  { %p3553_p12 = por %p3552_p11, %p3551_p10 }
  0x7b   :  { %p3554_p13 = pnand %p3553_p12, %p3547_p9 }
  0x7d   :  { %3557 = shalt.err (!%p3554_p13)
}
  0x7e   :  { %113 = dma.hbm_to_vmem [thread:$0]  %s4103_s9, 384, %s108_s22, [#allocation14], %s3620_s8, %s3620_s8, %s3621_s30  }
  0x7f   :  { %s3558_s4 = scalar_lea.hbm %s4105_s11, 24576 }
  0x80   :  { %p3559_p0 = scmp.ne.s32.totalorder %s4105_s11, %s3558_s4  ;;  %p3562_p1 = scmp.lt.u32.totalorder %s3558_s4, %s4105_s11 }
  0x82   :  { %p3564_p2 = pnand %p3562_p1, %p3559_p0 }
  0x84   :  { %3567 = shalt.err (!%p3564_p2)
}
  0x85   :  { %s3568_s24 = scalar_lea.vmem %s3822_s17, 24576  ;;  %p3573_p4 = scmp.lt.s32.totalorder %s3822_s17, %s3822_s17 }
  0x86   :  { %p3569_p3 = scmp.ne.s32.totalorder %s3822_s17, %s3568_s24  ;;  %p3574_p5 = scmp.lt.s32.totalorder %s3568_s24, %s3568_s24 }
  0x88   :  { %p3575_p6 = por %p3574_p5, %p3573_p4 }
  0x8a   :  { %p3576_p7 = pnand %p3575_p6, %p3569_p3 }
  0x8c   :  { %3579 = shalt.err (!%p3576_p7)
}
  0x8d   :  { %s3626_s9 = smov 256  }
  0x8e   :  { %127 = dma.hbm_to_vmem [thread:$0]  %s4105_s11, 24576, %s3822_s17, [#allocation17], %s3626_s9, %s3626_s9, %s3618_s27  }
  0x8f   :  { %3602 = dma.done.wait [#allocation5], 128  }
  0x90   :  { %3603 = vsyncadd [#allocation5], 4294967168 }
  0x91   :  { %3604 = dma.done.wait [#allocation8], 272  }
  0x92   :  { %3605 = vsyncadd [#allocation8], 4294967024 }
  0x93   :  { %3606 = dma.done.wait [#allocation11], 64  }
  0x94   :  { %3607 = vsyncadd [#allocation11], 4294967232 }
  0x95   :  { %3608 = dma.done.wait [#allocation14], 432  }
  0x96   :  { %3609 = vsyncadd [#allocation14], 4294966864 }
  0x97   :  { %3610 = dma.done.wait [#allocation17], 24576  }
  0x98   :  { %3611 = vsyncadd [#allocation17], 4294942720  ;;  %v3627_v1 = vmov 0.0   ;;  %vm3628_vm0 = vmmov 0   ;;  %v3077_v2 = vld [vmem:[#allocation9] sm:$0xff]   ;;  %vm248_vm1 = vcmask 130048   ;;  %v303_v11 = vlaneseq }
  0x99   :  { %2998 = vmatprep.subr.bf16.mxu0 %v3627_v1  ;;  %3012 = vmatprep.subr.bf16.mxu1 %v3627_v1  ;;  %v3078_v3 = vld [vmem:[#allocation15 + $0x8] sm:$0xff]   ;;  %v532_v4 = vld [vmem:[%s4096_s2] sm:$0x1]  ;;  %v159_v6 = vld [vmem:[#allocation4] sm:$0xff]   ;;  %vm184_vm2 = vcmask 261120   ;;  %s3629_s14 = smov 32  }
  0x9a   :  { %3014 = vmatprep.mubr.msk.bf16.mxu1 %vm3628_vm0, %v3627_v1  ;;  %3002 = vmatprep.mubr.msk.bf16.mxu0 %vm3628_vm0, %v3627_v1  ;;  %v3079_v5 = vld [vmem:[#allocation9 + $0x8] sm:$0xff]   ;;  %v3081_v7 = vld [vmem:[#allocation15] sm:$0xff]   ;;  %v3872_v12 = vshrl.u32 %v303_v11, 7  ;;  %v2787_v35 = vld [vmem:[#allocation12 + $0x1] ss:$0 sm:$0xff]  ;;  %s3631_s21 = smov 96  }
  0x9b   :  { %2999 = vmatpush3.bf16.msra.mxu0 %v3077_v2  ;;  %3013 = vmatpush3.bf16.msra.mxu1 %v3078_v3  ;;  %v239_v8 = vld [vmem:[%s4095_s1] sm:$0x1]  ;;  %v841_v10 = vld [vmem:[#allocation7] sm:$0x1]  ;;  %v2793_v43 = vld [vmem:[#allocation12 + $0x2] ss:$0 sm:$0xff] }
  0x9c   :  { %3000 = vmatprep.subr.bf16.mxu0 %v3627_v1  ;;  %v3082_v9 = vld [vmem:[#allocation15 + $0x10] sm:$0xff]   ;;  %v3875_v13 = vsub.s32 0, %v3872_v12  ;;  %v3878_v14 = vsub.s32 1, %v3872_v12  ;;  %v2788_v37 = vld [vmem:[%s4101_s7 + $0x8] sm:$0xff]  ;;  %v2794_v44 = vld [vmem:[%s4101_s7 + $0x10] sm:$0xff]  ;;  %vm360_vm3 = vcmask 1041409  }
  0x9d   :  { %v2789_v50 = vld [vmem:[#allocation13 + $0x1] ss:$0 sm:$0xff]  ;;  %v2795_v52 = vld [vmem:[#allocation13 + $0x2] ss:$0 sm:$0xff]  ;;  %v2778_v55 = vld [vmem:[#allocation10] ss:$0 sm:$0xff] }
  0x9e   :  { %3015 = vmatmul.mubr.msk.bf16.vlgmr.msra.gmra.mrb[0].mxu1 %vm248_vm1, %v532_v4  ;;  %vm363_vm4 = vcmask 58368   ;;  %s3633_s3 = smov 8   ;;  %s3634_s16 = smov 104   ;;  %vm510_vm5 = vcmask 253952   ;;  %vm2753_vm6 = vcmask 8192  }
  0x9f   :  { %3001 = vmatpush3.bf16.msra.mxu0 %v3079_v5  ;;  %s3635_s18 = smov 72  }
  0xa0   :  { %3006 = vmatprep.subr.bf16.mxu0 %v3627_v1 }
  0xa2   :  { %3003 = vmatmul.mubr.msk.bf16.vlgmr.msra.gmra.mrb[0].mxu0 %vm184_vm2, %v159_v6 }
  0xa3   :  { %3007 = vmatpush3.bf16.msra.mxu0 %v3081_v7  ;;  %3008 = vmatprep.mubr.msk.bf16.mxu0 %vm3628_vm0, %v3627_v1 }
  0xa4   :  { %3018 = vmatprep.subr.bf16.mxu0 %v3627_v1 }
  0xaa   :  { %3009 = vmatmul.mubr.msk.bf16.vlgmr.msra.gmra.mrb[4].mxu0 %vm248_vm1, %v239_v8 }
  0xab   :  { %3019 = vmatpush3.bf16.msra.mxu0 %v3082_v9  ;;  %3020 = vmatprep.mubr.msk.bf16.mxu0 %vm3628_vm0, %v3627_v1  ;;  %v2782_v9 = vld [vmem:[#allocation12] ss:$0 sm:$0xff] }
  0xb2   :  { %3021 = vmatmul.mubr.msk.bf16.vlgmr.msra.gmra.mrb[8].mxu0 %vm248_vm1, %v841_v10 }
 0x171   :  { %v3880_v15 = vpop.f32.mrb[0].mxu1 }
 0x172   :  { %v599_v16 = vrot.slane %v3880_v15, %v3875_v13  ;;  %v3016_v17 = vpop.f32.mrb[1].mxu1  ;;  %v606_v20 = vrot.slane %v3880_v15, %v3878_v14 }
 0x173   :  { %v582_v18 = vpop.f32.mrb[2].mxu1 }
 0x174   :  { %601 = vbcast.lane.b32.xlu0 %v599_v16, 256  ;;  %v3017_v21 = vpop.f32.mrb[3].mxu1 }
 0x175   :  { %v222_v19 = vpop.f32.mrb[0].mxu0 }
 0x176   :  { %v3004_v22 = vpop.f32.mrb[1].mxu0  ;;  %v236_v57 = vadd.f32 %v2778_v55, %v222_v19  ;;  %v326_v19 = vld [vmem:[%s4101_s7] sm:$0xff] }
 0x177   :  { %v225_v23 = vpop.f32.mrb[2].mxu0 }
 0x178   :  { %v3005_v24 = vpop.f32.mrb[3].mxu0  ;;  %608 = vbcast.lane.b32.xlu0 %v606_v20, 256  ;;  %v237_v59 = vadd.f32 %v2778_v55, %v225_v23 }
 0x17d   :  { %v3886_v25 = vpop.f32.mrb[4].mxu0 }
 0x17e   :  { %v3010_v26 = vpop.f32.mrb[5].mxu0  ;;  %v306_v53 = vrot.slane %v3886_v25, %v3875_v13  ;;  %v313_v54 = vrot.slane %v3886_v25, %v3878_v14 }
 0x17f   :  { %v289_v27 = vpop.f32.mrb[6].mxu0 }
 0x180   :  { %v3011_v28 = vpop.f32.mrb[7].mxu0 }
 0x185   :  { %v3888_v29 = vpop.f32.mrb[8].mxu0 }
 0x186   :  { %v3022_v30 = vpop.f32.mrb[9].mxu0  ;;  %v908_v31 = vrot.slane %v3888_v29, %v3875_v13  ;;  %v915_v34 = vrot.slane %v3888_v29, %v3878_v14 }
 0x187   :  { %v891_v32 = vpop.f32.mrb[10].mxu0  ;;  %v2783_v30 = vld [vmem:[#allocation13] ss:$0 sm:$0xff] }
 0x188   :  { %910 = vbcast.lane.b32.xlu1 %v908_v31, 256  ;;  %v3023_v33 = vpop.f32.mrb[11].mxu0 }
 0x18c   :  { %917 = vbcast.lane.b32.xlu1 %v915_v34, 256 }
 0x1e6   :  { %v602_v36 = vpop.permute.xlu0 %601 }
 0x1e7   :  { %v618_v38 = vmul.f32 %v2787_v35, %v602_v36 }
 0x1e9   :  { %v622_v39 = vadd.f32 %v2788_v37, %v618_v38 }
 0x1ea   :  { %v609_v40 = vpop.permute.xlu0 %608 }
 0x1eb   :  { %v619_v41 = vmul.f32 %v2787_v35, %v609_v40  ;;  %626 = vrot.lane.b32.xlu0 %v622_v39, %s3618_s27 }
 0x1ed   :  { %v623_v42 = vadd.f32 %v2788_v37, %v619_v41 }
 0x1ef   :  { %628 = vrot.lane.b32.xlu1 %v623_v42, %s3618_s27 }
 0x1fa   :  { %v911_v45 = vpop.permute.xlu1 %910 }
 0x1fb   :  { %v927_v46 = vmul.f32 %v2793_v43, %v911_v45 }
 0x1fd   :  { %v931_v47 = vadd.f32 %v2794_v44, %v927_v46 }
 0x1fe   :  { %v918_v48 = vpop.permute.xlu1 %917 }
 0x1ff   :  { %v928_v49 = vmul.f32 %v2793_v43, %v918_v48  ;;  %935 = vrot.lane.b32.xlu0 %v931_v47, %s3629_s14 }
 0x201   :  { %v932_v51 = vadd.f32 %v2794_v44, %v928_v49  ;;  %v351_v44 = vand.u32 127, %v303_v11 }
 0x203   :  { %643 = vrot.lane.b32.xlu0 %v2789_v50, %s3618_s27  ;;  %937 = vrot.lane.b32.xlu1 %v932_v51, %s3629_s14  ;;  %s3630_s27 = smov 112   ;;  %v3918_v45 = vsub.s32 %v351_v44, %v3872_v12  ;;  %v3088_v44 = vld [vmem:[#allocation16 + $0xc] ss:$16 sps:$4 sm:$0xff]  }
 0x204   :  { %2502 = vmatprep.subr.bf16.mxu0 %v3088_v44  ;;  %v3122_v44 = vld [vmem:[#allocation16 + $0xc8] ss:$16 sps:$4 sm:$0xff]  }
 0x207   :  { %308 = vbcast.lane.b32.xlu0 %v306_v53, 256  ;;  %952 = vrot.lane.b32.xlu1 %v2795_v52, %s3629_s14  ;;  %v3632_v52 = vmov 0  }
 0x208   :  { %3076 = vset.pattern.permute.xlu1 %v3632_v52  ;;  %238 = vst [vmem:[#allocation2] sm:$0x3f] %v3632_v52  ;;  %3075 = vset.pattern.permute.xlu0 %v3632_v52 }
 0x20b   :  { %315 = vbcast.lane.b32.xlu1 %v313_v54, 256 }
 0x25d   :  { %v627_v56 = vpop.permute.xlu0 %626 }
 0x25e   :  { %v632_v60 = vadd.f32 %v627_v56, %v236_v57 }
 0x260   :  { %3373 = vtanh.f32 %v632_v60 }
 0x261   :  { %v629_v58 = vpop.permute.xlu1 %628 }
 0x262   :  { %v633_v61 = vadd.f32 %v629_v58, %v237_v59 }
 0x264   :  { %3375 = vtanh.f32 %v633_v61 }
 0x26a   :  { %v3374_v0 = vpop.eup %3373 }
 0x26e   :  { %v3376_v1 = vpop.eup %3375 }
 0x271   :  { %v936_v62 = vpop.permute.xlu0 %935 }
 0x272   :  { %v941_v63 = vadd.f32 %v936_v62, %v236_v57 }
 0x274   :  { %3377 = vtanh.f32 %v941_v63 }
 0x275   :  { %v644_v2 = vpop.permute.xlu0 %643  ;;  %v938_v3 = vpop.permute.xlu1 %937 }
 0x276   :  { %v646_v4 = vmul.f32 %v3374_v0, %v644_v2  ;;  %v647_v5 = vmul.f32 %v3376_v1, %v644_v2  ;;  %v942_v6 = vadd.f32 %v938_v3, %v237_v59 }
 0x278   :  { %3379 = vtanh.f32 %v942_v6  ;;  %650 = vrot.lane.b32.xlu0 %v646_v4, %s3630_s27  ;;  %652 = vrot.lane.b32.xlu1 %v647_v5, %s3630_s27 }
 0x279   :  { %v953_v8 = vpop.permute.xlu1 %952  ;;  %v309_v10 = vpop.permute.xlu0 %308 }
 0x27a   :  { %v324_v18 = vmul.f32 %v2782_v9, %v309_v10 }
 0x27c   :  { %v327_v21 = vadd.f32 %v326_v19, %v324_v18 }
 0x27d   :  { %v316_v22 = vpop.permute.xlu1 %315 }
 0x27e   :  { %v3378_v7 = vpop.eup %3377  ;;  %v329_v23 = vadd.f32 %v327_v21, %v236_v57  ;;  %v325_v24 = vmul.f32 %v2782_v9, %v316_v22 }
 0x27f   :  { %v955_v16 = vmul.f32 %v3378_v7, %v953_v8 }
 0x280   :  { %3381 = vtanh.f32 %v329_v23  ;;  %v328_v26 = vadd.f32 %v326_v19, %v325_v24 }
 0x281   :  { %959 = vrot.lane.b32.xlu0 %v955_v16, %s3631_s21 }
 0x282   :  { %v3380_v17 = vpop.eup %3379  ;;  %v330_v27 = vadd.f32 %v328_v26, %v237_v59 }
 0x283   :  { %v956_v20 = vmul.f32 %v3380_v17, %v953_v8 }
 0x284   :  { %3383 = vtanh.f32 %v330_v27 }
 0x285   :  { %961 = vrot.lane.b32.xlu1 %v956_v20, %s3631_s21 }
 0x28a   :  { %v3382_v28 = vpop.eup %3381 }
 0x28b   :  { %v340_v31 = vmul.f32 %v3382_v28, %v2783_v30 }
 0x28d   :  { %v342_v32 = vsel %vm248_vm1, %v340_v31, 0.0 }
 0x28e   :  { %v3384_v33 = vpop.eup %3383 }
 0x28f   :  { %v341_v34 = vmul.f32 %v3384_v33, %v2783_v30 }
 0x291   :  { %v345_v35 = vsel %vm248_vm1, %v341_v34, 0.0  ;;  %v2781_v34 = vld [vmem:[%s4104_s10] ss:$0 sm:$0xff]  ;;  %s3637_s10 = smov 120  }
 0x2a0   :  { %343 = vadd.xlane.f32.xlu0 %v342_v32 }
 0x2a9   :  { %346 = vadd.xlane.f32.xlu1 %v345_v35 }
 0x2ea   :  { %v651_v36 = vpop.permute.xlu0 %650  ;;  %v653_v38 = vpop.permute.xlu1 %652 }
 0x2eb   :  { %v656_v37 = vsel %vm248_vm1, %v651_v36, 0.0  ;;  %v659_v39 = vsel %vm248_vm1, %v653_v38, 0.0 }
 0x2ec   :  { %657 = vadd.xlane.f32.xlu0 %v656_v37 }
 0x2f0   :  { %660 = vadd.xlane.f32.xlu0 %v659_v39 }
 0x2f3   :  { %v960_v40 = vpop.permute.xlu0 %959 }
 0x2f4   :  { %v965_v41 = vsel %vm248_vm1, %v960_v40, 0.0 }
 0x2f5   :  { %966 = vadd.xlane.f32.xlu1 %v965_v41  ;;  %v3083_v41 = vld [vmem:[#allocation16] ss:$16 sps:$4 sm:$0xff]  }
 0x2f7   :  { %v962_v42 = vpop.permute.xlu1 %961 }
 0x2f8   :  { %v968_v43 = vsel %vm248_vm1, %v962_v42, 0.0  ;;  %v3085_v42 = vld [vmem:[#allocation16 + $0x4] ss:$16 sps:$4 sm:$0xff]  }
 0x2f9   :  { %969 = vadd.xlane.f32.xlu0 %v968_v43  ;;  %v3086_v43 = vld [vmem:[#allocation16 + $0x8] ss:$16 sps:$4 sm:$0xff]   ;;  %2379 = vmatprep.subr.bf16.mxu1 %v3085_v42  ;;  %v3124_v42 = vld [vmem:[#allocation16 + $0xcc] ss:$16 sps:$4 sm:$0xff]  }
 0x2fa   :  { %2380 = vmatpush1.bf16.msra.mxu1 %v3083_v41  ;;  %2503 = vmatpush1.bf16.msra.mxu0 %v3086_v43  ;;  %v3121_v41 = vld [vmem:[#allocation16 + $0xc4] ss:$16 sps:$4 sm:$0xff]   ;;  %v3119_v43 = vld [vmem:[#allocation16 + $0xc0] ss:$16 sps:$4 sm:$0xff]  }
 0x32d   :  { %v344_v46 = vpop.xlane.xlu0 %343 }
 0x32e   :  { %v355_v48 = vrot.slane %v344_v46, %v3918_v45 }
 0x336   :  { %v347_v47 = vpop.xlane.xlu1 %346 }
 0x337   :  { %v359_v49 = vrot.slane %v347_v47, %v3918_v45 }
 0x339   :  { %v361_v50 = vsel %vm360_vm3, %v359_v49, %v355_v48  ;;  %v3089_v48 = vld [vmem:[#allocation16 + $0x20] ss:$16 sps:$4 sm:$0xff]   ;;  %v3092_v49 = vld [vmem:[#allocation16 + $0x28] ss:$16 sps:$4 sm:$0xff]  }
 0x33a   :  { %v364_v51 = vsel %vm363_vm4, %v361_v50, -inf }
 0x33b   :  { %365 = vmax.xlane.f32.xlu1 %v364_v51 }
 0x379   :  { %v658_v11 = vpop.xlane.xlu0 %657 }
 0x37a   :  { %v667_v54 = vrot.slane %v658_v11, %v3918_v45 }
 0x37d   :  { %v661_v53 = vpop.xlane.xlu0 %660 }
 0x37e   :  { %v671_v55 = vrot.slane %v661_v53, %v3918_v45 }
 0x380   :  { %v672_v56 = vsel %vm360_vm3, %v671_v55, %v667_v54 }
 0x381   :  { %v674_v57 = vsel %vm363_vm4, %v672_v56, -inf }
 0x382   :  { %675 = vmax.xlane.f32.xlu0 %v674_v57  ;;  %v967_v58 = vpop.xlane.xlu1 %966 }
 0x383   :  { %v976_v60 = vrot.slane %v967_v58, %v3918_v45 }
 0x386   :  { %v970_v59 = vpop.xlane.xlu0 %969 }
 0x387   :  { %v980_v61 = vrot.slane %v970_v59, %v3918_v45 }
 0x389   :  { %v981_v62 = vsel %vm360_vm3, %v980_v61, %v976_v60 }
 0x38a   :  { %v983_v63 = vsel %vm363_vm4, %v981_v62, -inf  ;;  %v3636_v62 = vmov 1966171168  }
 0x38b   :  { %984 = vmax.xlane.f32.xlu1 %v983_v63  ;;  %v435_v63 = vunpack.c.l.s4 %v3636_v62 }
 0x3c8   :  { %v366_v0 = vpop.xlane.xlu1 %365 }
 0x3c9   :  { %v371_v1 = vrot.slane %v366_v0, %v3875_v13  ;;  %v375_v2 = vrot.slane %v366_v0, %v3878_v14 }
 0x3cb   :  { %v378_v3 = vsub.f32 %v344_v46, %v371_v1  ;;  %v379_v4 = vsub.f32 %v347_v47, %v375_v2  ;;  %v3091_v46 = vld [vmem:[#allocation16 + $0x24] ss:$16 sps:$4 sm:$0xff]   ;;  %v3094_v47 = vld [vmem:[#allocation16 + $0x2c] ss:$16 sps:$4 sm:$0xff]   ;;  %v436_v1 = vunpack.c.0.s8 %v435_v63 }
 0x3cc   :  { %2381 = vmatprep.subr.bf16.mxu1 %v3091_v46  ;;  %2504 = vmatprep.subr.bf16.mxu0 %v3094_v47  ;;  %v3127_v46 = vld [vmem:[#allocation16 + $0xe4] ss:$16 sps:$4 sm:$0xff]   ;;  %v3130_v47 = vld [vmem:[#allocation16 + $0xec] ss:$16 sps:$4 sm:$0xff]  }
 0x3cd   :  { %v380_v5 = vmul.f32 1.442695, %v378_v3  ;;  %v382_v6 = vmul.f32 1.442695, %v379_v4  ;;  %2382 = vmatpush1.bf16.msra.mxu1 %v3089_v48  ;;  %2505 = vmatpush1.bf16.msra.mxu0 %v3092_v49  ;;  %v3125_v48 = vld [vmem:[#allocation16 + $0xe0] ss:$16 sps:$4 sm:$0xff]  }
 0x3ce   :  { %v3128_v49 = vld [vmem:[#allocation16 + $0xe8] ss:$16 sps:$4 sm:$0xff]  }
 0x3cf   :  { %3385 = vpow2.f32 %v380_v5 }
 0x3d0   :  { %3387 = vpow2.f32 %v382_v6  ;;  %v3097_v6 = vld [vmem:[#allocation16 + $0x44] ss:$16 sps:$4 sm:$0xff]  }
 0x3d1   :  { %2383 = vmatprep.subr.bf16.mxu1 %v3097_v6  ;;  %v3151_v6 = vld [vmem:[#allocation16 + $0x164] ss:$16 sps:$4 sm:$0xff]  }
 0x3d9   :  { %v3386_v7 = vpop.eup %3385 }
 0x3da   :  { %v3388_v8 = vpop.eup %3387  ;;  %386 = vperm.xlu0 %3075, %v3386_v7   ;;  %v3100_v7 = vld [vmem:[#allocation16 + $0x4c] ss:$16 sps:$4 sm:$0xff]  }
 0x3db   :  { %391 = vperm.xlu1 %3076, %v3388_v8   ;;  %2506 = vmatprep.subr.bf16.mxu0 %v3100_v7  ;;  %v3154_v7 = vld [vmem:[#allocation16 + $0x16c] ss:$16 sps:$4 sm:$0xff]  }
 0x40f   :  { %v676_v9 = vpop.xlane.xlu0 %675 }
 0x410   :  { %v681_v10 = vrot.slane %v676_v9, %v3875_v13  ;;  %v685_v16 = vrot.slane %v676_v9, %v3878_v14 }
 0x412   :  { %v688_v17 = vsub.f32 %v658_v11, %v681_v10  ;;  %v689_v18 = vsub.f32 %v661_v53, %v685_v16  ;;  %v3095_v16 = vld [vmem:[#allocation16 + $0x40] ss:$16 sps:$4 sm:$0xff]  }
 0x413   :  { %2384 = vmatpush1.bf16.msra.mxu1 %v3095_v16 }
 0x414   :  { %v690_v19 = vmul.f32 1.442695, %v688_v17  ;;  %v692_v20 = vmul.f32 1.442695, %v689_v18  ;;  %v3098_v17 = vld [vmem:[#allocation16 + $0x48] ss:$16 sps:$4 sm:$0xff]  }
 0x415   :  { %2507 = vmatpush1.bf16.msra.mxu0 %v3098_v17  ;;  %v3160_v17 = vld [vmem:[#allocation16 + $0x18c] ss:$16 sps:$4 sm:$0xff]  }
 0x416   :  { %3389 = vpow2.f32 %v690_v19  ;;  %v3106_v19 = vld [vmem:[#allocation16 + $0x6c] ss:$16 sps:$4 sm:$0xff]  }
 0x417   :  { %3391 = vpow2.f32 %v692_v20  ;;  %2508 = vmatprep.subr.bf16.mxu0 %v3106_v19  ;;  %v3161_v19 = vld [vmem:[#allocation16 + $0x1a0] ss:$16 sps:$4 sm:$0xff]  }
 0x418   :  { %v985_v21 = vpop.xlane.xlu1 %984 }
 0x419   :  { %v990_v22 = vrot.slane %v985_v21, %v3875_v13  ;;  %v994_v23 = vrot.slane %v985_v21, %v3878_v14 }
 0x41b   :  { %v997_v24 = vsub.f32 %v967_v58, %v990_v22  ;;  %v998_v26 = vsub.f32 %v970_v59, %v994_v23  ;;  %v3101_v23 = vld [vmem:[#allocation16 + $0x60] ss:$16 sps:$4 sm:$0xff]  }
 0x41d   :  { %v999_v27 = vmul.f32 1.442695, %v997_v24  ;;  %v1001_v28 = vmul.f32 1.442695, %v998_v26  ;;  %v3104_v24 = vld [vmem:[#allocation16 + $0x68] ss:$16 sps:$4 sm:$0xff]  }
 0x41e   :  { %2509 = vmatpush1.bf16.msra.mxu0 %v3104_v24  ;;  %v3109_v26 = vld [vmem:[#allocation16 + $0x84] ss:$16 sps:$4 sm:$0xff]  }
 0x41f   :  { %3393 = vpow2.f32 %v999_v27  ;;  %v3112_v27 = vld [vmem:[#allocation16 + $0x8c] ss:$16 sps:$4 sm:$0xff]  }
 0x420   :  { %v3390_v30 = vpop.eup %3389  ;;  %3395 = vpow2.f32 %v1001_v28  ;;  %2510 = vmatprep.subr.bf16.mxu0 %v3112_v27  ;;  %v3167_v27 = vld [vmem:[#allocation16 + $0x1c0] ss:$16 sps:$4 sm:$0xff]  }
 0x421   :  { %696 = vperm.xlu1 %3076, %v3390_v30   ;;  %v3392_v31 = vpop.eup %3391 }
 0x425   :  { %701 = vperm.xlu1 %3076, %v3392_v31   ;;  %v3107_v31 = vld [vmem:[#allocation16 + $0x80] ss:$16 sps:$4 sm:$0xff]  }
 0x429   :  { %v3394_v32 = vpop.eup %3393 }
 0x42a   :  { %1005 = vperm.xlu1 %3076, %v3394_v32   ;;  %v3396_v33 = vpop.eup %3395  ;;  %v3110_v32 = vld [vmem:[#allocation16 + $0x88] ss:$16 sps:$4 sm:$0xff]  }
 0x42b   :  { %2511 = vmatpush1.bf16.msra.mxu0 %v3110_v32  ;;  %v3178_v32 = vld [vmem:[#allocation16 + $0x1ec] ss:$16 sps:$4 sm:$0xff]  }
 0x42e   :  { %1010 = vperm.xlu1 %3076, %v3396_v33   ;;  %v3115_v33 = vld [vmem:[#allocation16 + $0xa4] ss:$16 sps:$4 sm:$0xff]  }
 0x432   :  { %298 = vrot.lane.b32.xlu1 %v2781_v34, %s3633_s3 }
 0x436   :  { %591 = vrot.lane.b32.xlu1 %v2781_v34, %s3634_s16 }
 0x43a   :  { %900 = vrot.lane.b32.xlu1 %v2781_v34, %s3635_s18  ;;  %v3118_v34 = vld [vmem:[#allocation16 + $0xac] ss:$16 sps:$4 sm:$0xff]  }
 0x43b   :  { %2512 = vmatprep.subr.bf16.mxu0 %v3118_v34 }
 0x459   :  { %v3941_v35 = vpop.permute.xlu0 %386 }
 0x45a   :  { %v413_v36 = vrot.slane %v3941_v35, %v3918_v45  ;;  %v3945_v37 = vpop.permute.xlu1 %391 }
 0x45b   :  { %v417_v38 = vrot.slane %v3945_v37, %v3918_v45 }
 0x45d   :  { %v418_v39 = vsel %vm360_vm3, %v417_v38, %v413_v36  ;;  %v3113_v38 = vld [vmem:[#allocation16 + $0xa0] ss:$16 sps:$4 sm:$0xff]  }
 0x45e   :  { %v420_v40 = vsel %vm363_vm4, %v418_v39, 0.0  ;;  %v3116_v39 = vld [vmem:[#allocation16 + $0xa8] ss:$16 sps:$4 sm:$0xff]  }
 0x45f   :  { %421 = vadd.xlane.f32.xlu0 %v420_v40  ;;  %v2634_v40 = vld [vmem:[#allocation3] sm:$0x1]  ;;  %2513 = vmatpush1.bf16.msra.mxu0 %v3116_v39 }
 0x460   :  { %2514 = vmatprep.subr.bf16.mxu0 %v3124_v42  ;;  %v3184_v42 = vld [vmem:[#allocation16 + $0x20c] ss:$16 sps:$4 sm:$0xff]  }
 0x463   :  { %2515 = vmatpush1.bf16.msra.mxu0 %v3122_v44  ;;  %v3638_v44 = vmov 1935823168  }
 0x464   :  { %2516 = vmatprep.subr.bf16.mxu0 %v3130_v47 }
 0x467   :  { %2517 = vmatpush1.bf16.msra.mxu0 %v3128_v49 }
 0x4a0   :  { %v3951_v50 = vpop.permute.xlu1 %696 }
 0x4a1   :  { %v723_v52 = vrot.slane %v3951_v50, %v3918_v45 }
 0x4a4   :  { %v3953_v51 = vpop.permute.xlu1 %701 }
 0x4a5   :  { %v727_v11 = vrot.slane %v3953_v51, %v3918_v45 }
 0x4a7   :  { %v728_v53 = vsel %vm360_vm3, %v727_v11, %v723_v52  ;;  %v3133_v52 = vld [vmem:[#allocation16 + $0x104] ss:$16 sps:$4 sm:$0xff]   ;;  %v3136_v11 = vld [vmem:[#allocation16 + $0x10c] ss:$16 sps:$4 sm:$0xff]  }
 0x4a8   :  { %v730_v54 = vsel %vm363_vm4, %v728_v53, 0.0  ;;  %v3131_v53 = vld [vmem:[#allocation16 + $0x100] ss:$16 sps:$4 sm:$0xff]   ;;  %2518 = vmatprep.subr.bf16.mxu0 %v3136_v11 }
 0x4a9   :  { %731 = vadd.xlane.f32.xlu1 %v730_v54  ;;  %v3961_v55 = vpop.permute.xlu1 %1005  ;;  %v3134_v54 = vld [vmem:[#allocation16 + $0x108] ss:$16 sps:$4 sm:$0xff]  }
 0x4aa   :  { %v1032_v57 = vrot.slane %v3961_v55, %v3918_v45  ;;  %2519 = vmatpush1.bf16.msra.mxu0 %v3134_v54 }
 0x4ad   :  { %v3963_v56 = vpop.permute.xlu1 %1010 }
 0x4ae   :  { %v1036_v58 = vrot.slane %v3963_v56, %v3918_v45  ;;  %v3974_v45 = vsub.s32 %v436_v1, %v3872_v12  ;;  %v3148_v1 = vld [vmem:[#allocation16 + $0x14c] ss:$16 sps:$4 sm:$0xff]  }
 0x4b0   :  { %v1037_v59 = vsel %vm360_vm3, %v1036_v58, %v1032_v57  ;;  %v3139_v57 = vld [vmem:[#allocation16 + $0x124] ss:$16 sps:$4 sm:$0xff]   ;;  %v3142_v58 = vld [vmem:[#allocation16 + $0x12c] ss:$16 sps:$4 sm:$0xff]  }
 0x4b1   :  { %v299_v60 = vpop.permute.xlu1 %298  ;;  %v1039_v61 = vsel %vm363_vm4, %v1037_v59, 0.0  ;;  %v3137_v59 = vld [vmem:[#allocation16 + $0x120] ss:$16 sps:$4 sm:$0xff]   ;;  %2520 = vmatprep.subr.bf16.mxu0 %v3142_v58 }
 0x4b2   :  { %1040 = vadd.xlane.f32.xlu0 %v1039_v61  ;;  %v301_v2 = vadd.f32 %v299_v60, %v3886_v25  ;;  %v3140_v60 = vld [vmem:[#allocation16 + $0x128] ss:$16 sps:$4 sm:$0xff]  }
 0x4b3   :  { %v3403_v61 = vld [vmem:[#allocation4] sm:$0xff]   ;;  %2521 = vmatpush1.bf16.msra.mxu0 %v3140_v60 }
 0x4b4   :  { %v302_v8 = vmax.f32 %v301_v2, 0.0  ;;  %v3983_v62 = vunpack.c.l.bf16 %v3403_v61  ;;  %v3985_v63 = vunpack.c.h.bf16 %v3403_v61  ;;  %v3143_v2 = vld [vmem:[#allocation16 + $0x140] ss:$16 sps:$4 sm:$0xff]   ;;  %2522 = vmatprep.subr.bf16.mxu0 %v3148_v1 }
 0x4b5   :  { %v592_v0 = vpop.permute.xlu1 %591 }
 0x4b6   :  { %v594_v3 = vadd.f32 %v592_v0, %v3880_v15  ;;  %v3103_v15 = vld [vmem:[#allocation16 + $0x64] ss:$16 sps:$4 sm:$0xff]   ;;  %v512_v20 = vpack.c.bf16 %v302_v8, %v302_v8  ;;  %v3149_v8 = vld [vmem:[#allocation16 + $0x160] ss:$16 sps:$4 sm:$0xff]  }
 0x4b7   :  { %2385 = vmatprep.subr.bf16.mxu1 %v3103_v15  ;;  %v3145_v0 = vld [vmem:[#allocation16 + $0x144] ss:$16 sps:$4 sm:$0xff]   ;;  %v3158_v15 = vld [vmem:[#allocation16 + $0x188] ss:$16 sps:$4 sm:$0xff]  }
 0x4b8   :  { %v595_v4 = vmax.f32 %v594_v3, 0.0  ;;  %2386 = vmatpush1.bf16.msra.mxu1 %v3101_v23  ;;  %v520_v28 = vrot.slane %v512_v20, %v3974_v45  ;;  %v3146_v3 = vld [vmem:[#allocation16 + $0x148] ss:$16 sps:$4 sm:$0xff]   ;;  %v3163_v20 = vld [vmem:[#allocation16 + $0x1a4] ss:$16 sps:$4 sm:$0xff]  }
 0x4b9   :  { %v901_v5 = vpop.permute.xlu1 %900  ;;  %2387 = vmatprep.subr.bf16.mxu1 %v3109_v26  ;;  %2523 = vmatpush1.bf16.msra.mxu0 %v3146_v3  ;;  %v3169_v23 = vld [vmem:[#allocation16 + $0x1c4] ss:$16 sps:$4 sm:$0xff]  }
 0x4ba   :  { %v821_v9 = vpack.c.bf16 %v595_v4, %v595_v4  ;;  %v903_v10 = vadd.f32 %v901_v5, %v3888_v29  ;;  %v527_v36 = vrot.slane %v520_v28, %v3974_v45  ;;  %v394_v4 = vmul.f32 %v3941_v35, %v3983_v62  ;;  %2524 = vmatprep.subr.bf16.mxu0 %v3154_v7  ;;  %v3157_v35 = vld [vmem:[#allocation16 + $0x184] ss:$16 sps:$4 sm:$0xff]   ;;  %v3170_v28 = vld [vmem:[#allocation16 + $0x1c8] ss:$16 sps:$4 sm:$0xff]  }
 0x4bb   :  { %v395_v5 = vmul.f32 %v3945_v37, %v3985_v63 }
 0x4bc   :  { %v829_v18 = vrot.slane %v821_v9, %v3974_v45  ;;  %v904_v25 = vmax.f32 %v903_v10, 0.0  ;;  %2388 = vmatpush1.bf16.msra.mxu1 %v3107_v31  ;;  %v3152_v9 = vld [vmem:[#allocation16 + $0x168] ss:$16 sps:$4 sm:$0xff]   ;;  %v396_v10 = vsel %vm184_vm2, %v394_v4, 0.0 }
 0x4bd   :  { %2389 = vmatprep.subr.bf16.mxu1 %v3115_v33  ;;  %v403_v16 = vsel %vm184_vm2, %v395_v5, 0.0  ;;  %2525 = vmatpush1.bf16.msra.mxu0 %v3152_v9 }
 0x4be   :  { %v1130_v21 = vpack.c.bf16 %v904_v25, %v904_v25  ;;  %v836_v22 = vrot.slane %v829_v18, %v3974_v45  ;;  %v397_v18 = vrot.slane %v396_v10, 4  ;;  %v3155_v25 = vld [vmem:[#allocation16 + $0x180] ss:$16 sps:$4 sm:$0xff]   ;;  %2526 = vmatprep.subr.bf16.mxu0 %v3160_v17  ;;  %v404_v37 = vrot.slane %v403_v16, 4 }
 0x4c0   :  { %v1138_v29 = vrot.slane %v1130_v21, %v3974_v45  ;;  %837 = vrot.lane.b32.xlu1 %v836_v22, %s3637_s10  ;;  %2390 = vmatpush1.bf16.msra.mxu1 %v3113_v38  ;;  %v3164_v21 = vld [vmem:[#allocation16 + $0x1a8] ss:$16 sps:$4 sm:$0xff]   ;;  %v3166_v22 = vld [vmem:[#allocation16 + $0x1ac] ss:$16 sps:$4 sm:$0xff]   ;;  %v398_v24 = vadd.f32 %v397_v18, %v396_v10  ;;  %v405_v26 = vadd.f32 %v404_v37, %v403_v16 }
 0x4c1   :  { %2391 = vmatprep.subr.bf16.mxu1 %v3121_v41  ;;  %2527 = vmatpush1.bf16.msra.mxu0 %v3158_v15  ;;  %v3176_v38 = vld [vmem:[#allocation16 + $0x1e8] ss:$16 sps:$4 sm:$0xff]   ;;  %v3181_v41 = vld [vmem:[#allocation16 + $0x204] ss:$16 sps:$4 sm:$0xff]   ;;  %v704_v18 = vmul.f32 %v3951_v50, %v3983_v62 }
 0x4c2   :  { %v1145_v30 = vrot.slane %v1138_v29, %v3974_v45  ;;  %v3172_v29 = vld [vmem:[#allocation16 + $0x1cc] ss:$16 sps:$4 sm:$0xff]   ;;  %2528 = vmatprep.subr.bf16.mxu0 %v3166_v22  ;;  %v399_v31 = vrot.slane %v398_v24, 2  ;;  %v406_v33 = vrot.slane %v405_v26, 2 }
 0x4c3   :  { %v706_v15 = vsel %vm184_vm2, %v704_v18, 0.0 }
 0x4c4   :  { %1146 = vrot.lane.b32.xlu1 %v1145_v30, %s3637_s10  ;;  %2392 = vmatpush1.bf16.msra.mxu1 %v3119_v43  ;;  %v3175_v30 = vld [vmem:[#allocation16 + $0x1e4] ss:$16 sps:$4 sm:$0xff]   ;;  %v400_v39 = vadd.f32 %v399_v31, %v398_v24 }
 0x4c5   :  { %2393 = vmatprep.subr.bf16.mxu1 %v3127_v46  ;;  %2529 = vmatpush1.bf16.msra.mxu0 %v3164_v21  ;;  %v463_v46 = vunpack.c.l.s4 %v3638_v44  ;;  %v1013_v21 = vmul.f32 %v3961_v55, %v3983_v62 }
 0x4c6   :  { %2530 = vmatprep.subr.bf16.mxu0 %v3172_v29  ;;  %v401_v43 = vrot.slane %v400_v39, 1 }
 0x4c7   :  { %v1015_v29 = vsel %vm184_vm2, %v1013_v21, 0.0 }
 0x4c8   :  { %528 = vrot.lane.b32.xlu0 %v527_v36, %s3637_s10  ;;  %2394 = vmatpush1.bf16.msra.mxu1 %v3125_v48  ;;  %v3173_v36 = vld [vmem:[#allocation16 + $0x1e0] ss:$16 sps:$4 sm:$0xff]   ;;  %v402_v48 = vadd.f32 %v401_v43, %v400_v39 }
 0x4c9   :  { %2395 = vmatprep.subr.bf16.mxu1 %v3133_v52  ;;  %2531 = vmatpush1.bf16.msra.mxu0 %v3170_v28  ;;  %v464_v52 = vunpack.c.0.s8 %v463_v46 }
 0x4ca   :  { %2532 = vmatprep.subr.bf16.mxu0 %v3178_v32 }
 0x4cc   :  { %2637 = vperm.xlu0 %3075, %v2634_v40   ;;  %2396 = vmatpush1.bf16.msra.mxu1 %v3131_v53  ;;  %v407_v40 = vadd.f32 %v406_v33, %v405_v26 }
 0x4cd   :  { %2397 = vmatprep.subr.bf16.mxu1 %v3139_v57  ;;  %2533 = vmatpush1.bf16.msra.mxu0 %v3176_v38 }
 0x4ce   :  { %2543 = vmatprep.subr.bf16.mxu0 %v3184_v42  ;;  %v408_v47 = vrot.slane %v407_v40, 1 }
 0x4d0   :  { %2398 = vmatpush1.bf16.msra.mxu1 %v3137_v59  ;;  %v409_v11 = vadd.f32 %v408_v47, %v407_v40  ;;  %v3994_v59 = vsub.s32 %v464_v52, %v3872_v12 }
 0x4d1   :  { %2399 = vmatprep.subr.bf16.mxu1 %v3145_v0 }
 0x4d4   :  { %2400 = vmatpush1.bf16.msra.mxu1 %v3143_v2 }
 0x4d5   :  { %2401 = vmatprep.subr.bf16.mxu1 %v3151_v6 }
 0x4d8   :  { %2402 = vmatpush1.bf16.msra.mxu1 %v3149_v8 }
 0x4d9   :  { %2403 = vmatprep.subr.bf16.mxu1 %v3157_v35 }
 0x4dc   :  { %2404 = vmatpush1.bf16.msra.mxu1 %v3155_v25  ;;  %v705_v25 = vmul.f32 %v3953_v51, %v3985_v63  ;;  %v1016_v51 = vrot.slane %v1015_v29, 4 }
 0x4dd   :  { %2405 = vmatprep.subr.bf16.mxu1 %v3163_v20 }
 0x4de   :  { %v713_v37 = vsel %vm184_vm2, %v705_v25, 0.0  ;;  %v1017_v32 = vadd.f32 %v1016_v51, %v1015_v29 }
 0x4df   :  { %v714_v20 = vrot.slane %v713_v37, 4 }
 0x4e0   :  { %2406 = vmatpush1.bf16.msra.mxu1 %v3161_v19  ;;  %v707_v19 = vrot.slane %v706_v15, 4 }
 0x4e1   :  { %2407 = vmatprep.subr.bf16.mxu1 %v3169_v23  ;;  %v1014_v23 = vmul.f32 %v3963_v56, %v3985_v63  ;;  %v715_v24 = vadd.f32 %v714_v20, %v713_v37  ;;  %v1018_v56 = vrot.slane %v1017_v32, 2 }
 0x4e2   :  { %v708_v22 = vadd.f32 %v707_v19, %v706_v15 }
 0x4e3   :  { %v1022_v26 = vsel %vm184_vm2, %v1014_v23, 0.0  ;;  %v1019_v42 = vadd.f32 %v1018_v56, %v1017_v32  ;;  %v3179_v56 = vld [vmem:[#allocation16 + $0x200] ss:$16 sps:$4 sm:$0xff]  }
 0x4e4   :  { %2408 = vmatpush1.bf16.msra.mxu1 %v3167_v27  ;;  %v709_v50 = vrot.slane %v708_v22, 2  ;;  %v716_v27 = vrot.slane %v715_v24, 2 }
 0x4e5   :  { %2409 = vmatprep.subr.bf16.mxu1 %v3175_v30  ;;  %v1023_v30 = vrot.slane %v1022_v26, 4 }
 0x4e6   :  { %v710_v31 = vadd.f32 %v709_v50, %v708_v22  ;;  %v717_v33 = vadd.f32 %v716_v27, %v715_v24 }
 0x4e7   :  { %v1024_v55 = vadd.f32 %v1023_v30, %v1022_v26 }
 0x4e8   :  { %2410 = vmatpush1.bf16.msra.mxu1 %v3173_v36  ;;  %v711_v62 = vrot.slane %v710_v31, 1  ;;  %v718_v63 = vrot.slane %v717_v33, 1 }
 0x4e9   :  { %2420 = vmatprep.subr.bf16.mxu1 %v3181_v41  ;;  %v1025_v38 = vrot.slane %v1024_v55, 2 }
 0x4ea   :  { %v712_v40 = vadd.f32 %v711_v62, %v710_v31  ;;  %v719_v43 = vadd.f32 %v718_v63, %v717_v33  ;;  %v3182_v63 = vld [vmem:[#allocation16 + $0x208] ss:$16 sps:$4 sm:$0xff]  }
 0x4eb   :  { %v1026_v47 = vadd.f32 %v1025_v38, %v1024_v55 }
 0x4ec   :  { %v422_v34 = vpop.xlane.xlu0 %421 }
 0x4ed   :  { %3397 = vrcp.f32 %v422_v34 }
 0x4f7   :  { %v3398_v49 = vpop.eup %3397 }
 0x4f8   :  { %v425_v53 = vrot.slane %v3398_v49, 1  ;;  %v428_v54 = vmul.f32 %v3398_v49, %v402_v48 }
 0x4fa   :  { %v429_v57 = vmul.f32 %v425_v53, %v409_v11  ;;  %v430_v58 = vpack.c.bf16 %v428_v54, %v428_v54  ;;  %v1020_v11 = vrot.slane %v1019_v42, 1 }
 0x4fc   :  { %v431_v60 = vpack.c.bf16 %v429_v57, %v429_v57  ;;  %v440_v61 = vrot.slane %v430_v58, %v3974_v45  ;;  %v1027_v57 = vrot.slane %v1026_v47, 1 }
 0x4fe   :  { %v447_v0 = vrot.slane %v440_v61, %v3974_v45  ;;  %v454_v1 = vrot.slane %v431_v60, %v3974_v45  ;;  %v1021_v61 = vadd.f32 %v1020_v11, %v1019_v42  ;;  %v3188_v42 = vld [vmem:[#allocation16 + $0x228] ss:$16 sps:$4 sm:$0xff]  }
 0x4ff   :  { %v3200_v11 = vld [vmem:[#allocation16 + $0x268] ss:$16 sps:$4 sm:$0xff]  }
 0x500   :  { %v461_v2 = vrot.slane %v454_v1, %v3974_v45  ;;  %v468_v3 = vrot.slane %v447_v0, %v3994_v59 }
 0x502   :  { %v482_v4 = vrot.slane %v461_v2, %v3994_v59  ;;  %v475_v5 = vrot.slane %v468_v3, %v3994_v59  ;;  %v1028_v3 = vadd.f32 %v1027_v57, %v1026_v47  ;;  %v3194_v47 = vld [vmem:[#allocation16 + $0x248] ss:$16 sps:$4 sm:$0xff]   ;;  %v3203_v57 = vld [vmem:[#allocation16 + $0x280] ss:$16 sps:$4 sm:$0xff]  }
 0x504   :  { %v489_v6 = vrot.slane %v482_v4, %v3994_v59  ;;  %v490_v8 = vunpack.c.l.b16 %v475_v5 }
 0x506   :  { %v491_v7 = vunpack.c.l.b16 %v489_v6 }
 0x508   :  { %v492_v9 = vrot.slane %v491_v7, 7 }
 0x50a   :  { %v493_v10 = vsel %vm360_vm3, %v492_v9, %v490_v8 }
 0x50b   :  { %v494_v16 = vpack.c.b16 %v493_v10, %v493_v10 }
 0x50d   :  { %v501_v35 = vrot.slane %v494_v16, %v3974_v45 }
 0x50f   :  { %v508_v17 = vrot.slane %v501_v35, %v3974_v45 }
 0x511   :  { %511 = vst.msk [vmem:[#allocation2] sm:$0x1] %vm510_vm5, %v508_v17 }
 0x536   :  { %v732_v28 = vpop.xlane.xlu1 %731 }
 0x537   :  { %3399 = vrcp.f32 %v732_v28 }
 0x53a   :  { %v838_v34 = vpop.permute.xlu1 %837 }
 0x53b   :  { %840 = vst.msk [vmem:[#allocation2 + $0x3] sm:$0x1] %vm510_vm5, %v838_v34 }
 0x53e   :  { %v1147_v36 = vpop.permute.xlu1 %1146 }
 0x53f   :  { %1149 = vst.msk [vmem:[#allocation2 + $0x5] sm:$0x1] %vm510_vm5, %v1147_v36  ;;  %v1041_v39 = vpop.xlane.xlu0 %1040 }
 0x540   :  { %3401 = vrcp.f32 %v1041_v39  ;;  %v3187_v39 = vld [vmem:[#allocation16 + $0x224] ss:$16 sps:$4 sm:$0xff]  }
 0x541   :  { %v3400_v41 = vpop.eup %3399 }
 0x542   :  { %v735_v44 = vrot.slane %v3400_v41, 1  ;;  %v738_v46 = vmul.f32 %v3400_v41, %v712_v40  ;;  %v3190_v40 = vld [vmem:[#allocation16 + $0x22c] ss:$16 sps:$4 sm:$0xff]   ;;  %v3185_v41 = vld [vmem:[#allocation16 + $0x220] ss:$16 sps:$4 sm:$0xff]  }
 0x543   :  { %v529_v48 = vpop.permute.xlu0 %528 }
 0x544   :  { %v739_v49 = vmul.f32 %v735_v44, %v719_v43  ;;  %v740_v52 = vpack.c.bf16 %v738_v46, %v738_v46  ;;  %531 = vst.msk [vmem:[#allocation2 + $0x1] sm:$0x1] %vm510_vm5, %v529_v48  ;;  %v3193_v43 = vld [vmem:[#allocation16 + $0x244] ss:$16 sps:$4 sm:$0xff]   ;;  %v3196_v44 = vld [vmem:[#allocation16 + $0x24c] ss:$16 sps:$4 sm:$0xff]  }
 0x545   :  { %v3191_v46 = vld [vmem:[#allocation16 + $0x240] ss:$16 sps:$4 sm:$0xff]   ;;  %v3199_v48 = vld [vmem:[#allocation16 + $0x264] ss:$16 sps:$4 sm:$0xff]  }
 0x546   :  { %v741_v53 = vpack.c.bf16 %v739_v49, %v739_v49  ;;  %v750_v54 = vrot.slane %v740_v52, %v3974_v45  ;;  %v3202_v49 = vld [vmem:[#allocation16 + $0x26c] ss:$16 sps:$4 sm:$0xff]   ;;  %v3197_v52 = vld [vmem:[#allocation16 + $0x260] ss:$16 sps:$4 sm:$0xff]  }
 0x548   :  { %v757_v58 = vrot.slane %v750_v54, %v3974_v45  ;;  %v764_v60 = vrot.slane %v741_v53, %v3974_v45  ;;  %v3205_v53 = vld [vmem:[#allocation16 + $0x284] ss:$16 sps:$4 sm:$0xff]   ;;  %v3208_v54 = vld [vmem:[#allocation16 + $0x28c] ss:$16 sps:$4 sm:$0xff]  }
 0x54a   :  { %v3402_v0 = vpop.eup %3401  ;;  %v771_v1 = vrot.slane %v764_v60, %v3974_v45  ;;  %v778_v2 = vrot.slane %v757_v58, %v3994_v59  ;;  %v3206_v58 = vld [vmem:[#allocation16 + $0x288] ss:$16 sps:$4 sm:$0xff]   ;;  %v3211_v60 = vld [vmem:[#allocation16 + $0x2a4] ss:$16 sps:$4 sm:$0xff]  }
 0x54b   :  { %v1044_v4 = vrot.slane %v3402_v0, 1  ;;  %v1047_v5 = vmul.f32 %v3402_v0, %v1021_v61  ;;  %v3214_v61 = vld [vmem:[#allocation16 + $0x2ac] ss:$16 sps:$4 sm:$0xff]   ;;  %v3209_v0 = vld [vmem:[#allocation16 + $0x2a0] ss:$16 sps:$4 sm:$0xff]  }
 0x54c   :  { %v792_v6 = vrot.slane %v771_v1, %v3994_v59  ;;  %v785_v9 = vrot.slane %v778_v2, %v3994_v59  ;;  %v3212_v1 = vld [vmem:[#allocation16 + $0x2a8] ss:$16 sps:$4 sm:$0xff]   ;;  %v3217_v2 = vld [vmem:[#allocation16 + $0x2c4] ss:$16 sps:$4 sm:$0xff]  }
 0x54d   :  { %v1048_v7 = vmul.f32 %v1044_v4, %v1028_v3  ;;  %v1049_v8 = vpack.c.bf16 %v1047_v5, %v1047_v5  ;;  %v3220_v3 = vld [vmem:[#allocation16 + $0x2cc] ss:$16 sps:$4 sm:$0xff]   ;;  %v3215_v4 = vld [vmem:[#allocation16 + $0x2c0] ss:$16 sps:$4 sm:$0xff]   ;;  %v3218_v5 = vld [vmem:[#allocation16 + $0x2c8] ss:$16 sps:$4 sm:$0xff]  }
 0x54e   :  { %v799_v10 = vrot.slane %v792_v6, %v3994_v59  ;;  %v800_v15 = vunpack.c.l.b16 %v785_v9  ;;  %v3223_v6 = vld [vmem:[#allocation16 + $0x2e4] ss:$16 sps:$4 sm:$0xff]   ;;  %v3224_v9 = vld [vmem:[#allocation16 + $0x2e8] ss:$16 sps:$4 sm:$0xff]  }
 0x54f   :  { %v1050_v16 = vpack.c.bf16 %v1048_v7, %v1048_v7  ;;  %v1059_v35 = vrot.slane %v1049_v8, %v3974_v45  ;;  %v3226_v7 = vld [vmem:[#allocation16 + $0x2ec] ss:$16 sps:$4 sm:$0xff]   ;;  %v3221_v8 = vld [vmem:[#allocation16 + $0x2e0] ss:$16 sps:$4 sm:$0xff]  }
 0x550   :  { %v801_v17 = vunpack.c.l.b16 %v799_v10  ;;  %v3229_v10 = vld [vmem:[#allocation16 + $0x304] ss:$16 sps:$4 sm:$0xff]  }
 0x551   :  { %v1066_v18 = vrot.slane %v1059_v35, %v3974_v45  ;;  %v1073_v25 = vrot.slane %v1050_v16, %v3974_v45  ;;  %v3232_v16 = vld [vmem:[#allocation16 + $0x30c] ss:$16 sps:$4 sm:$0xff]   ;;  %v3227_v35 = vld [vmem:[#allocation16 + $0x300] ss:$16 sps:$4 sm:$0xff]  }
 0x552   :  { %v802_v37 = vrot.slane %v801_v17, 7  ;;  %v3230_v17 = vld [vmem:[#allocation16 + $0x308] ss:$16 sps:$4 sm:$0xff]  }
 0x553   :  { %v1080_v19 = vrot.slane %v1073_v25, %v3974_v45  ;;  %v1087_v20 = vrot.slane %v1066_v18, %v3994_v59  ;;  %v3235_v18 = vld [vmem:[#allocation16 + $0x324] ss:$16 sps:$4 sm:$0xff]   ;;  %v3238_v25 = vld [vmem:[#allocation16 + $0x32c] ss:$16 sps:$4 sm:$0xff]  }
 0x554   :  { %v803_v21 = vsel %vm360_vm3, %v802_v37, %v800_v15  ;;  %v3233_v15 = vld [vmem:[#allocation16 + $0x320] ss:$16 sps:$4 sm:$0xff]   ;;  %v3236_v37 = vld [vmem:[#allocation16 + $0x328] ss:$16 sps:$4 sm:$0xff]  }
 0x555   :  { %v804_v22 = vpack.c.b16 %v803_v21, %v803_v21  ;;  %v1101_v23 = vrot.slane %v1080_v19, %v3994_v59  ;;  %v1094_v29 = vrot.slane %v1087_v20, %v3994_v59  ;;  %v3241_v19 = vld [vmem:[#allocation16 + $0x344] ss:$16 sps:$4 sm:$0xff]   ;;  %v3244_v20 = vld [vmem:[#allocation16 + $0x34c] ss:$16 sps:$4 sm:$0xff]   ;;  %v3239_v21 = vld [vmem:[#allocation16 + $0x340] ss:$16 sps:$4 sm:$0xff]  }
 0x557   :  { %v811_v24 = vrot.slane %v804_v22, %v3974_v45  ;;  %v1108_v50 = vrot.slane %v1101_v23, %v3994_v59  ;;  %v1109_v27 = vunpack.c.l.b16 %v1094_v29  ;;  %v3242_v22 = vld [vmem:[#allocation16 + $0x348] ss:$16 sps:$4 sm:$0xff]   ;;  %v3247_v23 = vld [vmem:[#allocation16 + $0x364] ss:$16 sps:$4 sm:$0xff]   ;;  %v3245_v29 = vld [vmem:[#allocation16 + $0x360] ss:$16 sps:$4 sm:$0xff]  }
 0x559   :  { %v818_v26 = vrot.slane %v811_v24, %v3974_v45  ;;  %v1110_v51 = vunpack.c.l.b16 %v1108_v50  ;;  %v3250_v24 = vld [vmem:[#allocation16 + $0x36c] ss:$16 sps:$4 sm:$0xff]   ;;  %v3248_v50 = vld [vmem:[#allocation16 + $0x368] ss:$16 sps:$4 sm:$0xff]  }
 0x55b   :  { %820 = vst.msk [vmem:[#allocation2 + $0x2] sm:$0x1] %vm510_vm5, %v818_v26  ;;  %v1111_v28 = vrot.slane %v1110_v51, 7  ;;  %v3253_v26 = vld [vmem:[#allocation16 + $0x384] ss:$16 sps:$4 sm:$0xff]  }
 0x55c   :  { %v3256_v51 = vld [vmem:[#allocation16 + $0x38c] ss:$16 sps:$4 sm:$0xff]  }
 0x55d   :  { %v1112_v30 = vsel %vm360_vm3, %v1111_v28, %v1109_v27  ;;  %v3251_v27 = vld [vmem:[#allocation16 + $0x380] ss:$16 sps:$4 sm:$0xff]   ;;  %v3254_v28 = vld [vmem:[#allocation16 + $0x388] ss:$16 sps:$4 sm:$0xff]  }
 0x55e   :  { %v1113_v31 = vpack.c.b16 %v1112_v30, %v1112_v30  ;;  %v3259_v30 = vld [vmem:[#allocation16 + $0x3a4] ss:$16 sps:$4 sm:$0xff]  }
 0x560   :  { %v1120_v32 = vrot.slane %v1113_v31, %v3974_v45  ;;  %v3262_v31 = vld [vmem:[#allocation16 + $0x3ac] ss:$16 sps:$4 sm:$0xff]  }
 0x562   :  { %v1127_v33 = vrot.slane %v1120_v32, %v3974_v45  ;;  %v3257_v32 = vld [vmem:[#allocation16 + $0x3a0] ss:$16 sps:$4 sm:$0xff]  }
 0x564   :  { %1129 = vst.msk [vmem:[#allocation2 + $0x4] sm:$0x1] %vm510_vm5, %v1127_v33  ;;  %v3260_v33 = vld [vmem:[#allocation16 + $0x3a8] ss:$16 sps:$4 sm:$0xff]  }
 0x56b   :  { %v4047_v34 = vld [vmem:[#allocation2] sm:$0x3f] }
 0x56c   :  { %v1373_v59 = vrot.slane %v4047_v34, %v3974_v45 }
 0x56e   :  { %v1381_v55 = vcombine.high %v1373_v59, %v1373_v59  ;;  %v4053_v36 = vrot.slane %v1373_v59, %v3974_v45  ;;  %v3265_v59 = vld [vmem:[#allocation16 + $0x3c4] ss:$16 sps:$4 sm:$0xff]  }
 0x570   :  { %v1403_v62 = vrot.slane %v1381_v55, %v3974_v45  ;;  %v3268_v55 = vld [vmem:[#allocation16 + $0x3cc] ss:$16 sps:$4 sm:$0xff]  }
 0x572   :  { %2411 = vmatprep.mubr.bf16.mxu1 %v1403_v62  ;;  %2534 = vmatprep.mubr.bf16.mxu0 %v1403_v62  ;;  %v1412_v38 = vcombine.high %v1403_v62, %v1403_v62  ;;  %v1366_v62 = vcombine.high %v4047_v34, %v4047_v34 }
 0x573   :  { %2412 = vmatmul.mubr.bf16.vlgmr.msra.gmra.mrb[4].mxu1 %v4053_v36  ;;  %2535 = vmatmul.mubr.bf16.vlgmr.msra.gmra.mrb[12].mxu0 %v4053_v36 }
 0x574   :  { %2421 = vmatpush1.bf16.msra.mxu1 %v3179_v56  ;;  %2544 = vmatpush1.bf16.msra.mxu0 %v3182_v63  ;;  %v3263_v56 = vld [vmem:[#allocation16 + $0x3c0] ss:$16 sps:$4 sm:$0xff]   ;;  %v3266_v63 = vld [vmem:[#allocation16 + $0x3c8] ss:$16 sps:$4 sm:$0xff]  }
 0x575   :  { %2452 = vmatprep.mubr.bf16.mxu1 %v1412_v38  ;;  %2575 = vmatprep.mubr.bf16.mxu0 %v1412_v38  ;;  %v3271_v38 = vld [vmem:[#allocation16 + $0x3e4] ss:$16 sps:$4 sm:$0xff]  }
 0x576   :  { %2422 = vmatprep.subr.bf16.mxu1 %v3187_v39  ;;  %2545 = vmatprep.subr.bf16.mxu0 %v3190_v40  ;;  %v3274_v39 = vld [vmem:[#allocation16 + $0x3ec] ss:$16 sps:$4 sm:$0xff]   ;;  %v4060_v40 = vrot.slane %v1366_v62, %v3974_v45 }
 0x577   :  { %v3353_v62 = vld [vmem:[#allocation16 + $0x58c] ss:$16 sps:$4 sm:$0xff]  }
 0x578   :  { %2423 = vmatpush1.bf16.msra.mxu1 %v3185_v41  ;;  %2546 = vmatpush1.bf16.msra.mxu0 %v3188_v42  ;;  %v3269_v41 = vld [vmem:[#allocation16 + $0x3e0] ss:$16 sps:$4 sm:$0xff]   ;;  %v3272_v42 = vld [vmem:[#allocation16 + $0x3e8] ss:$16 sps:$4 sm:$0xff]   ;;  %v1382_v34 = vcombine.high %v4060_v40, %v4060_v40 }
 0x579   :  { %2424 = vmatprep.subr.bf16.mxu1 %v3193_v43  ;;  %2547 = vmatprep.subr.bf16.mxu0 %v3196_v44  ;;  %v3277_v43 = vld [vmem:[#allocation16 + $0x404] ss:$16 sps:$4 sm:$0xff]   ;;  %v3280_v44 = vld [vmem:[#allocation16 + $0x40c] ss:$16 sps:$4 sm:$0xff]  }
 0x57c   :  { %2425 = vmatpush1.bf16.msra.mxu1 %v3191_v46  ;;  %2548 = vmatpush1.bf16.msra.mxu0 %v3194_v47  ;;  %v3275_v46 = vld [vmem:[#allocation16 + $0x400] ss:$16 sps:$4 sm:$0xff]   ;;  %v1411_v47 = vcombine.high %v4053_v36, %v4053_v36 }
 0x57d   :  { %2426 = vmatprep.subr.bf16.mxu1 %v3199_v48  ;;  %2549 = vmatprep.subr.bf16.mxu0 %v3202_v49  ;;  %v3278_v48 = vld [vmem:[#allocation16 + $0x408] ss:$16 sps:$4 sm:$0xff]   ;;  %v1410_v49 = vrot.slane %v1382_v34, %v3974_v45  ;;  %v3288_v36 = vld [vmem:[#allocation16 + $0x440] ss:$16 sps:$4 sm:$0xff]  }
 0x57e   :  { %v3360_v34 = vld [vmem:[#allocation16 + $0x5c0] ss:$16 sps:$4 sm:$0xff]  }
 0x580   :  { %2427 = vmatpush1.bf16.msra.mxu1 %v3197_v52  ;;  %2550 = vmatpush1.bf16.msra.mxu0 %v3200_v11  ;;  %v3284_v52 = vld [vmem:[#allocation16 + $0x424] ss:$16 sps:$4 sm:$0xff]   ;;  %v3287_v11 = vld [vmem:[#allocation16 + $0x42c] ss:$16 sps:$4 sm:$0xff]  }
 0x581   :  { %2428 = vmatprep.subr.bf16.mxu1 %v3205_v53  ;;  %2551 = vmatprep.subr.bf16.mxu0 %v3208_v54  ;;  %v3282_v53 = vld [vmem:[#allocation16 + $0x420] ss:$16 sps:$4 sm:$0xff]   ;;  %v3285_v54 = vld [vmem:[#allocation16 + $0x428] ss:$16 sps:$4 sm:$0xff]  }
 0x584   :  { %2429 = vmatpush1.bf16.msra.mxu1 %v3203_v57  ;;  %2552 = vmatpush1.bf16.msra.mxu0 %v3206_v58  ;;  %v3290_v57 = vld [vmem:[#allocation16 + $0x444] ss:$16 sps:$4 sm:$0xff]   ;;  %v3293_v58 = vld [vmem:[#allocation16 + $0x44c] ss:$16 sps:$4 sm:$0xff]  }
 0x585   :  { %2430 = vmatprep.subr.bf16.mxu1 %v3211_v60  ;;  %2553 = vmatprep.subr.bf16.mxu0 %v3214_v61  ;;  %v3291_v60 = vld [vmem:[#allocation16 + $0x448] ss:$16 sps:$4 sm:$0xff]   ;;  %v3296_v61 = vld [vmem:[#allocation16 + $0x464] ss:$16 sps:$4 sm:$0xff]  }
 0x588   :  { %2431 = vmatpush1.bf16.msra.mxu1 %v3209_v0  ;;  %2554 = vmatpush1.bf16.msra.mxu0 %v3212_v1  ;;  %v3299_v0 = vld [vmem:[#allocation16 + $0x46c] ss:$16 sps:$4 sm:$0xff]   ;;  %v3294_v1 = vld [vmem:[#allocation16 + $0x460] ss:$16 sps:$4 sm:$0xff]  }
 0x589   :  { %2432 = vmatprep.subr.bf16.mxu1 %v3217_v2  ;;  %2555 = vmatprep.subr.bf16.mxu0 %v3220_v3  ;;  %v3297_v2 = vld [vmem:[#allocation16 + $0x468] ss:$16 sps:$4 sm:$0xff]   ;;  %v3302_v3 = vld [vmem:[#allocation16 + $0x484] ss:$16 sps:$4 sm:$0xff]  }
 0x58c   :  { %2433 = vmatpush1.bf16.msra.mxu1 %v3215_v4  ;;  %2556 = vmatpush1.bf16.msra.mxu0 %v3218_v5  ;;  %v3305_v4 = vld [vmem:[#allocation16 + $0x48c] ss:$16 sps:$4 sm:$0xff]   ;;  %v3300_v5 = vld [vmem:[#allocation16 + $0x480] ss:$16 sps:$4 sm:$0xff]  }
 0x58d   :  { %2434 = vmatprep.subr.bf16.mxu1 %v3223_v6  ;;  %2557 = vmatprep.subr.bf16.mxu0 %v3226_v7  ;;  %v3303_v6 = vld [vmem:[#allocation16 + $0x488] ss:$16 sps:$4 sm:$0xff]   ;;  %v3308_v7 = vld [vmem:[#allocation16 + $0x4a4] ss:$16 sps:$4 sm:$0xff]  }
 0x590   :  { %2435 = vmatpush1.bf16.msra.mxu1 %v3221_v8  ;;  %2558 = vmatpush1.bf16.msra.mxu0 %v3224_v9  ;;  %v3311_v8 = vld [vmem:[#allocation16 + $0x4ac] ss:$16 sps:$4 sm:$0xff]   ;;  %v3306_v9 = vld [vmem:[#allocation16 + $0x4a0] ss:$16 sps:$4 sm:$0xff]  }
 0x591   :  { %2436 = vmatprep.subr.bf16.mxu1 %v3229_v10  ;;  %2559 = vmatprep.subr.bf16.mxu0 %v3232_v16  ;;  %v3309_v10 = vld [vmem:[#allocation16 + $0x4a8] ss:$16 sps:$4 sm:$0xff]   ;;  %v3314_v16 = vld [vmem:[#allocation16 + $0x4c4] ss:$16 sps:$4 sm:$0xff]  }
 0x594   :  { %2437 = vmatpush1.bf16.msra.mxu1 %v3227_v35  ;;  %2560 = vmatpush1.bf16.msra.mxu0 %v3230_v17  ;;  %v3317_v35 = vld [vmem:[#allocation16 + $0x4cc] ss:$16 sps:$4 sm:$0xff]   ;;  %v3312_v17 = vld [vmem:[#allocation16 + $0x4c0] ss:$16 sps:$4 sm:$0xff]  }
 0x595   :  { %2438 = vmatprep.subr.bf16.mxu1 %v3235_v18  ;;  %2561 = vmatprep.subr.bf16.mxu0 %v3238_v25  ;;  %v3315_v18 = vld [vmem:[#allocation16 + $0x4c8] ss:$16 sps:$4 sm:$0xff]   ;;  %v3320_v25 = vld [vmem:[#allocation16 + $0x4e4] ss:$16 sps:$4 sm:$0xff]  }
 0x598   :  { %2439 = vmatpush1.bf16.msra.mxu1 %v3233_v15  ;;  %2562 = vmatpush1.bf16.msra.mxu0 %v3236_v37  ;;  %v3323_v15 = vld [vmem:[#allocation16 + $0x4ec] ss:$16 sps:$4 sm:$0xff]   ;;  %v3318_v37 = vld [vmem:[#allocation16 + $0x4e0] ss:$16 sps:$4 sm:$0xff]  }
 0x599   :  { %2440 = vmatprep.subr.bf16.mxu1 %v3241_v19  ;;  %2563 = vmatprep.subr.bf16.mxu0 %v3244_v20  ;;  %v3321_v19 = vld [vmem:[#allocation16 + $0x4e8] ss:$16 sps:$4 sm:$0xff]   ;;  %v3326_v20 = vld [vmem:[#allocation16 + $0x504] ss:$16 sps:$4 sm:$0xff]  }
 0x59c   :  { %2441 = vmatpush1.bf16.msra.mxu1 %v3239_v21  ;;  %2564 = vmatpush1.bf16.msra.mxu0 %v3242_v22  ;;  %v3329_v21 = vld [vmem:[#allocation16 + $0x50c] ss:$16 sps:$4 sm:$0xff]   ;;  %v3324_v22 = vld [vmem:[#allocation16 + $0x500] ss:$16 sps:$4 sm:$0xff]  }
 0x59d   :  { %2442 = vmatprep.subr.bf16.mxu1 %v3247_v23  ;;  %2565 = vmatprep.subr.bf16.mxu0 %v3250_v24  ;;  %v3327_v23 = vld [vmem:[#allocation16 + $0x508] ss:$16 sps:$4 sm:$0xff]   ;;  %v3332_v24 = vld [vmem:[#allocation16 + $0x524] ss:$16 sps:$4 sm:$0xff]  }
 0x5a0   :  { %2443 = vmatpush1.bf16.msra.mxu1 %v3245_v29  ;;  %2566 = vmatpush1.bf16.msra.mxu0 %v3248_v50  ;;  %v3335_v29 = vld [vmem:[#allocation16 + $0x52c] ss:$16 sps:$4 sm:$0xff]   ;;  %v3330_v50 = vld [vmem:[#allocation16 + $0x520] ss:$16 sps:$4 sm:$0xff]  }
 0x5a1   :  { %2444 = vmatprep.subr.bf16.mxu1 %v3253_v26  ;;  %2567 = vmatprep.subr.bf16.mxu0 %v3256_v51  ;;  %v3333_v26 = vld [vmem:[#allocation16 + $0x528] ss:$16 sps:$4 sm:$0xff]   ;;  %v3338_v51 = vld [vmem:[#allocation16 + $0x544] ss:$16 sps:$4 sm:$0xff]  }
 0x5a4   :  { %2445 = vmatpush1.bf16.msra.mxu1 %v3251_v27  ;;  %2568 = vmatpush1.bf16.msra.mxu0 %v3254_v28  ;;  %v3341_v27 = vld [vmem:[#allocation16 + $0x54c] ss:$16 sps:$4 sm:$0xff]   ;;  %v3336_v28 = vld [vmem:[#allocation16 + $0x540] ss:$16 sps:$4 sm:$0xff]  }
 0x5a5   :  { %2446 = vmatprep.subr.bf16.mxu1 %v3259_v30  ;;  %2569 = vmatprep.subr.bf16.mxu0 %v3262_v31  ;;  %v3339_v30 = vld [vmem:[#allocation16 + $0x548] ss:$16 sps:$4 sm:$0xff]   ;;  %v3344_v31 = vld [vmem:[#allocation16 + $0x564] ss:$16 sps:$4 sm:$0xff]  }
 0x5a8   :  { %2447 = vmatpush1.bf16.msra.mxu1 %v3257_v32  ;;  %2570 = vmatpush1.bf16.msra.mxu0 %v3260_v33  ;;  %v3347_v32 = vld [vmem:[#allocation16 + $0x56c] ss:$16 sps:$4 sm:$0xff]   ;;  %v3342_v33 = vld [vmem:[#allocation16 + $0x560] ss:$16 sps:$4 sm:$0xff]  }
 0x5a9   :  { %2448 = vmatprep.subr.bf16.mxu1 %v3265_v59  ;;  %2571 = vmatprep.subr.bf16.mxu0 %v3268_v55  ;;  %v3345_v59 = vld [vmem:[#allocation16 + $0x568] ss:$16 sps:$4 sm:$0xff]   ;;  %v3350_v55 = vld [vmem:[#allocation16 + $0x584] ss:$16 sps:$4 sm:$0xff]  }
 0x5ac   :  { %2449 = vmatpush1.bf16.msra.mxu1 %v3263_v56  ;;  %2572 = vmatpush1.bf16.msra.mxu0 %v3266_v63  ;;  %v3348_v56 = vld [vmem:[#allocation16 + $0x580] ss:$16 sps:$4 sm:$0xff]   ;;  %v3351_v63 = vld [vmem:[#allocation16 + $0x588] ss:$16 sps:$4 sm:$0xff]  }
 0x5ad   :  { %2450 = vmatprep.subr.bf16.mxu1 %v3271_v38  ;;  %2573 = vmatprep.subr.bf16.mxu0 %v3274_v39  ;;  %v3356_v38 = vld [vmem:[#allocation16 + $0x5a4] ss:$16 sps:$4 sm:$0xff]   ;;  %v3359_v39 = vld [vmem:[#allocation16 + $0x5ac] ss:$16 sps:$4 sm:$0xff]  }
 0x5b0   :  { %2451 = vmatpush1.bf16.msra.mxu1 %v3269_v41  ;;  %2574 = vmatpush1.bf16.msra.mxu0 %v3272_v42  ;;  %v3354_v41 = vld [vmem:[#allocation16 + $0x5a0] ss:$16 sps:$4 sm:$0xff]   ;;  %v3357_v42 = vld [vmem:[#allocation16 + $0x5a8] ss:$16 sps:$4 sm:$0xff]  }
 0x5b1   :  { %2461 = vmatprep.subr.bf16.mxu1 %v3277_v43  ;;  %2584 = vmatprep.subr.bf16.mxu0 %v3280_v44  ;;  %v3362_v43 = vld [vmem:[#allocation16 + $0x5c4] ss:$16 sps:$4 sm:$0xff]   ;;  %v3365_v44 = vld [vmem:[#allocation16 + $0x5cc] ss:$16 sps:$4 sm:$0xff]  }
 0x5b3   :  { %2453 = vmatmul.mubr.bf16.vlgmr.msra.gmra.mrb[4].mxu1 %v1411_v47  ;;  %2576 = vmatmul.mubr.bf16.vlgmr.msra.gmra.mrb[12].mxu0 %v1411_v47  ;;  %v3368_v47 = vld [vmem:[#allocation16 + $0x5e4] ss:$16 sps:$4 sm:$0xff]  }
 0x5b4   :  { %2462 = vmatpush1.bf16.msra.mxu1 %v3275_v46  ;;  %2493 = vmatprep.mubr.bf16.mxu1 %v1410_v49  ;;  %v3363_v46 = vld [vmem:[#allocation16 + $0x5c8] ss:$16 sps:$4 sm:$0xff]  }
 0x5b5   :  { %2585 = vmatpush1.bf16.msra.mxu0 %v3278_v48  ;;  %2616 = vmatprep.mubr.bf16.mxu0 %v1410_v49  ;;  %v3371_v48 = vld [vmem:[#allocation16 + $0x5ec] ss:$16 sps:$4 sm:$0xff]   ;;  %v3366_v49 = vld [vmem:[#allocation16 + $0x5e0] ss:$16 sps:$4 sm:$0xff]  }
 0x5b6   :  { %2463 = vmatprep.subr.bf16.mxu1 %v3284_v52  ;;  %2586 = vmatprep.subr.bf16.mxu0 %v3287_v11  ;;  %v3369_v52 = vld [vmem:[#allocation16 + $0x5e8] ss:$16 sps:$4 sm:$0xff]   ;;  %v1396_v11 = vrot.slane %v4060_v40, %v3974_v45 }
 0x5b8   :  { %2464 = vmatpush1.bf16.msra.mxu1 %v3282_v53  ;;  %v2988_v53 = vld.sshfl [vmem:[%s4107_s13] sm:$0x33 pattern:$0x75316420] }
 0x5b9   :  { %2587 = vmatpush1.bf16.msra.mxu0 %v3285_v54  ;;  %2465 = vmatprep.subr.bf16.mxu1 %v3290_v57  ;;  %v2652_v54 = vcombine.high %v2988_v53, %v2988_v53 }
 0x5ba   :  { %2588 = vmatprep.subr.bf16.mxu0 %v3293_v58  ;;  %v1343_v58 = vld [vmem:[%s4106_s12] sm:$0xf]  ;;  %s3639_s12 = smov [#allocation18]  }
 0x5bb   :  { %v2666_v57 = vrot.slane %v2652_v54, %v3974_v45  ;;  %v1352_v40 = vrot.slane %v1343_v58, %v3878_v14  ;;  %s2761_s13 = sshll.u32 %s3639_s12, 4  ;;  %s2762_s13 = int_to_ptr.vmem [resolvable:$true] %s2761_s13 }
 0x5bc   :  { %2466 = vmatpush1.bf16.msra.mxu1 %v3288_v36  ;;  %v1359_v36 = vsub.s32 3, %v3872_v12  ;;  %s3580_s0 = scalar_lea.vmem %s2762_s13, 16  ;;  %s3584_s24 = scalar_lea.vmem %s2762_s13, 32 }
 0x5bd   :  { %2589 = vmatpush1.bf16.msra.mxu0 %v3291_v60  ;;  %2467 = vmatprep.subr.bf16.mxu1 %v3296_v61  ;;  %v1348_v60 = vrot.slane %v1343_v58, %v3875_v13  ;;  %v1355_v61 = vsub.s32 2, %v3872_v12  ;;  %p3581_p8 = scmp.ne.s32.totalorder %s2762_s13, %s3580_s0  ;;  %p3585_p9 = scmp.lt.s32.totalorder %s2762_s13, %s2762_s13 }
 0x5be   :  { %2590 = vmatprep.subr.bf16.mxu0 %v3299_v0  ;;  %v1360_v0 = vrot.slane %v1343_v58, %v1359_v36  ;;  %p3586_p10 = scmp.lt.s32.totalorder %s3584_s24, %s3580_s0 }
 0x5c0   :  { %2468 = vmatpush1.bf16.msra.mxu1 %v3294_v1  ;;  %p3587_p11 = por %p3586_p10, %p3585_p9 }
 0x5c1   :  { %2591 = vmatpush1.bf16.msra.mxu0 %v3297_v2  ;;  %2469 = vmatprep.subr.bf16.mxu1 %v3302_v3 }
 0x5c2   :  { %2592 = vmatprep.subr.bf16.mxu0 %v3305_v4  ;;  %p3588_p12 = pnand %p3587_p11, %p3581_p8 }
 0x5c4   :  { %2470 = vmatpush1.bf16.msra.mxu1 %v3300_v5 }
 0x5c5   :  { %2593 = vmatpush1.bf16.msra.mxu0 %v3303_v6  ;;  %2471 = vmatprep.subr.bf16.mxu1 %v3308_v7 }
 0x5c6   :  { %2594 = vmatprep.subr.bf16.mxu0 %v3311_v8 }
 0x5c8   :  { %2472 = vmatpush1.bf16.msra.mxu1 %v3306_v9  ;;  %v1356_v9 = vrot.slane %v1343_v58, %v1355_v61 }
 0x5c9   :  { %2595 = vmatpush1.bf16.msra.mxu0 %v3309_v10  ;;  %2473 = vmatprep.subr.bf16.mxu1 %v3314_v16 }
 0x5ca   :  { %2596 = vmatprep.subr.bf16.mxu0 %v3317_v35 }
 0x5cc   :  { %2474 = vmatpush1.bf16.msra.mxu1 %v3312_v17 }
 0x5cd   :  { %2597 = vmatpush1.bf16.msra.mxu0 %v3315_v18  ;;  %2475 = vmatprep.subr.bf16.mxu1 %v3320_v25 }
 0x5ce   :  { %2598 = vmatprep.subr.bf16.mxu0 %v3323_v15 }
 0x5d0   :  { %2476 = vmatpush1.bf16.msra.mxu1 %v3318_v37 }
 0x5d1   :  { %2599 = vmatpush1.bf16.msra.mxu0 %v3321_v19  ;;  %2477 = vmatprep.subr.bf16.mxu1 %v3326_v20  ;;  %v2659_v20 = vrot.slane %v2988_v53, %v3974_v45 }
 0x5d2   :  { %2600 = vmatprep.subr.bf16.mxu0 %v3329_v21  ;;  %v2668_v21 = vcombine.high %v2666_v57, %v2666_v57 }
 0x5d4   :  { %2478 = vmatpush1.bf16.msra.mxu1 %v3324_v22 }
 0x5d5   :  { %2601 = vmatpush1.bf16.msra.mxu0 %v3327_v23  ;;  %2479 = vmatprep.subr.bf16.mxu1 %v3332_v24  ;;  %v2667_v23 = vcombine.high %v2659_v20, %v2659_v20  ;;  %v2638_v24 = vpop.permute.xlu0 %2637 }
 0x5d6   :  { %2602 = vmatprep.subr.bf16.mxu0 %v3335_v29  ;;  %v2643_v29 = vrot.slane %v2638_v24, %v3875_v13 }
 0x5d8   :  { %2480 = vmatpush1.bf16.msra.mxu1 %v3330_v50 }
 0x5d9   :  { %2603 = vmatpush1.bf16.msra.mxu0 %v3333_v26  ;;  %2481 = vmatprep.subr.bf16.mxu1 %v3338_v51 }
 0x5da   :  { %2604 = vmatprep.subr.bf16.mxu0 %v3341_v27 }
 0x5dc   :  { %2482 = vmatpush1.bf16.msra.mxu1 %v3336_v28 }
 0x5dd   :  { %2605 = vmatpush1.bf16.msra.mxu0 %v3339_v30  ;;  %2483 = vmatprep.subr.bf16.mxu1 %v3344_v31 }
 0x5de   :  { %2606 = vmatprep.subr.bf16.mxu0 %v3347_v32 }
 0x5e0   :  { %2484 = vmatpush1.bf16.msra.mxu1 %v3342_v33 }
 0x5e1   :  { %2607 = vmatpush1.bf16.msra.mxu0 %v3345_v59  ;;  %2485 = vmatprep.subr.bf16.mxu1 %v3350_v55 }
 0x5e2   :  { %2608 = vmatprep.subr.bf16.mxu0 %v3353_v62 }
 0x5e4   :  { %2486 = vmatpush1.bf16.msra.mxu1 %v3348_v56 }
 0x5e5   :  { %2609 = vmatpush1.bf16.msra.mxu0 %v3351_v63  ;;  %2487 = vmatprep.subr.bf16.mxu1 %v3356_v38 }
 0x5e6   :  { %2610 = vmatprep.subr.bf16.mxu0 %v3359_v39 }
 0x5e8   :  { %2488 = vmatpush1.bf16.msra.mxu1 %v3354_v41 }
 0x5e9   :  { %2611 = vmatpush1.bf16.msra.mxu0 %v3357_v42  ;;  %2489 = vmatprep.subr.bf16.mxu1 %v3362_v43 }
 0x5ea   :  { %2612 = vmatprep.subr.bf16.mxu0 %v3365_v44 }
 0x5ec   :  { %2490 = vmatpush1.bf16.msra.mxu1 %v3360_v34 }
 0x5ed   :  { %2613 = vmatpush1.bf16.msra.mxu0 %v3363_v46  ;;  %2491 = vmatprep.subr.bf16.mxu1 %v3368_v47 }
 0x5ee   :  { %2614 = vmatprep.subr.bf16.mxu0 %v3371_v48 }
 0x5f0   :  { %2492 = vmatpush1.bf16.msra.mxu1 %v3366_v49 }
 0x5f1   :  { %2615 = vmatpush1.bf16.msra.mxu0 %v3369_v52 }
 0x5f3   :  { %2494 = vmatmul.mubr.bf16.vlgmr.msra.gmra.mrb[4].mxu1 %v1396_v11 }
 0x5f4   :  { %2617 = vmatmul.mubr.bf16.vlgmr.msra.gmra.mrb[12].mxu0 %v1396_v11  ;;  %2705 = vmatprep.mubr.bf16.mxu1 %v2666_v57 }
 0x6c6   :  { %v2495_v1 = vpop.f32.mrb[4].mxu1 }
 0x6c7   :  { %v3024_v2 = vadd.f32 %v2495_v1, %v1348_v60  ;;  %v2618_v3 = vpop.f32.mrb[12].mxu0  ;;  %v2497_v4 = vpop.f32.mrb[5].mxu1 }
 0x6c8   :  { %v3025_v5 = vadd.f32 %v2497_v4, %v1352_v40  ;;  %v2620_v6 = vpop.f32.mrb[13].mxu0  ;;  %v2499_v7 = vpop.f32.mrb[6].mxu1  ;;  %v3026_v37 = vadd.f32 %v2618_v3, %v1356_v9 }
 0x6c9   :  { %v2625_v8 = vmax.f32 %v3024_v2, 0.0  ;;  %v3027_v10 = vadd.f32 %v2620_v6, %v1360_v0  ;;  %v2622_v16 = vpop.f32.mrb[14].mxu0  ;;  %v2500_v35 = vpop.f32.mrb[7].mxu1 }
 0x6ca   :  { %v2626_v17 = vmax.f32 %v3025_v5, 0.0  ;;  %v2623_v18 = vpop.f32.mrb[15].mxu0  ;;  %v2627_v19 = vmax.f32 %v3026_v37, 0.0 }
 0x6cb   :  { %v2628_v25 = vmax.f32 %v3027_v10, 0.0  ;;  %v2630_v14 = vpack.c.bf16 %v2625_v8, %v2625_v8 }
 0x6cc   :  { %v2631_v15 = vpack.c.bf16 %v2626_v17, %v2626_v17  ;;  %v2632_v22 = vpack.c.bf16 %v2627_v19, %v2627_v19 }
 0x6cd   :  { %v2633_v12 = vpack.c.bf16 %v2628_v25, %v2628_v25 }
 0x6ce   :  { %2673 = vmatprep.subr.bf16.mxu1 %v2631_v15 }
 0x6cf   :  { %2674 = vmatpush1.bf16.xpose.msra.mxu1 %v2630_v14 }
 0x6d0   :  { %2713 = vmatprep.subr.bf16.mxu1 %v2633_v12 }
 0x6d6   :  { %2706 = vmatmul.mubr.bf16.vlgmr.msra.gmra.mrb[8].mxu1 %v2659_v20 }
 0x6d7   :  { %2714 = vmatpush1.bf16.xpose.msra.mxu1 %v2632_v22  ;;  %2745 = vmatprep.mubr.bf16.mxu1 %v2668_v21 }
 0x6e2   :  { %2746 = vmatmul.mubr.bf16.vlgmr.msra.gmra.mrb[8].mxu1 %v2667_v23 }
 0x7b5   :  { %v2747_v50 = vpop.f32.mrb[8].mxu1 }
 0x7b6   :  { %v3028_v26 = vadd.f32 %v2747_v50, %v2643_v29  ;;  %v2749_v51 = vpop.f32.mrb[9].mxu1 }
 0x7b7   :  { %v2750_v27 = vpop.f32.mrb[10].mxu1 }
 0x7b8   :  { %v2751_v28 = vpop.f32.mrb[11].mxu1  ;;  %2754 = vst.msk [vmem:[#allocation18] sm:$0x1] %vm2753_vm6, %v3028_v26 }
 0x7b9   :  { %3591 = shalt.err (!%p3588_p12)
}
 0x7ba   :  { %s3592_s30 = scalar_lea.hbm %s4109_s15, 16 }
 0x7bb   :  { %p3593_p13 = scmp.ne.s32.totalorder %s4109_s15, %s3592_s30  ;;  %p3596_p0 = scmp.lt.u32.totalorder %s3592_s30, %s4109_s15 }
 0x7bd   :  { %p3598_p1 = pnand %p3596_p0, %p3593_p13 }
 0x7bf   :  { %3601 = shalt.err (!%p3598_p1)
}
 0x7c0   :  { %2764 = dma.vmem_to_hbm [thread:$0]  %s2762_s13, 16, %s4109_s15, [#allocation6]  }
 0x7c1   :  { %3612 = dma.done.wait [#allocation6], 16  }
 0x7c2   :  { %3613 = vsyncadd [#allocation6], 4294967280 }
 0x7c3   :  { %2768 = vsyncpa [#allocation5], 1 }
 0x7c4   :  { %2769 = vsyncpa [#allocation8], 1 }
 0x7c5   :  { %2770 = vsyncpa [#allocation11], 1 }
 0x7c6   :  { %2771 = vsyncpa [#allocation14], 1 }
 0x7c7   :  { %2772 = vsyncpa [#allocation17], 1 }
 0x7c8   :  { %2773 = vsyncpa [#allocation6], 1 }

</bundles_post_ra>
